<compile_context>
chip_gen: v5e
topology: v5e:2x2
jax: 0.10.0
libtpu: 0.0.40
codegen_flags: <defaults>
</compile_context>

<pallas_src>
import jax
import jax.numpy as jnp
import numpy as np
from jax.experimental import pallas as pl
from jax.experimental.pallas import tpu as pltpu

# ----------------------------- small synthetic config -----------------------
NUM_USERS = 10       # config.num_users
NUM_WORDS = 50       # config.num_words
USER_DIM = 16        # config.user_embedding_dim
EMB_DIM = 32         # config.word_embedding_dim
QUERY_DIM = 16       # config.query_vector_dim
NUM_FILTERS = 32     # config.num_filters
WINDOW = 3           # config.window_size
T_TITLE = 8          # config.num_words_title
N_CAND = 2           # len(candidate_news)
N_CLICK = 3          # config.num_clicked_news_a_user
BATCH = 2

PAD = (WINDOW - 1) // 2
T_PAD = T_TITLE + 2 * PAD           # zero-padded word axis seen by the kernel
N_TOTAL = N_CAND + N_CLICK          # all titles handled in one pass
WE = WINDOW * EMB_DIM               # packed conv-weight row count (96)
MATMUL_DTYPE = jnp.bfloat16         # bf16 MXU inputs, f32 accumulation


def _round_up(x, m):
    return (x + m - 1) // m * m


# ----------------------------------- kernel ---------------------------------
def npa_kernel(titles_ref, user_ref, conv_ref, lin_ref, att_ref, out_ref):
    """One grid step == one block of B_BLK users.

    titles_ref : (N_TOTAL, T_PAD, B_BLK, E)      zero-padded title word embs (bf16)
    user_ref   : (B_BLK, USER_DIM)               user embeddings (f32)
    conv_ref   : (104, F)   rows [w*E:(w+1)*E) = conv weight for window pos w,
                            row 96 = bias (bf16)
    lin_ref    : (24, 2Q)   rows [0:U)  = packed [news|user] linear w, row U bias
    att_ref    : (40, 2F)   rows [0:2Q) = block-diag attention proj w, row 2Q bias
    out_ref    : (B_BLK, N_CAND)                 click scores
    """
    f32 = jnp.float32
    b_blk = user_ref.shape[0]
    rows = N_TOTAL * T_TITLE * b_blk

    # ---- fused personalized-attention queries (news- and user-level) ----
    u = user_ref[...]                                               # (B, U)
    lin_w = lin_ref[0:USER_DIM, :]                                  # (U, 2Q)
    lin_b = lin_ref[USER_DIM:USER_DIM + 1, :]                       # (1, 2Q)
    q = jnp.maximum(jnp.dot(u, lin_w, preferred_element_type=f32) + lin_b, 0.0)
    att_w = att_ref[0:2 * QUERY_DIM, :]                             # (2Q, 2F) blk-diag
    att_b = att_ref[2 * QUERY_DIM:2 * QUERY_DIM + 1, :]             # (1, 2F)
    temp = jnp.tanh(jnp.dot(q, att_w, preferred_element_type=f32) + att_b)  # (B, 2F)
    temp_news = temp[:, 0:NUM_FILTERS]                              # (B, F)
    temp_user = temp[:, NUM_FILTERS:2 * NUM_FILTERS]                # (B, F)

    # ---- CNN over all candidate+clicked titles: WINDOW shifted-slice matmuls ----
    # leading-axis slices of the padded word axis are free; the sublane fold
    # (NT, T, B, E) -> (NT*T*B, E) is tile aligned because B is a multiple of 16.
    conv_b = conv_ref[WE:WE + 1, :].astype(f32)                     # (1, F)

    def win_dot(w):
        xw = titles_ref[:, w:w + T_TITLE, :, :].reshape(rows, EMB_DIM)   # (R, E) bf16
        w_slab = conv_ref[w * EMB_DIM:(w + 1) * EMB_DIM, :]              # (E, F) bf16
        return jnp.dot(xw, w_slab, preferred_element_type=f32)           # (R, F) f32

    acc = win_dot(0)
    for w in range(1, WINDOW):
        acc = acc + win_dot(w)
    act = jnp.maximum(acc + conv_b, 0.0)
    act = act.reshape(N_TOTAL, T_TITLE, b_blk, NUM_FILTERS)         # (NT, T, B, F)

    # ---- word-level personalized attention, vectorized over all titles ----
    s = jnp.sum(act * temp_news[None, None], axis=-1, keepdims=True)   # (NT, T, B, 1)
    m = s[:, 0]
    for t in range(1, T_TITLE):                                      # max over words
        m = jnp.maximum(m, s[:, t])                                  # (NT, B, 1)
    e = jnp.exp(s - m[:, None])                                      # (NT, T, B, 1)
    den = e[:, 0]
    for t in range(1, T_TITLE):
        den = den + e[:, t]                                          # (NT, B, 1)
    inv = pl.reciprocal(den, approx=True)
    nv = act[:, 0] * e[:, 0]
    for t in range(1, T_TITLE):
        nv = nv + act[:, t] * e[:, t]                                # (NT, B, F)
    news_vecs = nv * inv                                             # (NT, B, F)

    cand_vecs = news_vecs[0:N_CAND]                                  # (K, B, F)
    clk_vecs = news_vecs[N_CAND:N_TOTAL]                             # (L, B, F)

    # ---- UserEncoder: personalized attention over clicked-news vectors ----
    s_u = jnp.sum(clk_vecs * temp_user[None], axis=-1, keepdims=True)   # (L, B, 1)
    m_u = s_u[0]
    for l in range(1, N_CLICK):
        m_u = jnp.maximum(m_u, s_u[l])                               # (B, 1)
    e_u = jnp.exp(s_u - m_u[None])                                   # (L, B, 1)
    den_u = e_u[0]
    for l in range(1, N_CLICK):
        den_u = den_u + e_u[l]
    inv_u = pl.reciprocal(den_u, approx=True)                        # (B, 1)
    uv = clk_vecs[0] * e_u[0]
    for l in range(1, N_CLICK):
        uv = uv + clk_vecs[l] * e_u[l]
    user_vec = uv * inv_u                                            # (B, F)

    # ---- DotProductClickPredictor: click[b, k] = <candidate_k, user_vec> ----
    clicks = [jnp.sum(cand_vecs[k] * user_vec, axis=-1, keepdims=True)   # (B, 1)
              for k in range(N_CAND)]
    out_ref[...] = jnp.concatenate(clicks, axis=-1).astype(out_ref.dtype)  # (B, K)


# ------------------------------- wrapper (glue) ------------------------------
def _embed_titles(word_emb, titles):
    """titles: (N, B, T) int -> (N, T+2*PAD, B, E) zero-padded word embeddings."""
    x = word_emb[titles]                                      # (N, B, T, E) gather
    x = jnp.transpose(x, (0, 2, 1, 3))                        # (N, T, B, E)
    return jnp.pad(x, ((0, 0), (PAD, PAD), (0, 0), (0, 0)))   # conv zero-pad on words


def _pack_rows(*mats):
    """Stack along rows, zero-padding the row count up to a multiple of 8."""
    slab = jnp.concatenate(mats, axis=0)
    rows = _round_up(slab.shape[0], 8)
    return jnp.pad(slab, ((0, rows - slab.shape[0]), (0, 0)))


def npa_forward(params, user, clicked_news_length, cand_titles, clk_titles,
                max_batch_block=256):
    """user: (B,) int32, cand_titles: (N_CAND, B, T), clk_titles: (N_CLICK, B, T)."""
    del clicked_news_length  # unused by NPA's UserEncoder (parity with reference)
    assert max_batch_block % 128 == 0
    B = user.shape[0]
    if B <= max_batch_block:
        b_blk, n_blocks = _round_up(B, 16), 1     # 16 keeps bf16 sublane packing aligned
    else:
        b_blk, n_blocks = max_batch_block, pl.cdiv(B, max_batch_block)
    b_pad = b_blk * n_blocks

    # --- glue: embedding gathers, word-axis zero pad, batch padding, weight packing ---
    u = jnp.pad(params["user_emb"][user], ((0, b_pad - B), (0, 0)))         # (Bp, U)
    titles = jnp.concatenate([_embed_titles(params["word_emb"], cand_titles),
                              _embed_titles(params["word_emb"], clk_titles)], axis=0)
    titles = jnp.pad(titles, ((0, 0), (0, 0), (0, b_pad - B), (0, 0)))
    titles = titles.astype(MATMUL_DTYPE)                                    # (NT,Tp,Bp,E)

    conv_slab = _pack_rows(params["conv_w"].reshape(WE, NUM_FILTERS),
                           params["conv_b"]).astype(MATMUL_DTYPE)           # (104, F)
    lin_slab = _pack_rows(
        jnp.concatenate([params["nlin_w"], params["ulin_w"]], axis=1),
        jnp.concatenate([params["nlin_b"], params["ulin_b"]], axis=1))      # (24, 2Q)
    att_w = jnp.zeros((2 * QUERY_DIM, 2 * NUM_FILTERS), jnp.float32)
    att_w = att_w.at[:QUERY_DIM, :NUM_FILTERS].set(params["natt_w"])
    att_w = att_w.at[QUERY_DIM:, NUM_FILTERS:].set(params["uatt_w"])
    att_slab = _pack_rows(
        att_w, jnp.concatenate([params["natt_b"], params["uatt_b"]], axis=1))  # (40, 2F)

    const2 = lambda g: (0, 0)
    grid_spec = pltpu.PrefetchScalarGridSpec(
        num_scalar_prefetch=0,
        grid=(n_blocks,),
        in_specs=[
            pl.BlockSpec((N_TOTAL, T_PAD, b_blk, EMB_DIM), lambda g: (0, 0, g, 0)),
            pl.BlockSpec((b_blk, USER_DIM), lambda g: (g, 0)),
            pl.BlockSpec(conv_slab.shape, const2),
            pl.BlockSpec(lin_slab.shape, const2),
            pl.BlockSpec(att_slab.shape, const2),
        ],
        out_specs=pl.BlockSpec((b_blk, N_CAND), lambda g: (g, 0)),
    )
    out = pl.pallas_call(
        npa_kernel,
        out_shape=jax.ShapeDtypeStruct((b_pad, N_CAND), jnp.float32),
        grid_spec=grid_spec,
        compiler_params=pltpu.CompilerParams(dimension_semantics=("parallel",)),
    )(titles, u, conv_slab, lin_slab, att_slab)
    return out[:B]                                                          # (B, N_CAND)


# --------------------------- pure-JAX reference (f32) ------------------------
def npa_reference(params, user, cand_titles, clk_titles):
    u = params["user_emb"][user]
    q_news = jax.nn.relu(u @ params["nlin_w"] + params["nlin_b"])
    temp_news = jnp.tanh(q_news @ params["natt_w"] + params["natt_b"])
    q_user = jax.nn.relu(u @ params["ulin_w"] + params["ulin_b"])
    temp_user = jnp.tanh(q_user @ params["uatt_w"] + params["uatt_b"])

    def encode(titles):
        x = params["word_emb"][titles]                            # (B, T, E)
        xp = jnp.pad(x, ((0, 0), (PAD, PAD), (0, 0)))
        acc = jnp.zeros((x.shape[0], T_TITLE, NUM_FILTERS), jnp.float32) + params["conv_b"]
        for wi in range(WINDOW):
            acc = acc + jnp.einsum("bte,ef->btf", xp[:, wi:wi + T_TITLE], params["conv_w"][wi])
        act = jax.nn.relu(acc)
        w = jax.nn.softmax(jnp.einsum("btf,bf->bt", act, temp_news), axis=-1)
        return jnp.einsum("btf,bt->bf", act, w)

    cand_vecs = jnp.stack([encode(cand_titles[k]) for k in range(N_CAND)], axis=1)
    clk_vecs = jnp.stack([encode(clk_titles[l]) for l in range(N_CLICK)], axis=1)
    wl = jax.nn.softmax(jnp.einsum("blf,bf->bl", clk_vecs, temp_user), axis=-1)
    user_vec = jnp.einsum("blf,bl->bf", clk_vecs, wl)
    return jnp.einsum("bkf,bf->bk", cand_vecs, user_vec)


# ----------------------------- deterministic init ----------------------------
def init_params(key):
    ks = jax.random.split(key, 12)
    nrm = lambda k, s: (0.1 * jax.random.normal(k, s)).astype(jnp.float32)
    user_emb = nrm(ks[0], (NUM_USERS + 1, USER_DIM)).at[0].set(0.0)   # padding_idx=0
    word_emb = nrm(ks[1], (NUM_WORDS, EMB_DIM)).at[0].set(0.0)        # padding_idx=0
    return dict(
        user_emb=user_emb,
        word_emb=word_emb,
        conv_w=nrm(ks[2], (WINDOW, EMB_DIM, NUM_FILTERS)),   # Conv2d (F,1,W,E) stored (W,E,F)
        conv_b=nrm(ks[3], (1, NUM_FILTERS)),
        nlin_w=nrm(ks[4], (USER_DIM, QUERY_DIM)),            # NewsEncoder.linear
        nlin_b=nrm(ks[5], (1, QUERY_DIM)),
        natt_w=nrm(ks[6], (QUERY_DIM, NUM_FILTERS)),         # title_attention.dense
        natt_b=nrm(ks[7], (1, NUM_FILTERS)),
        ulin_w=nrm(ks[8], (USER_DIM, QUERY_DIM)),            # UserEncoder.linear
        ulin_b=nrm(ks[9], (1, QUERY_DIM)),
        uatt_w=nrm(ks[10], (QUERY_DIM, NUM_FILTERS)),        # news_attention.dense
        uatt_b=nrm(ks[11], (1, NUM_FILTERS)),
    )


if __name__ == "__main__":
    key = jax.random.PRNGKey(0)
    kp, ku, kc, kh, kl = jax.random.split(key, 5)
    params = init_params(kp)

    user = jax.random.randint(ku, (BATCH,), 1, NUM_USERS + 1, dtype=jnp.int32)
    clicked_news_length = jax.random.randint(kl, (BATCH,), 1, N_CLICK + 1, dtype=jnp.int32)
    cand_titles = jax.random.randint(kc, (N_CAND, BATCH, T_TITLE), 0, NUM_WORDS, dtype=jnp.int32)
    clk_titles = jax.random.randint(kh, (N_CLICK, BATCH, T_TITLE), 0, NUM_WORDS, dtype=jnp.int32)

    out = npa_forward(params, user, clicked_news_length, cand_titles, clk_titles)
    out = jax.block_until_ready(out)

    ref = jax.block_until_ready(npa_reference(params, user, cand_titles, clk_titles))
    # Tolerance covers the bf16 MXU inputs and approx-reciprocal softmax denominators
    # used by the kernel (reference is pure f32).
    np.testing.assert_allclose(np.asarray(out), np.asarray(ref), rtol=2e-2, atol=2e-2)
    print("KERNEL_OK")
</pallas_src>

<mosaic_0001>
module attributes {stable_mosaic.version = 11 : i64} {
  func.func @npa_kernel(%arg0: i32, %arg1: memref<5x10x16x32xbf16, #tpu.memory_space<vmem>>, %arg2: memref<16x16xf32, #tpu.memory_space<vmem>>, %arg3: memref<104x32xbf16, #tpu.memory_space<vmem>>, %arg4: memref<24x32xf32, #tpu.memory_space<vmem>>, %arg5: memref<40x64xf32, #tpu.memory_space<vmem>>, %arg6: memref<16x2xf32, #tpu.memory_space<vmem>>) attributes {dimension_semantics = [#tpu.dimension_semantics<parallel>], iteration_bounds = array<i64: 1>, scalar_prefetch = 0 : i64, scratch_operands = 0 : i64, tpu.core_type = #tpu.core_type<tc>, window_params = [{transform_indices = @transform_0, window_bounds = array<i64: 5, 10, 16, 32>}, {transform_indices = @transform_1, window_bounds = array<i64: 16, 16>}, {pipeline_mode = #tpu.pipeline_mode<synchronous>, transform_indices = @transform_2, window_bounds = array<i64: 104, 32>}, {pipeline_mode = #tpu.pipeline_mode<synchronous>, transform_indices = @transform_3, window_bounds = array<i64: 24, 32>}, {pipeline_mode = #tpu.pipeline_mode<synchronous>, transform_indices = @transform_4, window_bounds = array<i64: 40, 64>}, {transform_indices = @transform_5, window_bounds = array<i64: 16, 2>}]} {
    %c0 = arith.constant 0 : index
    %c0_0 = arith.constant 0 : index
    %0 = vector.load %arg2[%c0, %c0_0] : memref<16x16xf32, #tpu.memory_space<vmem>>, vector<16x16xf32>
    %c0_1 = arith.constant 0 : index
    %c0_2 = arith.constant 0 : index
    %1 = vector.load %arg4[%c0_1, %c0_2] : memref<24x32xf32, #tpu.memory_space<vmem>>, vector<16x32xf32>
    %c16 = arith.constant 16 : index
    %c0_3 = arith.constant 0 : index
    %2 = vector.load %arg4[%c16, %c0_3] : memref<24x32xf32, #tpu.memory_space<vmem>>, vector<1x32xf32>
    %cst = arith.constant dense<0.000000e+00> : vector<16x32xf32>
    %3 = tpu.matmul %0, %1, %cst {dimension_numbers = #tpu.dot_dimension_numbers<[1], [0], [0], [1], [0, 0, 1, 1], [], []>} : vector<16x16xf32>, vector<16x32xf32>, vector<16x32xf32> -> vector<16x32xf32>
    %4 = vector.broadcast %2 : vector<1x32xf32> to vector<16x32xf32>
    %5 = arith.addf %3, %4 : vector<16x32xf32>
    %cst_4 = arith.constant 0.000000e+00 : f32
    %6 = vector.broadcast %cst_4 : f32 to vector<16x32xf32>
    %7 = arith.maximumf %5, %6 : vector<16x32xf32>
    %c0_5 = arith.constant 0 : index
    %c0_6 = arith.constant 0 : index
    %8 = vector.load %arg5[%c0_5, %c0_6] : memref<40x64xf32, #tpu.memory_space<vmem>>, vector<32x64xf32>
    %c32 = arith.constant 32 : index
    %c0_7 = arith.constant 0 : index
    %9 = vector.load %arg5[%c32, %c0_7] : memref<40x64xf32, #tpu.memory_space<vmem>>, vector<1x64xf32>
    %cst_8 = arith.constant dense<0.000000e+00> : vector<16x64xf32>
    %10 = tpu.matmul %7, %8, %cst_8 {dimension_numbers = #tpu.dot_dimension_numbers<[1], [0], [0], [1], [0, 0, 1, 1], [], []>} : vector<16x32xf32>, vector<32x64xf32>, vector<16x64xf32> -> vector<16x64xf32>
    %11 = vector.broadcast %9 : vector<1x64xf32> to vector<16x64xf32>
    %12 = arith.addf %10, %11 : vector<16x64xf32>
    %13 = math.tanh %12 : vector<16x64xf32>
    %14 = vector.extract_strided_slice %13 {offsets = [0, 0], sizes = [16, 32], strides = [1, 1]} : vector<16x64xf32> to vector<16x32xf32>
    %15 = vector.extract_strided_slice %13 {offsets = [0, 32], sizes = [16, 32], strides = [1, 1]} : vector<16x64xf32> to vector<16x32xf32>
    %c96 = arith.constant 96 : index
    %c0_9 = arith.constant 0 : index
    %16 = vector.load %arg3[%c96, %c0_9] : memref<104x32xbf16, #tpu.memory_space<vmem>>, vector<1x32xbf16>
    %17 = arith.extf %16 : vector<1x32xbf16> to vector<1x32xf32>
    %c0_10 = arith.constant 0 : index
    %c0_11 = arith.constant 0 : index
    %c0_12 = arith.constant 0 : index
    %c0_13 = arith.constant 0 : index
    %18 = vector.load %arg1[%c0_10, %c0_11, %c0_12, %c0_13] : memref<5x10x16x32xbf16, #tpu.memory_space<vmem>>, vector<5x8x16x32xbf16>
    %19 = vector.shape_cast %18 : vector<5x8x16x32xbf16> to vector<640x32xbf16>
    %c0_14 = arith.constant 0 : index
    %c0_15 = arith.constant 0 : index
    %20 = vector.load %arg3[%c0_14, %c0_15] : memref<104x32xbf16, #tpu.memory_space<vmem>>, vector<32x32xbf16>
    %cst_16 = arith.constant dense<0.000000e+00> : vector<640x32xf32>
    %21 = tpu.matmul %19, %20, %cst_16 {dimension_numbers = #tpu.dot_dimension_numbers<[1], [0], [0], [1], [0, 0, 1, 1], [], []>} : vector<640x32xbf16>, vector<32x32xbf16>, vector<640x32xf32> -> vector<640x32xf32>
    %c0_17 = arith.constant 0 : index
    %c1 = arith.constant 1 : index
    %c0_18 = arith.constant 0 : index
    %c0_19 = arith.constant 0 : index
    %22 = vector.load %arg1[%c0_17, %c1, %c0_18, %c0_19] : memref<5x10x16x32xbf16, #tpu.memory_space<vmem>>, vector<5x8x16x32xbf16>
    %23 = vector.shape_cast %22 : vector<5x8x16x32xbf16> to vector<640x32xbf16>
    %c32_20 = arith.constant 32 : index
    %c0_21 = arith.constant 0 : index
    %24 = vector.load %arg3[%c32_20, %c0_21] : memref<104x32xbf16, #tpu.memory_space<vmem>>, vector<32x32xbf16>
    %cst_22 = arith.constant dense<0.000000e+00> : vector<640x32xf32>
    %25 = tpu.matmul %23, %24, %cst_22 {dimension_numbers = #tpu.dot_dimension_numbers<[1], [0], [0], [1], [0, 0, 1, 1], [], []>} : vector<640x32xbf16>, vector<32x32xbf16>, vector<640x32xf32> -> vector<640x32xf32>
    %26 = arith.addf %21, %25 : vector<640x32xf32>
    %c0_23 = arith.constant 0 : index
    %c2 = arith.constant 2 : index
    %c0_24 = arith.constant 0 : index
    %c0_25 = arith.constant 0 : index
    %27 = vector.load %arg1[%c0_23, %c2, %c0_24, %c0_25] : memref<5x10x16x32xbf16, #tpu.memory_space<vmem>>, vector<5x8x16x32xbf16>
    %28 = vector.shape_cast %27 : vector<5x8x16x32xbf16> to vector<640x32xbf16>
    %c64 = arith.constant 64 : index
    %c0_26 = arith.constant 0 : index
    %29 = vector.load %arg3[%c64, %c0_26] : memref<104x32xbf16, #tpu.memory_space<vmem>>, vector<32x32xbf16>
    %cst_27 = arith.constant dense<0.000000e+00> : vector<640x32xf32>
    %30 = tpu.matmul %28, %29, %cst_27 {dimension_numbers = #tpu.dot_dimension_numbers<[1], [0], [0], [1], [0, 0, 1, 1], [], []>} : vector<640x32xbf16>, vector<32x32xbf16>, vector<640x32xf32> -> vector<640x32xf32>
    %31 = arith.addf %26, %30 : vector<640x32xf32>
    %32 = vector.broadcast %17 : vector<1x32xf32> to vector<640x32xf32>
    %33 = arith.addf %31, %32 : vector<640x32xf32>
    %cst_28 = arith.constant 0.000000e+00 : f32
    %34 = vector.broadcast %cst_28 : f32 to vector<640x32xf32>
    %35 = arith.maximumf %33, %34 : vector<640x32xf32>
    %36 = vector.shape_cast %35 : vector<640x32xf32> to vector<5x8x16x32xf32>
    %37 = vector.shape_cast %14 : vector<16x32xf32> to vector<1x1x16x32xf32>
    %38 = vector.broadcast %37 : vector<1x1x16x32xf32> to vector<5x8x16x32xf32>
    %39 = arith.mulf %36, %38 : vector<5x8x16x32xf32>
    %cst_29 = arith.constant dense<0.000000e+00> : vector<5x8x16xf32>
    %40 = vector.multi_reduction <add>, %39, %cst_29 [3] : vector<5x8x16x32xf32> to vector<5x8x16xf32>
    %41 = vector.shape_cast %40 : vector<5x8x16xf32> to vector<5x8x16x1xf32>
    %42 = vector.extract_strided_slice %41 {offsets = [0, 0, 0, 0], sizes = [5, 1, 16, 1], strides = [1, 1, 1, 1]} : vector<5x8x16x1xf32> to vector<5x1x16x1xf32>
    %43 = vector.shape_cast %42 : vector<5x1x16x1xf32> to vector<5x16x1xf32>
    %44 = vector.extract_strided_slice %41 {offsets = [0, 1, 0, 0], sizes = [5, 1, 16, 1], strides = [1, 1, 1, 1]} : vector<5x8x16x1xf32> to vector<5x1x16x1xf32>
    %45 = vector.shape_cast %44 : vector<5x1x16x1xf32> to vector<5x16x1xf32>
    %46 = arith.maximumf %43, %45 : vector<5x16x1xf32>
    %47 = vector.extract_strided_slice %41 {offsets = [0, 2, 0, 0], sizes = [5, 1, 16, 1], strides = [1, 1, 1, 1]} : vector<5x8x16x1xf32> to vector<5x1x16x1xf32>
    %48 = vector.shape_cast %47 : vector<5x1x16x1xf32> to vector<5x16x1xf32>
    %49 = arith.maximumf %46, %48 : vector<5x16x1xf32>
    %50 = vector.extract_strided_slice %41 {offsets = [0, 3, 0, 0], sizes = [5, 1, 16, 1], strides = [1, 1, 1, 1]} : vector<5x8x16x1xf32> to vector<5x1x16x1xf32>
    %51 = vector.shape_cast %50 : vector<5x1x16x1xf32> to vector<5x16x1xf32>
    %52 = arith.maximumf %49, %51 : vector<5x16x1xf32>
    %53 = vector.extract_strided_slice %41 {offsets = [0, 4, 0, 0], sizes = [5, 1, 16, 1], strides = [1, 1, 1, 1]} : vector<5x8x16x1xf32> to vector<5x1x16x1xf32>
    %54 = vector.shape_cast %53 : vector<5x1x16x1xf32> to vector<5x16x1xf32>
    %55 = arith.maximumf %52, %54 : vector<5x16x1xf32>
    %56 = vector.extract_strided_slice %41 {offsets = [0, 5, 0, 0], sizes = [5, 1, 16, 1], strides = [1, 1, 1, 1]} : vector<5x8x16x1xf32> to vector<5x1x16x1xf32>
    %57 = vector.shape_cast %56 : vector<5x1x16x1xf32> to vector<5x16x1xf32>
    %58 = arith.maximumf %55, %57 : vector<5x16x1xf32>
    %59 = vector.extract_strided_slice %41 {offsets = [0, 6, 0, 0], sizes = [5, 1, 16, 1], strides = [1, 1, 1, 1]} : vector<5x8x16x1xf32> to vector<5x1x16x1xf32>
    %60 = vector.shape_cast %59 : vector<5x1x16x1xf32> to vector<5x16x1xf32>
    %61 = arith.maximumf %58, %60 : vector<5x16x1xf32>
    %62 = vector.extract_strided_slice %41 {offsets = [0, 7, 0, 0], sizes = [5, 1, 16, 1], strides = [1, 1, 1, 1]} : vector<5x8x16x1xf32> to vector<5x1x16x1xf32>
    %63 = vector.shape_cast %62 : vector<5x1x16x1xf32> to vector<5x16x1xf32>
    %64 = arith.maximumf %61, %63 : vector<5x16x1xf32>
    %65 = vector.shape_cast %64 : vector<5x16x1xf32> to vector<5x1x16x1xf32>
    %66 = vector.broadcast %65 : vector<5x1x16x1xf32> to vector<5x8x16x1xf32>
    %67 = arith.subf %41, %66 : vector<5x8x16x1xf32>
    %68 = math.exp %67 : vector<5x8x16x1xf32>
    %69 = vector.extract_strided_slice %68 {offsets = [0, 0, 0, 0], sizes = [5, 1, 16, 1], strides = [1, 1, 1, 1]} : vector<5x8x16x1xf32> to vector<5x1x16x1xf32>
    %70 = vector.shape_cast %69 : vector<5x1x16x1xf32> to vector<5x16x1xf32>
    %71 = vector.extract_strided_slice %68 {offsets = [0, 1, 0, 0], sizes = [5, 1, 16, 1], strides = [1, 1, 1, 1]} : vector<5x8x16x1xf32> to vector<5x1x16x1xf32>
    %72 = vector.shape_cast %71 : vector<5x1x16x1xf32> to vector<5x16x1xf32>
    %73 = arith.addf %70, %72 : vector<5x16x1xf32>
    %74 = vector.extract_strided_slice %68 {offsets = [0, 2, 0, 0], sizes = [5, 1, 16, 1], strides = [1, 1, 1, 1]} : vector<5x8x16x1xf32> to vector<5x1x16x1xf32>
    %75 = vector.shape_cast %74 : vector<5x1x16x1xf32> to vector<5x16x1xf32>
    %76 = arith.addf %73, %75 : vector<5x16x1xf32>
    %77 = vector.extract_strided_slice %68 {offsets = [0, 3, 0, 0], sizes = [5, 1, 16, 1], strides = [1, 1, 1, 1]} : vector<5x8x16x1xf32> to vector<5x1x16x1xf32>
    %78 = vector.shape_cast %77 : vector<5x1x16x1xf32> to vector<5x16x1xf32>
    %79 = arith.addf %76, %78 : vector<5x16x1xf32>
    %80 = vector.extract_strided_slice %68 {offsets = [0, 4, 0, 0], sizes = [5, 1, 16, 1], strides = [1, 1, 1, 1]} : vector<5x8x16x1xf32> to vector<5x1x16x1xf32>
    %81 = vector.shape_cast %80 : vector<5x1x16x1xf32> to vector<5x16x1xf32>
    %82 = arith.addf %79, %81 : vector<5x16x1xf32>
    %83 = vector.extract_strided_slice %68 {offsets = [0, 5, 0, 0], sizes = [5, 1, 16, 1], strides = [1, 1, 1, 1]} : vector<5x8x16x1xf32> to vector<5x1x16x1xf32>
    %84 = vector.shape_cast %83 : vector<5x1x16x1xf32> to vector<5x16x1xf32>
    %85 = arith.addf %82, %84 : vector<5x16x1xf32>
    %86 = vector.extract_strided_slice %68 {offsets = [0, 6, 0, 0], sizes = [5, 1, 16, 1], strides = [1, 1, 1, 1]} : vector<5x8x16x1xf32> to vector<5x1x16x1xf32>
    %87 = vector.shape_cast %86 : vector<5x1x16x1xf32> to vector<5x16x1xf32>
    %88 = arith.addf %85, %87 : vector<5x16x1xf32>
    %89 = vector.extract_strided_slice %68 {offsets = [0, 7, 0, 0], sizes = [5, 1, 16, 1], strides = [1, 1, 1, 1]} : vector<5x8x16x1xf32> to vector<5x1x16x1xf32>
    %90 = vector.shape_cast %89 : vector<5x1x16x1xf32> to vector<5x16x1xf32>
    %91 = arith.addf %88, %90 : vector<5x16x1xf32>
    %92 = tpu.reciprocal %91 {approx = true} : vector<5x16x1xf32> -> vector<5x16x1xf32>
    %93 = vector.extract_strided_slice %36 {offsets = [0, 0, 0, 0], sizes = [5, 1, 16, 32], strides = [1, 1, 1, 1]} : vector<5x8x16x32xf32> to vector<5x1x16x32xf32>
    %94 = vector.shape_cast %93 : vector<5x1x16x32xf32> to vector<5x16x32xf32>
    %95 = vector.extract_strided_slice %68 {offsets = [0, 0, 0, 0], sizes = [5, 1, 16, 1], strides = [1, 1, 1, 1]} : vector<5x8x16x1xf32> to vector<5x1x16x1xf32>
    %96 = vector.shape_cast %95 : vector<5x1x16x1xf32> to vector<5x16x1xf32>
    %97 = vector.broadcast %96 : vector<5x16x1xf32> to vector<5x16x32xf32>
    %98 = arith.mulf %94, %97 : vector<5x16x32xf32>
    %99 = vector.extract_strided_slice %36 {offsets = [0, 1, 0, 0], sizes = [5, 1, 16, 32], strides = [1, 1, 1, 1]} : vector<5x8x16x32xf32> to vector<5x1x16x32xf32>
    %100 = vector.shape_cast %99 : vector<5x1x16x32xf32> to vector<5x16x32xf32>
    %101 = vector.extract_strided_slice %68 {offsets = [0, 1, 0, 0], sizes = [5, 1, 16, 1], strides = [1, 1, 1, 1]} : vector<5x8x16x1xf32> to vector<5x1x16x1xf32>
    %102 = vector.shape_cast %101 : vector<5x1x16x1xf32> to vector<5x16x1xf32>
    %103 = vector.broadcast %102 : vector<5x16x1xf32> to vector<5x16x32xf32>
    %104 = arith.mulf %100, %103 : vector<5x16x32xf32>
    %105 = arith.addf %98, %104 : vector<5x16x32xf32>
    %106 = vector.extract_strided_slice %36 {offsets = [0, 2, 0, 0], sizes = [5, 1, 16, 32], strides = [1, 1, 1, 1]} : vector<5x8x16x32xf32> to vector<5x1x16x32xf32>
    %107 = vector.shape_cast %106 : vector<5x1x16x32xf32> to vector<5x16x32xf32>
    %108 = vector.extract_strided_slice %68 {offsets = [0, 2, 0, 0], sizes = [5, 1, 16, 1], strides = [1, 1, 1, 1]} : vector<5x8x16x1xf32> to vector<5x1x16x1xf32>
    %109 = vector.shape_cast %108 : vector<5x1x16x1xf32> to vector<5x16x1xf32>
    %110 = vector.broadcast %109 : vector<5x16x1xf32> to vector<5x16x32xf32>
    %111 = arith.mulf %107, %110 : vector<5x16x32xf32>
    %112 = arith.addf %105, %111 : vector<5x16x32xf32>
    %113 = vector.extract_strided_slice %36 {offsets = [0, 3, 0, 0], sizes = [5, 1, 16, 32], strides = [1, 1, 1, 1]} : vector<5x8x16x32xf32> to vector<5x1x16x32xf32>
    %114 = vector.shape_cast %113 : vector<5x1x16x32xf32> to vector<5x16x32xf32>
    %115 = vector.extract_strided_slice %68 {offsets = [0, 3, 0, 0], sizes = [5, 1, 16, 1], strides = [1, 1, 1, 1]} : vector<5x8x16x1xf32> to vector<5x1x16x1xf32>
    %116 = vector.shape_cast %115 : vector<5x1x16x1xf32> to vector<5x16x1xf32>
    %117 = vector.broadcast %116 : vector<5x16x1xf32> to vector<5x16x32xf32>
    %118 = arith.mulf %114, %117 : vector<5x16x32xf32>
    %119 = arith.addf %112, %118 : vector<5x16x32xf32>
    %120 = vector.extract_strided_slice %36 {offsets = [0, 4, 0, 0], sizes = [5, 1, 16, 32], strides = [1, 1, 1, 1]} : vector<5x8x16x32xf32> to vector<5x1x16x32xf32>
    %121 = vector.shape_cast %120 : vector<5x1x16x32xf32> to vector<5x16x32xf32>
    %122 = vector.extract_strided_slice %68 {offsets = [0, 4, 0, 0], sizes = [5, 1, 16, 1], strides = [1, 1, 1, 1]} : vector<5x8x16x1xf32> to vector<5x1x16x1xf32>
    %123 = vector.shape_cast %122 : vector<5x1x16x1xf32> to vector<5x16x1xf32>
    %124 = vector.broadcast %123 : vector<5x16x1xf32> to vector<5x16x32xf32>
    %125 = arith.mulf %121, %124 : vector<5x16x32xf32>
    %126 = arith.addf %119, %125 : vector<5x16x32xf32>
    %127 = vector.extract_strided_slice %36 {offsets = [0, 5, 0, 0], sizes = [5, 1, 16, 32], strides = [1, 1, 1, 1]} : vector<5x8x16x32xf32> to vector<5x1x16x32xf32>
    %128 = vector.shape_cast %127 : vector<5x1x16x32xf32> to vector<5x16x32xf32>
    %129 = vector.extract_strided_slice %68 {offsets = [0, 5, 0, 0], sizes = [5, 1, 16, 1], strides = [1, 1, 1, 1]} : vector<5x8x16x1xf32> to vector<5x1x16x1xf32>
    %130 = vector.shape_cast %129 : vector<5x1x16x1xf32> to vector<5x16x1xf32>
    %131 = vector.broadcast %130 : vector<5x16x1xf32> to vector<5x16x32xf32>
    %132 = arith.mulf %128, %131 : vector<5x16x32xf32>
    %133 = arith.addf %126, %132 : vector<5x16x32xf32>
    %134 = vector.extract_strided_slice %36 {offsets = [0, 6, 0, 0], sizes = [5, 1, 16, 32], strides = [1, 1, 1, 1]} : vector<5x8x16x32xf32> to vector<5x1x16x32xf32>
    %135 = vector.shape_cast %134 : vector<5x1x16x32xf32> to vector<5x16x32xf32>
    %136 = vector.extract_strided_slice %68 {offsets = [0, 6, 0, 0], sizes = [5, 1, 16, 1], strides = [1, 1, 1, 1]} : vector<5x8x16x1xf32> to vector<5x1x16x1xf32>
    %137 = vector.shape_cast %136 : vector<5x1x16x1xf32> to vector<5x16x1xf32>
    %138 = vector.broadcast %137 : vector<5x16x1xf32> to vector<5x16x32xf32>
    %139 = arith.mulf %135, %138 : vector<5x16x32xf32>
    %140 = arith.addf %133, %139 : vector<5x16x32xf32>
    %141 = vector.extract_strided_slice %36 {offsets = [0, 7, 0, 0], sizes = [5, 1, 16, 32], strides = [1, 1, 1, 1]} : vector<5x8x16x32xf32> to vector<5x1x16x32xf32>
    %142 = vector.shape_cast %141 : vector<5x1x16x32xf32> to vector<5x16x32xf32>
    %143 = vector.extract_strided_slice %68 {offsets = [0, 7, 0, 0], sizes = [5, 1, 16, 1], strides = [1, 1, 1, 1]} : vector<5x8x16x1xf32> to vector<5x1x16x1xf32>
    %144 = vector.shape_cast %143 : vector<5x1x16x1xf32> to vector<5x16x1xf32>
    %145 = vector.broadcast %144 : vector<5x16x1xf32> to vector<5x16x32xf32>
    %146 = arith.mulf %142, %145 : vector<5x16x32xf32>
    %147 = arith.addf %140, %146 : vector<5x16x32xf32>
    %148 = vector.broadcast %92 : vector<5x16x1xf32> to vector<5x16x32xf32>
    %149 = arith.mulf %147, %148 : vector<5x16x32xf32>
    %150 = vector.extract_strided_slice %149 {offsets = [0, 0, 0], sizes = [2, 16, 32], strides = [1, 1, 1]} : vector<5x16x32xf32> to vector<2x16x32xf32>
    %151 = vector.extract_strided_slice %149 {offsets = [2, 0, 0], sizes = [3, 16, 32], strides = [1, 1, 1]} : vector<5x16x32xf32> to vector<3x16x32xf32>
    %152 = vector.shape_cast %15 : vector<16x32xf32> to vector<1x16x32xf32>
    %153 = vector.broadcast %152 : vector<1x16x32xf32> to vector<3x16x32xf32>
    %154 = arith.mulf %151, %153 : vector<3x16x32xf32>
    %cst_30 = arith.constant dense<0.000000e+00> : vector<3x16xf32>
    %155 = vector.multi_reduction <add>, %154, %cst_30 [2] : vector<3x16x32xf32> to vector<3x16xf32>
    %156 = vector.shape_cast %155 : vector<3x16xf32> to vector<3x16x1xf32>
    %157 = vector.extract_strided_slice %156 {offsets = [0, 0, 0], sizes = [1, 16, 1], strides = [1, 1, 1]} : vector<3x16x1xf32> to vector<1x16x1xf32>
    %158 = vector.shape_cast %157 : vector<1x16x1xf32> to vector<16x1xf32>
    %159 = vector.extract_strided_slice %156 {offsets = [1, 0, 0], sizes = [1, 16, 1], strides = [1, 1, 1]} : vector<3x16x1xf32> to vector<1x16x1xf32>
    %160 = vector.shape_cast %159 : vector<1x16x1xf32> to vector<16x1xf32>
    %161 = arith.maximumf %158, %160 : vector<16x1xf32>
    %162 = vector.extract_strided_slice %156 {offsets = [2, 0, 0], sizes = [1, 16, 1], strides = [1, 1, 1]} : vector<3x16x1xf32> to vector<1x16x1xf32>
    %163 = vector.shape_cast %162 : vector<1x16x1xf32> to vector<16x1xf32>
    %164 = arith.maximumf %161, %163 : vector<16x1xf32>
    %165 = vector.shape_cast %164 : vector<16x1xf32> to vector<1x16x1xf32>
    %166 = vector.broadcast %165 : vector<1x16x1xf32> to vector<3x16x1xf32>
    %167 = arith.subf %156, %166 : vector<3x16x1xf32>
    %168 = math.exp %167 : vector<3x16x1xf32>
    %169 = vector.extract_strided_slice %168 {offsets = [0, 0, 0], sizes = [1, 16, 1], strides = [1, 1, 1]} : vector<3x16x1xf32> to vector<1x16x1xf32>
    %170 = vector.shape_cast %169 : vector<1x16x1xf32> to vector<16x1xf32>
    %171 = vector.extract_strided_slice %168 {offsets = [1, 0, 0], sizes = [1, 16, 1], strides = [1, 1, 1]} : vector<3x16x1xf32> to vector<1x16x1xf32>
    %172 = vector.shape_cast %171 : vector<1x16x1xf32> to vector<16x1xf32>
    %173 = arith.addf %170, %172 : vector<16x1xf32>
    %174 = vector.extract_strided_slice %168 {offsets = [2, 0, 0], sizes = [1, 16, 1], strides = [1, 1, 1]} : vector<3x16x1xf32> to vector<1x16x1xf32>
    %175 = vector.shape_cast %174 : vector<1x16x1xf32> to vector<16x1xf32>
    %176 = arith.addf %173, %175 : vector<16x1xf32>
    %177 = tpu.reciprocal %176 {approx = true} : vector<16x1xf32> -> vector<16x1xf32>
    %178 = vector.extract_strided_slice %151 {offsets = [0, 0, 0], sizes = [1, 16, 32], strides = [1, 1, 1]} : vector<3x16x32xf32> to vector<1x16x32xf32>
    %179 = vector.shape_cast %178 : vector<1x16x32xf32> to vector<16x32xf32>
    %180 = vector.extract_strided_slice %168 {offsets = [0, 0, 0], sizes = [1, 16, 1], strides = [1, 1, 1]} : vector<3x16x1xf32> to vector<1x16x1xf32>
    %181 = vector.shape_cast %180 : vector<1x16x1xf32> to vector<16x1xf32>
    %182 = vector.broadcast %181 : vector<16x1xf32> to vector<16x32xf32>
    %183 = arith.mulf %179, %182 : vector<16x32xf32>
    %184 = vector.extract_strided_slice %151 {offsets = [1, 0, 0], sizes = [1, 16, 32], strides = [1, 1, 1]} : vector<3x16x32xf32> to vector<1x16x32xf32>
    %185 = vector.shape_cast %184 : vector<1x16x32xf32> to vector<16x32xf32>
    %186 = vector.extract_strided_slice %168 {offsets = [1, 0, 0], sizes = [1, 16, 1], strides = [1, 1, 1]} : vector<3x16x1xf32> to vector<1x16x1xf32>
    %187 = vector.shape_cast %186 : vector<1x16x1xf32> to vector<16x1xf32>
    %188 = vector.broadcast %187 : vector<16x1xf32> to vector<16x32xf32>
    %189 = arith.mulf %185, %188 : vector<16x32xf32>
    %190 = arith.addf %183, %189 : vector<16x32xf32>
    %191 = vector.extract_strided_slice %151 {offsets = [2, 0, 0], sizes = [1, 16, 32], strides = [1, 1, 1]} : vector<3x16x32xf32> to vector<1x16x32xf32>
    %192 = vector.shape_cast %191 : vector<1x16x32xf32> to vector<16x32xf32>
    %193 = vector.extract_strided_slice %168 {offsets = [2, 0, 0], sizes = [1, 16, 1], strides = [1, 1, 1]} : vector<3x16x1xf32> to vector<1x16x1xf32>
    %194 = vector.shape_cast %193 : vector<1x16x1xf32> to vector<16x1xf32>
    %195 = vector.broadcast %194 : vector<16x1xf32> to vector<16x32xf32>
    %196 = arith.mulf %192, %195 : vector<16x32xf32>
    %197 = arith.addf %190, %196 : vector<16x32xf32>
    %198 = vector.broadcast %177 : vector<16x1xf32> to vector<16x32xf32>
    %199 = arith.mulf %197, %198 : vector<16x32xf32>
    %200 = vector.extract_strided_slice %150 {offsets = [0, 0, 0], sizes = [1, 16, 32], strides = [1, 1, 1]} : vector<2x16x32xf32> to vector<1x16x32xf32>
    %201 = vector.shape_cast %200 : vector<1x16x32xf32> to vector<16x32xf32>
    %202 = arith.mulf %201, %199 : vector<16x32xf32>
    %cst_31 = arith.constant dense<0.000000e+00> : vector<16xf32>
    %203 = vector.multi_reduction <add>, %202, %cst_31 [1] : vector<16x32xf32> to vector<16xf32>
    %204 = vector.shape_cast %203 : vector<16xf32> to vector<16x1xf32>
    %205 = vector.extract_strided_slice %150 {offsets = [1, 0, 0], sizes = [1, 16, 32], strides = [1, 1, 1]} : vector<2x16x32xf32> to vector<1x16x32xf32>
    %206 = vector.shape_cast %205 : vector<1x16x32xf32> to vector<16x32xf32>
    %207 = arith.mulf %206, %199 : vector<16x32xf32>
    %cst_32 = arith.constant dense<0.000000e+00> : vector<16xf32>
    %208 = vector.multi_reduction <add>, %207, %cst_32 [1] : vector<16x32xf32> to vector<16xf32>
    %209 = vector.shape_cast %208 : vector<16xf32> to vector<16x1xf32>
    %210 = tpu.concatenate %204, %209 in 1 : vector<16x1xf32>, vector<16x1xf32> -> vector<16x2xf32>
    %c0_33 = arith.constant 0 : index
    %c0_34 = arith.constant 0 : index
    %211 = vector.load %arg6[%c0_33, %c0_34] : memref<16x2xf32, #tpu.memory_space<vmem>>, vector<16x2xf32>
    tpu.vector_store %arg6[%c0_33, %c0_34], %210 {strides = array<i32>} : memref<16x2xf32, #tpu.memory_space<vmem>>, vector<16x2xf32>,
    return
  }
  func.func @transform_0(%arg0: i32) -> (i32, i32, i32, i32) {
    %c0_i32 = arith.constant 0 : i32
    %c0_i32_0 = arith.constant 0 : i32
    %c0_i32_1 = arith.constant 0 : i32
    %c0_i32_2 = arith.constant 0 : i32
    return %c0_i32, %c0_i32_0, %arg0, %c0_i32_1 : i32, i32, i32, i32
  }
  func.func @transform_1(%arg0: i32) -> (i32, i32) {
    %c0_i32 = arith.constant 0 : i32
    %c0_i32_0 = arith.constant 0 : i32
    return %arg0, %c0_i32 : i32, i32
  }
  func.func @transform_2(%arg0: i32) -> (i32, i32) {
    %c0_i32 = arith.constant 0 : i32
    %c0_i32_0 = arith.constant 0 : i32
    %c0_i32_1 = arith.constant 0 : i32
    return %c0_i32, %c0_i32_0 : i32, i32
  }
  func.func @transform_3(%arg0: i32) -> (i32, i32) {
    %c0_i32 = arith.constant 0 : i32
    %c0_i32_0 = arith.constant 0 : i32
    %c0_i32_1 = arith.constant 0 : i32
    return %c0_i32, %c0_i32_0 : i32, i32
  }
  func.func @transform_4(%arg0: i32) -> (i32, i32) {
    %c0_i32 = arith.constant 0 : i32
    %c0_i32_0 = arith.constant 0 : i32
    %c0_i32_1 = arith.constant 0 : i32
    return %c0_i32, %c0_i32_0 : i32, i32
  }
  func.func @transform_5(%arg0: i32) -> (i32, i32) {
    %c0_i32 = arith.constant 0 : i32
    %c0_i32_0 = arith.constant 0 : i32
    return %arg0, %c0_i32 : i32, i32
  }
}

</mosaic_0001>

<bundles_post_ra>
// kernel: tpu_custom_call.1
= control target key start
LH: loop header
LB: loop body
LE: loop exit
PB: predicated region body
PF: predicated region fallthrough
CT: control target
= control target key end

     0   :  { %10 = vsyncpa [#allocation3], 0  ;;  %s6231_s0 = inlined_call_operand.hbm [shape: bf16[5,10,16,32], index: 0, kind: input, shape index: {}]   ;;  %s6232_s1 = inlined_call_operand.hbm [shape: f32[16,16], index: 1, kind: input, shape index: {}]   ;;  %s6233_s2 = inlined_call_operand.vmem [shape: bf16[104,32], index: 2, kind: input, shape index: {}]   ;;  %s6234_s3 = inlined_call_operand.vmem [shape: f32[24,32], index: 3, kind: input, shape index: {}]   ;;  %s6235_s4 = inlined_call_operand.vmem [shape: f32[40,64], index: 4, kind: input, shape index: {}]   ;;  %s6236_s5 = inlined_call_operand.vmem [shape: f32[16,2], index: 5, kind: output, shape index: {}]  }
   0x1   :  { %s16_s20 = sshll.u32 %s6231_s0, 4  ;;  %s17_s20 = int_to_ptr.hbm [resolvable:$true] %s16_s20 }
   0x2   :  { %11 = vsyncpa [#allocation5], 0  ;;  %s4240_s21 = smov [#allocation2]   ;;  %s29_s25 = sshll.u32 %s6232_s1, 4  ;;  %s30_s25 = int_to_ptr.hbm [resolvable:$true] %s29_s25 }
   0x3   :  { %s18_s22 = sshll.u32 %s4240_s21, 4  ;;  %s4241_s26 = smov 64   ;;  %s19_s22 = int_to_ptr.vmem [resolvable:$true] %s18_s22 }
   0x4   :  { %s4242_s27 = smov 4   ;;  %s4243_s28 = smov [#allocation4]  }
   0x5   :  { %24 = dma.hbm_to_vmem [thread:$0]  %s17_s20, 6400, %s19_s22, [#allocation3], %s4241_s26, %s4241_s26, %s4242_s27  }
   0x6   :  { %s31_s29 = sshll.u32 %s4243_s28, 4  ;;  %s4244_s30 = smov 128   ;;  %s32_s29 = int_to_ptr.vmem [resolvable:$true] %s31_s29 }
   0x7   :  { %s4245_s6 = smov 8  }
   0x8   :  { %37 = dma.hbm_to_vmem [thread:$0]  %s30_s25, 256, %s32_s29, [#allocation5], %s4244_s30, %s4244_s30, %s4245_s6  }
   0x9   :  { %4236 = dma.done.wait [#allocation3], 6400  }
   0xa   :  { %4237 = vsyncadd [#allocation3], 4294960896 }
   0xb   :  { %4238 = dma.done.wait [#allocation5], 256  }
   0xc   :  { %4239 = vsyncadd [#allocation5], 4294967040  ;;  %v56_v0 = vld [vmem:[%s6234_s3 + $0x8] sm:$0xff]  ;;  %v55_v1 = vld [vmem:[%s6234_s3] sm:$0xff]  ;;  %vm59_vm0 = vcmask 130048   ;;  %vm97_vm1 = vcmask 261120  }
   0xd   :  { %80 = vmatpush.msra.mxu0 %v56_v0  ;;  %v53_v2 = vld [vmem:[#allocation4] sm:$0xff]  ;;  %v4292_v3 = vld [vmem:[%s6233_s2 + $0x28] sm:$0xff]  ;;  %v4298_v4 = vld [vmem:[%s6233_s2 + $0x20] sm:$0xff]  ;;  %vm3207_vm2 = vcmask 7168   ;;  %vm3210_vm3 = vcmask 15360  }
   0xe   :  { %v54_v5 = vld [vmem:[#allocation4 + $0x8] sm:$0xff]  ;;  %v3931_v6 = vld [vmem:[#allocation2 + $0x10] sm:$0xff]  ;;  %v3888_v9 = vld [vmem:[%s6233_s2 + $0x8] sm:$0xff] }
   0xf   :  { %81 = vmatpush.msra.mxu0 %v55_v1  ;;  %v3932_v7 = vld [vmem:[#allocation2 + $0x18] sm:$0xff]  ;;  %3975 = vmatpush.bf16.msra.mxu3 %v3888_v9  ;;  %v3929_v10 = vld [vmem:[%s6233_s2 + $0x10] sm:$0xff]  ;;  %v3887_v11 = vld [vmem:[%s6233_s2] sm:$0xff] }
  0x10   :  { %3219 = vmatmul.msk.f32.vlgmr.msra.gmra.mxu0 %vm59_vm0, %v53_v2  ;;  %v3930_v8 = vld [vmem:[%s6233_s2 + $0x18] sm:$0xff]  ;;  %v3933_v12 = vld [vmem:[#allocation2 + $0x20] sm:$0xff]  ;;  %v3934_v15 = vld [vmem:[#allocation2 + $0x28] sm:$0xff] }
  0x11   :  { %1805 = vmatpush.bf16.msrb.mxu0 %v4292_v3  ;;  %3973 = vmatpush.bf16.msra.mxu2 %v3930_v8  ;;  %v3898_v13 = vld [vmem:[#allocation2 + $0x60] sm:$0xff]  ;;  %v3856_v14 = vld [vmem:[#allocation2 + $0x58] sm:$0xff]  ;;  %v3899_v16 = vld [vmem:[#allocation2 + $0x68] sm:$0xff] }
  0x12   :  { %v3857_v17 = vld [vmem:[#allocation2 + $0x60] sm:$0xff]  ;;  %v3935_v18 = vld [vmem:[#allocation2 + $0x30] sm:$0xff]  ;;  %v3858_v20 = vld [vmem:[#allocation2 + $0x68] sm:$0xff] }
  0x13   :  { %3976 = vmatpush.bf16.msra.mxu3 %v3887_v11  ;;  %v3900_v19 = vld [vmem:[#allocation2 + $0x70] sm:$0xff]  ;;  %v94_v21 = vld [vmem:[%s6235_s4 + $0x18] sm:$0xff]  ;;  %v92_v24 = vld [vmem:[%s6235_s4 + $0x8] sm:$0xff] }
  0x14   :  { %116 = vmatpush.msra.mxu1 %v94_v21  ;;  %v3936_v22 = vld [vmem:[#allocation2 + $0x38] sm:$0xff]  ;;  %v93_v23 = vld [vmem:[%s6235_s4 + $0x10] sm:$0xff]  ;;  %v91_v25 = vld [vmem:[%s6235_s4] sm:$0xff] }
  0x15   :  { %1806 = vmatpush.bf16.msrb.mxu0 %v4298_v4  ;;  %3974 = vmatpush.bf16.msra.mxu2 %v3929_v10  ;;  %v3901_v26 = vld [vmem:[#allocation2 + $0x78] sm:$0xff]  ;;  %v3859_v27 = vld [vmem:[#allocation2 + $0x70] sm:$0xff]  ;;  %v3937_v28 = vld [vmem:[#allocation2 + $0x40] sm:$0xff] }
  0x16   :  { %3608 = vmatmul.msk.bf16.vlgmr.msra.gmra.mxu3 %vm97_vm1, %v3856_v14  ;;  %117 = vmatpush.msra.mxu1 %v93_v23  ;;  %v3902_v29 = vld [vmem:[#allocation2 + $0x80] sm:$0xff]  ;;  %v3860_v30 = vld [vmem:[#allocation2 + $0x78] sm:$0xff]  ;;  %v3986_v31 = vld [vmem:[%s6234_s3 + $0x10] ss:$0 sm:$0xff] }
  0x17   :  { %v3938_v32 = vld [vmem:[#allocation2 + $0x48] sm:$0xff]  ;;  %v3861_v37 = vld [vmem:[#allocation2 + $0x80] sm:$0xff]  ;;  %v3904_v44 = vld [vmem:[#allocation2 + $0x90] sm:$0xff] }
  0x18   :  { %3220 = vmatmul.msk.f32.gmra.mxu0 %vm59_vm0, %v54_v5  ;;  %3400 = vmatmul.msk.bf16.vlgmr.msra.gmra.mxu2 %vm97_vm1, %v3898_v13  ;;  %v3903_v36 = vld [vmem:[#allocation2 + $0x88] sm:$0xff]  ;;  %v3939_v41 = vld [vmem:[#allocation2 + $0x60] sm:$0xff]  ;;  %v3890_v49 = vld [vmem:[#allocation2 + $0x10] sm:$0xff] }
  0x19   :  { %118 = vmatpush.msra.mxu1 %v92_v24  ;;  %v3889_v43 = vld [vmem:[#allocation2 + $0x8] sm:$0xff]  ;;  %v3863_v51 = vld [vmem:[#allocation2 + $0xa0] sm:$0xff]  ;;  %v3941_v53 = vld [vmem:[#allocation2 + $0x70] sm:$0xff] }
  0x1a   :  { %v3862_v45 = vld [vmem:[#allocation2 + $0x88] sm:$0xff]  ;;  %v3891_v55 = vld [vmem:[#allocation2 + $0x18] sm:$0xff]  ;;  %v3906_v56 = vld [vmem:[#allocation2 + $0xb0] sm:$0xff] }
  0x1b   :  { %119 = vmatpush.msra.mxu1 %v91_v25  ;;  %v3940_v47 = vld [vmem:[#allocation2 + $0x68] sm:$0xff]  ;;  %v3942_v61 = vld [vmem:[#allocation2 + $0x78] sm:$0xff]  ;;  %v3892_v0 = vld [vmem:[#allocation2 + $0x20] sm:$0xff] }
  0x1c   :  { %v3905_v50 = vld [vmem:[#allocation2 + $0xa8] sm:$0xff]  ;;  %v3907_v2 = vld [vmem:[#allocation2 + $0xb8] sm:$0xff]  ;;  %v3867_v23 = vld [vmem:[#allocation2 + $0xc0] sm:$0xff] }
  0x1d   :  { %638 = vmatpush.bf16.msrb.mxu1 %v3930_v8  ;;  %v3864_v57 = vld [vmem:[#allocation2 + $0xa8] sm:$0xff]  ;;  %v3866_v13 = vld [vmem:[#allocation2 + $0xb8] sm:$0xff] }
  0x20   :  { %3807 = vmatmul.msk.bf16.vlgmr.msrb.gmra.mxu0 %vm97_vm1, %v3931_v6 }
  0x21   :  { %639 = vmatpush.bf16.msrb.mxu1 %v3929_v10  ;;  %v3893_v10 = vld [vmem:[#allocation2 + $0x28] sm:$0xff] }
  0x26   :  { %3609 = vmatmul.msk.bf16.gmra.mxu3 %vm97_vm1, %v3857_v17  ;;  %v3944_v17 = vld [vmem:[#allocation2 + $0x88] sm:$0xff] }
  0x28   :  { %3401 = vmatmul.msk.bf16.gmra.mxu2 %vm97_vm1, %v3899_v16 }
  0x30   :  { %3808 = vmatmul.msk.bf16.gmra.mxu0 %vm97_vm1, %v3932_v7  ;;  %v3943_v7 = vld [vmem:[#allocation2 + $0x80] sm:$0xff] }
  0x36   :  { %3610 = vmatmul.msk.bf16.gmra.mxu3 %vm97_vm1, %v3858_v20  ;;  %v3894_v20 = vld [vmem:[#allocation2 + $0x30] sm:$0xff] }
  0x38   :  { %3402 = vmatmul.msk.bf16.gmra.mxu2 %vm97_vm1, %v3900_v19 }
  0x40   :  { %3809 = vmatmul.msk.bf16.gmra.mxu0 %vm97_vm1, %v3933_v12  ;;  %v3908_v12 = vld [vmem:[#allocation2 + $0xc0] sm:$0xff] }
  0x46   :  { %3611 = vmatmul.msk.bf16.gmra.mxu3 %vm97_vm1, %v3859_v27  ;;  %v3945_v27 = vld [vmem:[#allocation2 + $0x90] sm:$0xff] }
  0x48   :  { %3403 = vmatmul.msk.bf16.gmra.mxu2 %vm97_vm1, %v3901_v26 }
  0x50   :  { %3810 = vmatmul.msk.bf16.gmra.mxu0 %vm97_vm1, %v3934_v15 }
  0x56   :  { %3612 = vmatmul.msk.bf16.gmra.mxu3 %vm97_vm1, %v3860_v30  ;;  %v3895_v30 = vld [vmem:[#allocation2 + $0x38] sm:$0xff] }
  0x58   :  { %3404 = vmatmul.msk.bf16.gmra.mxu2 %vm97_vm1, %v3902_v29 }
  0x60   :  { %3811 = vmatmul.msk.bf16.gmra.mxu0 %vm97_vm1, %v3935_v18 }
  0x66   :  { %3613 = vmatmul.msk.bf16.gmra.mxu3 %vm97_vm1, %v3861_v37  ;;  %v3946_v37 = vld [vmem:[#allocation2 + $0x98] sm:$0xff] }
  0x68   :  { %3405 = vmatmul.msk.bf16.gmra.mxu2 %vm97_vm1, %v3903_v36 }
  0x70   :  { %3812 = vmatmul.msk.bf16.gmra.mxu0 %vm97_vm1, %v3936_v22  ;;  %v3909_v22 = vld [vmem:[#allocation2 + $0xc8] sm:$0xff] }
  0x76   :  { %3614 = vmatmul.msk.bf16.gmra.mxu3 %vm97_vm1, %v3862_v45  ;;  %v3869_v45 = vld [vmem:[#allocation2 + $0xd0] sm:$0xff] }
  0x78   :  { %3406 = vmatmul.msk.bf16.gmra.mxu2 %vm97_vm1, %v3904_v44  ;;  %v3911_v44 = vld [vmem:[#allocation2 + $0xd8] sm:$0xff] }
  0x80   :  { %3813 = vmatmul.msk.bf16.gmra.mxu0 %vm97_vm1, %v3937_v28 }
  0x86   :  { %3615 = vmatmul.msk.bf16.gmra.mxu3 %vm97_vm1, %v3863_v51 }
  0x88   :  { %3407 = vmatmul.msk.bf16.gmra.mxu2 %vm97_vm1, %v3905_v50 }
  0x8d   :  { %v83_v33 = vpop.f32.mrf.mxu0 }
  0x8e   :  { %v84_v34 = vadd.f32 %v3986_v31, %v83_v33  ;;  %v3868_v33 = vld [vmem:[#allocation2 + $0xc8] sm:$0xff] }
  0x90   :  { %v89_v35 = vmax.f32 %v84_v34, 0.0  ;;  %3814 = vmatmul.msk.bf16.gmra.mxu0 %vm97_vm1, %v3938_v32  ;;  %v3910_v32 = vld [vmem:[#allocation2 + $0xd0] sm:$0xff] }
  0x92   :  { %3221 = vmatmul.msk.f32.vlgmr.msra.gmra.mxu1 %vm97_vm1, %v89_v35 }
  0x93   :  { %1179 = vmatpush.bf16.msra.mxu1 %v3888_v9 }
  0x95   :  { %v86_v38 = vpop.f32.mrf.mxu0 }
  0x96   :  { %v87_v39 = vadd.f32 %v3986_v31, %v86_v38  ;;  %3616 = vmatmul.msk.bf16.gmra.mxu3 %vm97_vm1, %v3864_v57  ;;  %v3897_v57 = vld [vmem:[#allocation2 + $0x58] sm:$0xff] }
  0x97   :  { %1180 = vmatpush.bf16.msra.mxu1 %v3887_v11 }
  0x98   :  { %v90_v40 = vmax.f32 %v87_v39, 0.0  ;;  %3408 = vmatmul.msk.bf16.gmra.mxu2 %vm97_vm1, %v3906_v56 }
  0x99   :  { %v4378_v60 = vpop.f32.mrf.mxu3 }
  0x9a   :  { %3222 = vmatmul.msk.f32.gmra.mxu1 %vm97_vm1, %v90_v40  ;;  %v3896_v40 = vld [vmem:[#allocation2 + $0x40] sm:$0xff] }
  0x9b   :  { %v4376_v59 = vpop.f32.mrf.mxu2 }
  0x9d   :  { %v4350_v42 = vpop.f32.mrf.mxu0 }
  0xa0   :  { %3815 = vmatmul.msk.bf16.gmra.mxu0 %vm97_vm1, %v3939_v41 }
  0xa1   :  { %v4384_v1 = vpop.f32.mrf.mxu3 }
  0xa2   :  { %3391 = vmatmul.msk.bf16.vlgmr.msrb.gmra.mxu1 %vm97_vm1, %v3889_v43 }
  0xa3   :  { %3977 = vmatpush.bf16.msrb.mxu1 %v4292_v3  ;;  %v4382_v63 = vpop.f32.mrf.mxu2  ;;  %v3865_v3 = vld [vmem:[#allocation2 + $0xb0] sm:$0xff] }
  0xa5   :  { %v4357_v46 = vpop.f32.mrf.mxu0 }
  0xa6   :  { %3617 = vmatmul.msk.bf16.gmra.mxu3 %vm97_vm1, %v3865_v3  ;;  %v3870_v3 = vld [vmem:[#allocation2 + $0xd8] sm:$0xff] }
  0xa7   :  { %3978 = vmatpush.bf16.msrb.mxu1 %v4298_v4 }
  0xa8   :  { %3409 = vmatmul.msk.bf16.gmra.mxu2 %vm97_vm1, %v3907_v2  ;;  %v3912_v2 = vld [vmem:[#allocation2 + $0xe0] sm:$0xff] }
  0xa9   :  { %v4394_v6 = vpop.f32.mrf.mxu3 }
  0xab   :  { %v4392_v5 = vpop.f32.mrf.mxu2 }
  0xad   :  { %v4360_v48 = vpop.f32.mrf.mxu0 }
  0xb0   :  { %3816 = vmatmul.msk.bf16.gmra.mxu0 %vm97_vm1, %v3940_v47 }
  0xb1   :  { %v4400_v11 = vpop.f32.mrf.mxu3 }
  0xb2   :  { %3392 = vmatmul.msk.bf16.gmra.mxu1 %vm97_vm1, %v3890_v49 }
  0xb3   :  { %v4398_v9 = vpop.f32.mrf.mxu2 }
  0xb5   :  { %v4366_v52 = vpop.f32.mrf.mxu0 }
  0xb6   :  { %3618 = vmatmul.msk.bf16.gmra.mxu3 %vm97_vm1, %v3866_v13 }
  0xb8   :  { %3410 = vmatmul.msk.bf16.gmra.mxu2 %vm97_vm1, %v3908_v12  ;;  %v129_v12 = vld [vmem:[%s6233_s2 + $0x30] sm:$0x1]  ;;  %s4246_s2 = smov 96  }
  0xb9   :  { %v4410_v16 = vpop.f32.mrf.mxu3 }
  0xbb   :  { %v4408_v15 = vpop.f32.mrf.mxu2 }
  0xbd   :  { %v4368_v54 = vpop.f32.mrf.mxu0 }
  0xc0   :  { %3817 = vmatmul.msk.bf16.gmra.mxu0 %vm97_vm1, %v3941_v53  ;;  %v3947_v53 = vld [vmem:[#allocation2 + $0xb0] sm:$0xff] }
  0xc1   :  { %v4416_v21 = vpop.f32.mrf.mxu3 }
  0xc2   :  { %3393 = vmatmul.msk.bf16.gmra.mxu1 %vm97_vm1, %v3891_v55 }
  0xc3   :  { %v4414_v19 = vpop.f32.mrf.mxu2 }
  0xc5   :  { %v4374_v58 = vpop.f32.mrf.mxu0 }
  0xc6   :  { %3619 = vmatmul.msk.bf16.gmra.mxu3 %vm97_vm1, %v3867_v23  ;;  %v130_v23 = vunpack.c.l.bf16 %v129_v12 }
  0xc8   :  { %3411 = vmatmul.msk.bf16.gmra.mxu2 %vm97_vm1, %v3909_v22 }
  0xc9   :  { %v4426_v26 = vpop.f32.mrf.mxu3 }
  0xcb   :  { %v4424_v25 = vpop.f32.mrf.mxu2 }
  0xcd   :  { %v4380_v62 = vpop.f32.mrf.mxu0 }
  0xd0   :  { %3818 = vmatmul.msk.bf16.gmra.mxu0 %vm97_vm1, %v3942_v61 }
  0xd1   :  { %v4432_v31 = vpop.f32.mrf.mxu3 }
  0xd2   :  { %3394 = vmatmul.msk.bf16.gmra.mxu1 %vm97_vm1, %v3892_v0 }
  0xd3   :  { %v4430_v29 = vpop.f32.mrf.mxu2 }
  0xd5   :  { %v4390_v4 = vpop.f32.mrf.mxu0 }
  0xd6   :  { %3620 = vmatmul.msk.bf16.gmra.mxu3 %vm97_vm1, %v3868_v33  ;;  %v3948_v33 = vld [vmem:[#allocation2 + $0xb8] sm:$0xff] }
  0xd8   :  { %3412 = vmatmul.msk.bf16.gmra.mxu2 %vm97_vm1, %v3910_v32  ;;  %v4486_v32 = vperm.slane %v130_v23, 0 }
  0xd9   :  { %v4442_v36 = vpop.f32.mrf.mxu3 }
  0xdb   :  { %v4440_v35 = vpop.f32.mrf.mxu2 }
  0xdd   :  { %v4396_v8 = vpop.f32.mrf.mxu0 }
  0xe0   :  { %3819 = vmatmul.msk.bf16.gmra.mxu0 %vm97_vm1, %v3943_v7  ;;  %v3987_v7 = vld [vmem:[%s6235_s4 + $0x20] ss:$0 sm:$0xff] }
  0xe1   :  { %v4448_v41 = vpop.f32.mrf.mxu3 }
  0xe2   :  { %3395 = vmatmul.msk.bf16.gmra.mxu1 %vm97_vm1, %v3893_v10 }
  0xe3   :  { %v4446_v39 = vpop.f32.mrf.mxu2 }
  0xe5   :  { %v4406_v14 = vpop.f32.mrf.mxu0 }
  0xe6   :  { %3621 = vmatmul.msk.bf16.gmra.mxu3 %vm97_vm1, %v3869_v45  ;;  %v3847_v45 = vld [vmem:[#allocation2] sm:$0xff] }
  0xe8   :  { %3413 = vmatmul.msk.bf16.gmra.mxu2 %vm97_vm1, %v3911_v44 }
  0xe9   :  { %v4458_v50 = vpop.f32.mrf.mxu3 }
  0xeb   :  { %v4456_v49 = vpop.f32.mrf.mxu2 }
  0xed   :  { %v4412_v18 = vpop.f32.mrf.mxu0 }
  0xf0   :  { %3820 = vmatmul.msk.bf16.gmra.mxu0 %vm97_vm1, %v3944_v17 }
  0xf1   :  { %v4464_v61 = vpop.f32.mrf.mxu3 }
  0xf2   :  { %3396 = vmatmul.msk.bf16.gmra.mxu1 %vm97_vm1, %v3894_v20 }
  0xf3   :  { %v4462_v56 = vpop.f32.mrf.mxu2 }
  0xf5   :  { %v4422_v24 = vpop.f32.mrf.mxu0 }
  0xf6   :  { %3622 = vmatmul.msk.bf16.gmra.mxu3 %vm97_vm1, %v3870_v3 }
  0xf8   :  { %3414 = vmatmul.msk.bf16.gmra.mxu2 %vm97_vm1, %v3912_v2 }
  0xf9   :  { %v1257_v17 = vpop.f32.mrf.mxu3 }
  0xfb   :  { %v716_v13 = vpop.f32.mrf.mxu2 }
  0xfc   :  { %v4482_v22 = vadd.f32 %v1257_v17, %v716_v13  ;;  %v1230_v17 = vadd.f32 %v4384_v1, %v4382_v63 }
  0xfd   :  { %v4428_v28 = vpop.f32.mrf.mxu0 }
 0x100   :  { %3821 = vmatmul.msk.bf16.gmra.mxu0 %vm97_vm1, %v3945_v27 }
 0x102   :  { %3397 = vmatmul.msk.bf16.gmra.mxu1 %vm97_vm1, %v3895_v30  ;;  %v1228_v30 = vadd.f32 %v4378_v60, %v4376_v59  ;;  %v3871_v59 = vld [vmem:[#allocation2 + $0xf0] sm:$0xff] }
 0x105   :  { %v4438_v34 = vpop.f32.mrf.mxu0 }
 0x106   :  { %3623 = vmatmul.msk.bf16.gmra.mxu3 %vm97_vm1, %v3871_v59 }
 0x10d   :  { %v4444_v38 = vpop.f32.mrf.mxu0 }
 0x10e   :  { %6373 = vst [vmem:[#allocation8_spill] sm:$0xff] %v4444_v38 }
 0x10f   :  { %v121_v43 = vpop.f32.mrf.mxu1 }
 0x110   :  { %3822 = vmatmul.msk.bf16.gmra.mxu0 %vm97_vm1, %v3946_v37  ;;  %v122_v27 = vadd.f32 %v3987_v7, %v121_v43  ;;  %v3913_v43 = vld [vmem:[#allocation2 + $0xf8] sm:$0xff] }
 0x111   :  { %3415 = vmatmul.msk.bf16.gmra.mxu2 %vm97_vm1, %v3913_v43 }
 0x112   :  { %3398 = vmatmul.msk.bf16.gmra.mxu1 %vm97_vm1, %v3896_v40  ;;  %3988 = vtanh.f32 %v122_v27  ;;  %v718_v40 = vpop.f32.mrf.mxu2 }
 0x115   :  { %v4454_v47 = vpop.f32.mrf.mxu0 }
 0x116   :  { %6374 = vst [vmem:[#allocation9_spill] sm:$0xff] %v4454_v47 }
 0x117   :  { %v124_v51 = vpop.f32.mrf.mxu1 }
 0x118   :  { %v125_v60 = vadd.f32 %v3987_v7, %v124_v51  ;;  %v4499_v13 = vpop.eup %3988 }
 0x11a   :  { %3990 = vtanh.f32 %v125_v60  ;;  %v4507_v51 = vpop.f32.mrf.mxu2 }
 0x11d   :  { %v4460_v55 = vpop.f32.mrf.mxu0 }
 0x11e   :  { %6375 = vst [vmem:[#allocation10_spill] sm:$0xff] %v4460_v55 }
 0x11f   :  { %v4466_v0 = vpop.f32.mrf.mxu1 }
 0x120   :  { %3823 = vmatmul.msk.bf16.gmra.mxu0 %vm97_vm1, %v3947_v53  ;;  %v1259_v53 = vpop.f32.mrf.mxu3  ;;  %v4518_v1 = vpop.eup %3990 }
 0x121   :  { %v4490_v2 = vadd.f32 %v1259_v53, %v718_v40  ;;  %v3949_v53 = vld [vmem:[#allocation2 + $0xc0] sm:$0xff] }
 0x122   :  { %3399 = vmatmul.msk.bf16.gmra.mxu1 %vm97_vm1, %v3897_v57  ;;  %v4525_v59 = vpop.f32.mrf.mxu2 }
 0x125   :  { %v4475_v10 = vpop.f32.mrf.mxu0 }
 0x126   :  { %6376 = vst [vmem:[#allocation11_spill] sm:$0xff] %v4475_v10 }
 0x127   :  { %v4480_v20 = vpop.f32.mrf.mxu1 }
 0x12d   :  { %v1853_v37 = vpop.f32.mrf.mxu0 }
 0x12e   :  { %v2026_v44 = vadd.f32 %v1853_v37, %v1228_v30 }
 0x12f   :  { %v4488_v57 = vpop.f32.mrf.mxu1 }
 0x130   :  { %v4493_v3 = vadd.f32 %v4486_v32, %v2026_v44  ;;  %3824 = vmatmul.msk.bf16.gmra.mxu0 %vm97_vm1, %v3948_v33  ;;  %v4510_v33 = vpop.f32.mrf.mxu3  ;;  %v1233_v44 = vadd.f32 %v4394_v6, %v4392_v5  ;;  %v3914_v5 = vld [vmem:[#allocation2 + $0x100] sm:$0xff]  ;;  %v3872_v6 = vld [vmem:[#allocation2 + $0xf8] sm:$0xff] }
 0x131   :  { %3416 = vmatmul.msk.bf16.gmra.mxu2 %vm97_vm1, %v3914_v5  ;;  %3624 = vmatmul.msk.bf16.gmra.mxu3 %vm97_vm1, %v3872_v6 }
 0x132   :  { %6377 = vst [vmem:[#allocation12_spill] sm:$0xff] %v4493_v3  ;;  %v6238_v12 = vmax.f32 %v4493_v3, 0.0  ;;  %3599 = vmatmul.msk.bf16.vlgmr.msra.gmra.mxu1 %vm97_vm1, %v3847_v45 }
 0x134   :  { %v2267_v23 = vmul.f32 %v4499_v13, %v6238_v12 }
 0x135   :  { %v1855_v27 = vpop.f32.mrf.mxu0 }
 0x136   :  { %v2027_v7 = vadd.f32 %v1855_v27, %v1230_v17  ;;  %v2383_v30 = vsel %vm97_vm1, %v2267_v23, 0.0  ;;  %v3848_v23 = vld [vmem:[#allocation2 + $0x8] sm:$0xff] }
 0x137   :  { %v4512_v37 = vpop.f32.mrf.mxu1  ;;  %2384 = vadd.xlane.f32.xlu0 %v2383_v30 }
 0x138   :  { %v4515_v40 = vadd.f32 %v4486_v32, %v2027_v7  ;;  %v4528_v27 = vpop.f32.mrf.mxu3 }
 0x13a   :  { %6378 = vst [vmem:[#allocation13_spill] sm:$0xff] %v4515_v40  ;;  %v6237_v63 = vmax.f32 %v4515_v40, 0.0 }
 0x13c   :  { %v2268_v45 = vmul.f32 %v4518_v1, %v6237_v63 }
 0x13d   :  { %v1858_v43 = vpop.f32.mrf.mxu0 }
 0x13e   :  { %v2028_v60 = vadd.f32 %v1858_v43, %v1233_v44  ;;  %v2386_v17 = vsel %vm97_vm1, %v2268_v45, 0.0  ;;  %v1235_v44 = vadd.f32 %v4400_v11, %v4398_v9  ;;  %v1238_v11 = vadd.f32 %v4410_v16, %v4408_v15  ;;  %v3915_v15 = vld [vmem:[#allocation2 + $0x108] sm:$0xff]  ;;  %v3873_v16 = vld [vmem:[#allocation2 + $0x100] sm:$0xff] }
 0x13f   :  { %v4530_v7 = vpop.f32.mrf.mxu1  ;;  %2387 = vadd.xlane.f32.xlu1 %v2386_v17 }
 0x140   :  { %v4533_v30 = vadd.f32 %v4486_v32, %v2028_v60  ;;  %3825 = vmatmul.msk.bf16.gmra.mxu0 %vm97_vm1, %v3949_v53  ;;  %v4545_v60 = vpop.f32.mrf.mxu2  ;;  %v4548_v12 = vpop.f32.mrf.mxu3 }
 0x141   :  { %3417 = vmatmul.msk.bf16.gmra.mxu2 %vm97_vm1, %v3915_v15  ;;  %3625 = vmatmul.msk.bf16.gmra.mxu3 %vm97_vm1, %v3873_v16  ;;  %v3951_v16 = vld [vmem:[#allocation2 + $0xd0] sm:$0xff] }
 0x142   :  { %6379 = vst [vmem:[#allocation14_spill] sm:$0xff] %v4533_v30  ;;  %v6239_v63 = vmax.f32 %v4533_v30, 0.0  ;;  %3600 = vmatmul.msk.bf16.gmra.mxu1 %vm97_vm1, %v3848_v23  ;;  %v3849_v30 = vld [vmem:[#allocation2 + $0x10] sm:$0xff] }
 0x144   :  { %v2269_v45 = vmul.f32 %v4499_v13, %v6239_v63 }
 0x145   :  { %v1860_v43 = vpop.f32.mrf.mxu0 }
 0x146   :  { %v2029_v53 = vadd.f32 %v1860_v43, %v1235_v44  ;;  %v2389_v17 = vsel %vm97_vm1, %v2269_v45, 0.0  ;;  %v3950_v44 = vld [vmem:[#allocation2 + $0xc8] sm:$0xff] }
 0x147   :  { %v4550_v23 = vpop.f32.mrf.mxu1  ;;  %2390 = vadd.xlane.f32.xlu2 %v2389_v17 }
 0x148   :  { %v4553_v5 = vadd.f32 %v4486_v32, %v2029_v53  ;;  %v728_v45 = vpop.f32.mrf.mxu2  ;;  %v1269_v17 = vpop.f32.mrf.mxu3 }
 0x149   :  { %v4564_v53 = vadd.f32 %v1269_v17, %v728_v45 }
 0x14a   :  { %6380 = vst [vmem:[#allocation15_spill] sm:$0xff] %v4553_v5  ;;  %v6243_v9 = vmax.f32 %v4553_v5, 0.0  ;;  %v3850_v5 = vld [vmem:[#allocation2 + $0x18] sm:$0xff] }
 0x14c   :  { %v2270_v6 = vmul.f32 %v4518_v1, %v6243_v9 }
 0x14d   :  { %v1863_v43 = vpop.f32.mrf.mxu0 }
 0x14e   :  { %v2030_v63 = vadd.f32 %v1863_v43, %v1238_v11  ;;  %v2392_v40 = vsel %vm97_vm1, %v2270_v6, 0.0 }
 0x14f   :  { %v4562_v3 = vpop.f32.mrf.mxu1  ;;  %2393 = vadd.xlane.f32.xlu0 %v2392_v40  ;;  %v1240_v40 = vadd.f32 %v4416_v21, %v4414_v19  ;;  %v1243_v21 = vadd.f32 %v4426_v26, %v4424_v25  ;;  %v3916_v25 = vld [vmem:[#allocation2 + $0x110] sm:$0xff]  ;;  %v3874_v26 = vld [vmem:[#allocation2 + $0x108] sm:$0xff] }
 0x150   :  { %v4567_v10 = vadd.f32 %v4486_v32, %v2030_v63  ;;  %3826 = vmatmul.msk.bf16.gmra.mxu0 %vm97_vm1, %v3950_v44  ;;  %v4579_v6 = vpop.f32.mrf.mxu2  ;;  %v4582_v45 = vpop.f32.mrf.mxu3 }
 0x151   :  { %3418 = vmatmul.msk.bf16.gmra.mxu2 %vm97_vm1, %v3916_v25  ;;  %3626 = vmatmul.msk.bf16.gmra.mxu3 %vm97_vm1, %v3874_v26 }
 0x152   :  { %6381 = vst [vmem:[#allocation16_spill] sm:$0xff] %v4567_v10  ;;  %v6244_v9 = vmax.f32 %v4567_v10, 0.0  ;;  %3601 = vmatmul.msk.bf16.gmra.mxu1 %vm97_vm1, %v3849_v30 }
 0x154   :  { %v2271_v63 = vmul.f32 %v4499_v13, %v6244_v9 }
 0x155   :  { %v1865_v11 = vpop.f32.mrf.mxu0 }
 0x156   :  { %v2031_v44 = vadd.f32 %v1865_v11, %v1240_v40  ;;  %v2395_v43 = vsel %vm97_vm1, %v2271_v63, 0.0 }
 0x157   :  { %v4584_v30 = vpop.f32.mrf.mxu1  ;;  %2396 = vadd.xlane.f32.xlu1 %v2395_v43 }
 0x158   :  { %v4587_v17 = vadd.f32 %v4486_v32, %v2031_v44  ;;  %v733_v63 = vpop.f32.mrf.mxu2  ;;  %v1274_v43 = vpop.f32.mrf.mxu3 }
 0x159   :  { %v4598_v44 = vadd.f32 %v1274_v43, %v733_v63 }
 0x15a   :  { %6382 = vst [vmem:[#allocation17_spill] sm:$0xff] %v4587_v17  ;;  %v6247_v19 = vmax.f32 %v4587_v17, 0.0 }
 0x15c   :  { %v2272_v15 = vmul.f32 %v4518_v1, %v6247_v19 }
 0x15d   :  { %v1868_v40 = vpop.f32.mrf.mxu0 }
 0x15e   :  { %v2032_v11 = vadd.f32 %v1868_v40, %v1243_v21  ;;  %v2398_v9 = vsel %vm97_vm1, %v2272_v15, 0.0 }
 0x15f   :  { %v4596_v10 = vpop.f32.mrf.mxu1  ;;  %2399 = vadd.xlane.f32.xlu2 %v2398_v9  ;;  %v1245_v9 = vadd.f32 %v4432_v31, %v4430_v29  ;;  %v1248_v31 = vadd.f32 %v4442_v36, %v4440_v35  ;;  %v3917_v35 = vld [vmem:[#allocation2 + $0x118] sm:$0xff]  ;;  %v3875_v36 = vld [vmem:[#allocation2 + $0x110] sm:$0xff] }
 0x160   :  { %v4601_v55 = vadd.f32 %v4486_v32, %v2032_v11  ;;  %3827 = vmatmul.msk.bf16.gmra.mxu0 %vm97_vm1, %v3951_v16  ;;  %v736_v40 = vpop.f32.mrf.mxu2  ;;  %v1277_v11 = vpop.f32.mrf.mxu3 }
 0x161   :  { %3419 = vmatmul.msk.bf16.gmra.mxu2 %vm97_vm1, %v3917_v35  ;;  %3627 = vmatmul.msk.bf16.gmra.mxu3 %vm97_vm1, %v3875_v36  ;;  %v3953_v36 = vld [vmem:[#allocation2 + $0xe0] sm:$0xff] }
 0x162   :  { %6383 = vst [vmem:[#allocation18_spill] sm:$0xff] %v4601_v55  ;;  %v6248_v19 = vmax.f32 %v4601_v55, 0.0  ;;  %3602 = vmatmul.msk.bf16.gmra.mxu1 %vm97_vm1, %v3850_v5  ;;  %v4616_v5 = vadd.f32 %v1277_v11, %v736_v40  ;;  %v3851_v40 = vld [vmem:[#allocation2 + $0x20] sm:$0xff] }
 0x164   :  { %v2273_v21 = vmul.f32 %v4499_v13, %v6248_v19 }
 0x165   :  { %v1870_v15 = vpop.f32.mrf.mxu0 }
 0x166   :  { %v2033_v16 = vadd.f32 %v1870_v15, %v1245_v9  ;;  %v2401_v63 = vsel %vm97_vm1, %v2273_v21, 0.0  ;;  %v3952_v9 = vld [vmem:[#allocation2 + $0xd8] sm:$0xff] }
 0x167   :  { %v4614_v43 = vpop.f32.mrf.mxu1  ;;  %2402 = vadd.xlane.f32.xlu0 %v2401_v63 }
 0x168   :  { %v4619_v25 = vadd.f32 %v4486_v32, %v2033_v16  ;;  %v738_v15 = vpop.f32.mrf.mxu2  ;;  %v1279_v11 = vpop.f32.mrf.mxu3 }
 0x169   :  { %v4630_v16 = vadd.f32 %v1279_v11, %v738_v15 }
 0x16a   :  { %6384 = vst [vmem:[#allocation19_spill] sm:$0xff] %v4619_v25  ;;  %v6251_v29 = vmax.f32 %v4619_v25, 0.0  ;;  %v3852_v25 = vld [vmem:[#allocation2 + $0x28] sm:$0xff] }
 0x16c   :  { %v2274_v26 = vmul.f32 %v4518_v1, %v6251_v29 }
 0x16d   :  { %v1873_v21 = vpop.f32.mrf.mxu0 }
 0x16e   :  { %v2034_v19 = vadd.f32 %v1873_v21, %v1248_v31  ;;  %v2404_v63 = vsel %vm97_vm1, %v2274_v26, 0.0  ;;  %v1250_v31 = vadd.f32 %v4448_v41, %v4446_v39  ;;  %v1253_v41 = vadd.f32 %v4458_v50, %v4456_v49  ;;  %v3918_v49 = vld [vmem:[#allocation2 + $0x120] sm:$0xff]  ;;  %v3876_v50 = vld [vmem:[#allocation2 + $0x118] sm:$0xff] }
 0x16f   :  { %v4628_v17 = vpop.f32.mrf.mxu1  ;;  %2405 = vadd.xlane.f32.xlu1 %v2404_v63 }
 0x170   :  { %v4633_v55 = vadd.f32 %v4486_v32, %v2034_v19  ;;  %3828 = vmatmul.msk.bf16.gmra.mxu0 %vm97_vm1, %v3952_v9  ;;  %v4645_v21 = vpop.f32.mrf.mxu2  ;;  %v4648_v63 = vpop.f32.mrf.mxu3 }
 0x171   :  { %3420 = vmatmul.msk.bf16.gmra.mxu2 %vm97_vm1, %v3918_v49  ;;  %3628 = vmatmul.msk.bf16.gmra.mxu3 %vm97_vm1, %v3876_v50  ;;  %v3954_v50 = vld [vmem:[#allocation2 + $0xe8] sm:$0xff] }
 0x172   :  { %6385 = vst [vmem:[#allocation20_spill] sm:$0xff] %v4633_v55  ;;  %v6252_v29 = vmax.f32 %v4633_v55, 0.0  ;;  %3603 = vmatmul.msk.bf16.gmra.mxu1 %vm97_vm1, %v3851_v40 }
 0x174   :  { %v2275_v19 = vmul.f32 %v4499_v13, %v6252_v29 }
 0x175   :  { %v1875_v26 = vpop.f32.mrf.mxu0 }
 0x176   :  { %v2035_v9 = vadd.f32 %v1875_v26, %v1250_v31  ;;  %v2407_v15 = vsel %vm97_vm1, %v2275_v19, 0.0 }
 0x177   :  { %v4650_v40 = vpop.f32.mrf.mxu1  ;;  %2408 = vadd.xlane.f32.xlu2 %v2407_v15 }
 0x178   :  { %v4653_v11 = vadd.f32 %v4486_v32, %v2035_v9  ;;  %v743_v19 = vpop.f32.mrf.mxu2  ;;  %v1284_v15 = vpop.f32.mrf.mxu3 }
 0x179   :  { %v4664_v9 = vadd.f32 %v1284_v15, %v743_v19 }
 0x17a   :  { %6386 = vst [vmem:[#allocation21_spill] sm:$0xff] %v4653_v11  ;;  %v6255_v39 = vmax.f32 %v4653_v11, 0.0  ;;  %v3877_v11 = vld [vmem:[#allocation2 + $0x120] sm:$0xff] }
 0x17c   :  { %v2276_v35 = vmul.f32 %v4518_v1, %v6255_v39 }
 0x17d   :  { %v1878_v31 = vpop.f32.mrf.mxu0 }
 0x17e   :  { %v2036_v26 = vadd.f32 %v1878_v31, %v1253_v41  ;;  %v2410_v29 = vsel %vm97_vm1, %v2276_v35, 0.0 }
 0x17f   :  { %v4662_v55 = vpop.f32.mrf.mxu1  ;;  %2411 = vadd.xlane.f32.xlu0 %v2410_v29  ;;  %v1255_v29 = vadd.f32 %v4464_v61, %v4462_v56 }
 0x180   :  { %v4667_v47 = vadd.f32 %v4486_v32, %v2036_v26  ;;  %3829 = vmatmul.msk.bf16.gmra.mxu0 %vm97_vm1, %v3953_v36  ;;  %v746_v31 = vpop.f32.mrf.mxu2  ;;  %v1287_v26 = vpop.f32.mrf.mxu3 }
 0x181   :  { %3629 = vmatmul.msk.bf16.gmra.mxu3 %vm97_vm1, %v3877_v11 }
 0x182   :  { %6387 = vst [vmem:[#allocation22_spill] sm:$0xff] %v4667_v47  ;;  %v6256_v39 = vmax.f32 %v4667_v47, 0.0  ;;  %3604 = vmatmul.msk.bf16.gmra.mxu1 %vm97_vm1, %v3852_v25  ;;  %v4682_v25 = vadd.f32 %v1287_v26, %v746_v31  ;;  %v3854_v47 = vld [vmem:[#allocation2 + $0x38] sm:$0xff] }
 0x184   :  { %v2277_v41 = vmul.f32 %v4499_v13, %v6256_v39 }
 0x185   :  { %v1880_v35 = vpop.f32.mrf.mxu0 }
 0x186   :  { %v2037_v36 = vadd.f32 %v1880_v35, %v1255_v29  ;;  %v2413_v19 = vsel %vm97_vm1, %v2277_v41, 0.0 }
 0x187   :  { %v4680_v15 = vpop.f32.mrf.mxu1  ;;  %2414 = vadd.xlane.f32.xlu1 %v2413_v19  ;;  %v3853_v19 = vld [vmem:[#allocation2 + $0x30] sm:$0xff] }
 0x188   :  { %v4685_v49 = vadd.f32 %v4486_v32, %v2037_v36  ;;  %v748_v29 = vpop.f32.mrf.mxu2  ;;  %v1289_v31 = vpop.f32.mrf.mxu3 }
 0x189   :  { %v4697_v36 = vadd.f32 %v1289_v31, %v748_v29 }
 0x18a   :  { %6388 = vst [vmem:[#allocation23_spill] sm:$0xff] %v4685_v49  ;;  %v6259_v56 = vmax.f32 %v4685_v49, 0.0  ;;  %v3919_v49 = vld [vmem:[#allocation2 + $0x128] sm:$0xff] }
 0x18b   :  { %3421 = vmatmul.msk.bf16.gmra.mxu2 %vm97_vm1, %v3919_v49 }
 0x18c   :  { %v2278_v61 = vmul.f32 %v4518_v1, %v6259_v56 }
 0x18d   :  { %v1883_v39 = vpop.f32.mrf.mxu0 }
 0x18e   :  { %v4692_v41 = vadd.f32 %v1883_v39, %v4482_v22  ;;  %v2416_v35 = vsel %vm97_vm1, %v2278_v61, 0.0 }
 0x18f   :  { %v4695_v26 = vpop.f32.mrf.mxu1  ;;  %2417 = vadd.xlane.f32.xlu2 %v2416_v35  ;;  %v3955_v35 = vld [vmem:[#allocation2 + $0x100] sm:$0xff] }
 0x190   :  { %6389 = vst [vmem:[#allocation24_spill] sm:$0xff] %v4692_v41  ;;  %3830 = vmatmul.msk.bf16.gmra.mxu0 %vm97_vm1, %v3954_v50  ;;  %v4703_v39 = vpop.f32.mrf.mxu2  ;;  %v4708_v56 = vpop.f32.mrf.mxu3  ;;  %v1263_v50 = vadd.f32 %v4510_v33, %v4507_v51  ;;  %v1265_v51 = vadd.f32 %v4528_v27, %v4525_v59  ;;  %v1268_v27 = vadd.f32 %v4548_v12, %v4545_v60  ;;  %v3921_v60 = vld [vmem:[#allocation2 + $0x148] sm:$0xff] }
 0x192   :  { %3605 = vmatmul.msk.bf16.gmra.mxu1 %vm97_vm1, %v3853_v19 }
 0x195   :  { %v1885_v22 = vpop.f32.mrf.mxu0 }
 0x196   :  { %v4706_v61 = vadd.f32 %v1885_v22, %v4490_v2  ;;  %v3920_v22 = vld [vmem:[#allocation2 + $0x130] sm:$0xff] }
 0x197   :  { %v4710_v29 = vpop.f32.mrf.mxu1 }
 0x198   :  { %6390 = vst [vmem:[#allocation25_spill] sm:$0xff] %v4706_v61  ;;  %v4714_v19 = vpop.f32.mrf.mxu2  ;;  %v4716_v11 = vpop.f32.mrf.mxu3  ;;  %v3878_v61 = vld [vmem:[#allocation2 + $0x128] sm:$0xff] }
 0x199   :  { %6391 = vst [vmem:[#allocation26_spill] sm:$0xff] %v4710_v29  ;;  %3630 = vmatmul.msk.bf16.gmra.mxu3 %vm97_vm1, %v3878_v61 }
 0x19b   :  { %3422 = vmatmul.msk.bf16.gmra.mxu2 %vm97_vm1, %v3920_v22 }
 0x19d   :  { %v1888_v31 = vpop.f32.mrf.mxu0 }
 0x19e   :  { %v2040_v49 = vadd.f32 %v1888_v31, %v1263_v50 }
 0x19f   :  { %v4718_v41 = vpop.f32.mrf.mxu1 }
 0x1a0   :  { %6392 = vst [vmem:[#allocation27_spill] sm:$0xff] %v4718_v41  ;;  %v4721_v2 = vadd.f32 %v4486_v32, %v2040_v49  ;;  %3831 = vmatmul.msk.bf16.gmra.mxu0 %vm97_vm1, %v3955_v35  ;;  %v4733_v31 = vpop.f32.mrf.mxu2  ;;  %v4736_v41 = vpop.f32.mrf.mxu3 }
 0x1a2   :  { %6393 = vst [vmem:[#allocation28_spill] sm:$0xff] %v4721_v2  ;;  %v6261_v29 = vmax.f32 %v4721_v2, 0.0  ;;  %3606 = vmatmul.msk.bf16.gmra.mxu1 %vm97_vm1, %v3854_v47 }
 0x1a4   :  { %v2281_v33 = vmul.f32 %v4499_v13, %v6261_v29 }
 0x1a5   :  { %v1890_v50 = vpop.f32.mrf.mxu0 }
 0x1a6   :  { %v2041_v35 = vadd.f32 %v1890_v50, %v1265_v51  ;;  %v2425_v49 = vsel %vm97_vm1, %v2281_v33, 0.0  ;;  %v3956_v51 = vld [vmem:[#allocation2 + $0x108] sm:$0xff] }
 0x1a7   :  { %v4738_v47 = vpop.f32.mrf.mxu1  ;;  %2426 = vadd.xlane.f32.xlu0 %v2425_v49  ;;  %v3855_v49 = vld [vmem:[#allocation2 + $0x50] sm:$0xff] }
 0x1a8   :  { %6394 = vst [vmem:[#allocation29_spill] sm:$0xff] %v4738_v47  ;;  %v4741_v61 = vadd.f32 %v4486_v32, %v2041_v35  ;;  %v4749_v33 = vpop.f32.mrf.mxu2  ;;  %v4752_v47 = vpop.f32.mrf.mxu3 }
 0x1aa   :  { %6395 = vst [vmem:[#allocation30_spill] sm:$0xff] %v4741_v61  ;;  %v6263_v59 = vmax.f32 %v4741_v61, 0.0 }
 0x1ab   :  { %3423 = vmatmul.msk.bf16.gmra.mxu2 %vm97_vm1, %v3921_v60 }
 0x1ac   :  { %v2282_v22 = vmul.f32 %v4518_v1, %v6263_v59  ;;  %v3879_v59 = vld [vmem:[#allocation2 + $0x140] sm:$0xff] }
 0x1ad   :  { %v1893_v50 = vpop.f32.mrf.mxu0  ;;  %3631 = vmatmul.msk.bf16.gmra.mxu3 %vm97_vm1, %v3879_v59 }
 0x1ae   :  { %v2042_v29 = vadd.f32 %v1893_v50, %v1268_v27  ;;  %v2428_v2 = vsel %vm97_vm1, %v2282_v22, 0.0 }
 0x1af   :  { %v1182_v35 = vpop.f32.mrf.mxu1  ;;  %2429 = vadd.xlane.f32.xlu1 %v2428_v2 }
 0x1b0   :  { %v4755_v38 = vadd.f32 %v4486_v32, %v2042_v29  ;;  %v1183_v12 = vadd.f32 %v1182_v35, %v4466_v0  ;;  %3832 = vmatmul.msk.bf16.gmra.mxu0 %vm97_vm1, %v3956_v51  ;;  %v761_v22 = vpop.f32.mrf.mxu2 }
 0x1b2   :  { %6396 = vst [vmem:[#allocation31_spill] sm:$0xff] %v4755_v38  ;;  %v6265_v61 = vmax.f32 %v4755_v38, 0.0  ;;  %v2008_v27 = vadd.f32 %v4350_v42, %v1183_v12  ;;  %3607 = vmatmul.msk.bf16.gmra.mxu1 %vm97_vm1, %v3855_v49  ;;  %v1302_v49 = vpop.f32.mrf.mxu3  ;;  %v3961_v38 = vld [vmem:[#allocation2 + $0x130] sm:$0xff] }
 0x1b3   :  { %v4773_v12 = vadd.f32 %v1302_v49, %v761_v22  ;;  %v1273_v22 = vadd.f32 %v4582_v45, %v4579_v6  ;;  %v3922_v45 = vld [vmem:[#allocation2 + $0x150] sm:$0xff] }
 0x1b4   :  { %v4765_v2 = vadd.f32 %v4486_v32, %v2008_v27  ;;  %v2283_v0 = vmul.f32 %v4499_v13, %v6265_v61 }
 0x1b5   :  { %v1895_v29 = vpop.f32.mrf.mxu0 }
 0x1b6   :  { %v2043_v51 = vadd.f32 %v1895_v29, %v4564_v53  ;;  %v2431_v50 = vsel %vm97_vm1, %v2283_v0, 0.0  ;;  %v6267_v42 = vmax.f32 %v4765_v2, 0.0 }
 0x1b7   :  { %v1184_v35 = vpop.f32.mrf.mxu1  ;;  %2432 = vadd.xlane.f32.xlu2 %v2431_v50  ;;  %v3957_v50 = vld [vmem:[#allocation2 + $0x110] sm:$0xff] }
 0x1b8   :  { %v4776_v59 = vadd.f32 %v4486_v32, %v2043_v51  ;;  %v1185_v60 = vadd.f32 %v1184_v35, %v4480_v20  ;;  %v2249_v27 = vmul.f32 %v4499_v13, %v6267_v42  ;;  %v763_v51 = vpop.f32.mrf.mxu2 }
 0x1ba   :  { %v6269_v53 = vmax.f32 %v4776_v59, 0.0  ;;  %v2009_v0 = vadd.f32 %v4357_v46, %v1185_v60  ;;  %v2329_v29 = vsel %vm97_vm1, %v2249_v27, 0.0  ;;  %v1304_v42 = vpop.f32.mrf.mxu3 }
 0x1bb   :  { %2330 = vadd.xlane.f32.xlu0 %v2329_v29  ;;  %v4793_v60 = vadd.f32 %v1304_v42, %v763_v51  ;;  %v3880_v29 = vld [vmem:[#allocation2 + $0x148] sm:$0xff]  ;;  %3424 = vmatmul.msk.bf16.gmra.mxu2 %vm97_vm1, %v3922_v45 }
 0x1bc   :  { %v2284_v20 = vmul.f32 %v4518_v1, %v6269_v53  ;;  %v4791_v35 = vadd.f32 %v4486_v32, %v2009_v0 }
 0x1bd   :  { %v1898_v49 = vpop.f32.mrf.mxu0  ;;  %3632 = vmatmul.msk.bf16.gmra.mxu3 %vm97_vm1, %v3880_v29 }
 0x1be   :  { %v2044_v61 = vadd.f32 %v1898_v49, %v1273_v22  ;;  %6397 = vst [vmem:[#allocation32_spill] sm:$0xff] %v4791_v35  ;;  %v2434_v0 = vsel %vm97_vm1, %v2284_v20, 0.0  ;;  %v6268_v42 = vmax.f32 %v4791_v35, 0.0 }
 0x1bf   :  { %v1187_v46 = vpop.f32.mrf.mxu1 }
 0x1c0   :  { %v4796_v27 = vadd.f32 %v4486_v32, %v2044_v61  ;;  %v1188_v6 = vadd.f32 %v1187_v46, %v4488_v57  ;;  %3833 = vmatmul.msk.bf16.gmra.mxu0 %vm97_vm1, %v3957_v50  ;;  %v2250_v46 = vmul.f32 %v4518_v1, %v6268_v42 }
 0x1c2   :  { %v6271_v22 = vmax.f32 %v4796_v27, 0.0  ;;  %v2010_v49 = vadd.f32 %v4360_v48, %v1188_v6  ;;  %3837 = vmatmul.msk.bf16.vlgmr.msrb.gmra.mxu1 %vm97_vm1, %v3961_v38  ;;  %v766_v48 = vpop.f32.mrf.mxu2  ;;  %v1307_v6 = vpop.f32.mrf.mxu3  ;;  %v2332_v53 = vsel %vm97_vm1, %v2250_v46, 0.0 }
 0x1c3   :  { %2435 = vadd.xlane.f32.xlu0 %v2434_v0  ;;  %v4819_v29 = vadd.f32 %v1307_v6, %v766_v48  ;;  %v3958_v48 = vld [vmem:[#allocation2 + $0x118] sm:$0xff] }
 0x1c4   :  { %v4808_v57 = vadd.f32 %v4486_v32, %v2010_v49  ;;  %v2285_v61 = vmul.f32 %v4499_v13, %v6271_v22 }
 0x1c5   :  { %v1900_v50 = vpop.f32.mrf.mxu0 }
 0x1c6   :  { %6398 = vst [vmem:[#allocation33_spill] sm:$0xff] %v4808_v57  ;;  %v2045_v38 = vadd.f32 %v1900_v50, %v4598_v44  ;;  %v2437_v51 = vsel %vm97_vm1, %v2285_v61, 0.0  ;;  %v6270_v20 = vmax.f32 %v4808_v57, 0.0 }
 0x1c7   :  { %v1189_v45 = vpop.f32.mrf.mxu1  ;;  %2438 = vadd.xlane.f32.xlu2 %v2437_v51 }
 0x1c8   :  { %v4822_v49 = vadd.f32 %v4486_v32, %v2045_v38  ;;  %v1190_v0 = vadd.f32 %v1189_v45, %v4512_v37  ;;  %v2251_v44 = vmul.f32 %v4499_v13, %v6270_v20  ;;  %v3962_v45 = vld [vmem:[#allocation2 + $0x138] sm:$0xff] }
 0x1ca   :  { %v6272_v61 = vmax.f32 %v4822_v49, 0.0  ;;  %v2011_v50 = vadd.f32 %v4366_v52, %v1190_v0  ;;  %v2335_v42 = vsel %vm97_vm1, %v2251_v44, 0.0  ;;  %v768_v37 = vpop.f32.mrf.mxu2  ;;  %v1309_v0 = vpop.f32.mrf.mxu3 }
 0x1cb   :  { %2336 = vadd.xlane.f32.xlu1 %v2335_v42  ;;  %2333 = vadd.xlane.f32.xlu0 %v2332_v53  ;;  %v4840_v46 = vadd.f32 %v1309_v0, %v768_v37 }
 0x1cc   :  { %v4833_v38 = vadd.f32 %v4486_v32, %v2011_v50  ;;  %v2286_v52 = vmul.f32 %v4518_v1, %v6272_v61  ;;  %v3923_v50 = vld [vmem:[#allocation2 + $0x158] sm:$0xff] }
 0x1cd   :  { %v1903_v51 = vpop.f32.mrf.mxu0  ;;  %3425 = vmatmul.msk.bf16.gmra.mxu2 %vm97_vm1, %v3923_v50 }
 0x1ce   :  { %6399 = vst [vmem:[#allocation34_spill] sm:$0xff] %v4833_v38  ;;  %v2046_v6 = vadd.f32 %v1903_v51, %v4616_v5  ;;  %v6273_v20 = vmax.f32 %v4833_v38, 0.0  ;;  %v3881_v51 = vld [vmem:[#allocation2 + $0x150] sm:$0xff] }
 0x1cf   :  { %v1192_v44 = vpop.f32.mrf.mxu1  ;;  %3633 = vmatmul.msk.bf16.gmra.mxu3 %vm97_vm1, %v3881_v51 }
 0x1d0   :  { %v4843_v53 = vadd.f32 %v4486_v32, %v2046_v6  ;;  %v1193_v42 = vadd.f32 %v1192_v44, %v4530_v7  ;;  %3834 = vmatmul.msk.bf16.gmra.mxu0 %vm97_vm1, %v3958_v48  ;;  %v2252_v5 = vmul.f32 %v4518_v1, %v6273_v20  ;;  %v2440_v6 = vsel %vm97_vm1, %v2286_v52, 0.0  ;;  %v3963_v20 = vld [vmem:[#allocation2 + $0x150] sm:$0xff] }
 0x1d2   :  { %v6280_v22 = vmax.f32 %v4843_v53, 0.0  ;;  %v2012_v61 = vadd.f32 %v4368_v54, %v1193_v42  ;;  %3838 = vmatmul.msk.bf16.gmra.mxu1 %vm97_vm1, %v3962_v45  ;;  %v2338_v37 = vsel %vm97_vm1, %v2252_v5, 0.0  ;;  %v771_v0 = vpop.f32.mrf.mxu2  ;;  %v1312_v52 = vpop.f32.mrf.mxu3 }
 0x1d3   :  { %2339 = vadd.xlane.f32.xlu1 %v2338_v37  ;;  %2441 = vadd.xlane.f32.xlu0 %v2440_v6  ;;  %v4865_v5 = vadd.f32 %v1312_v52, %v771_v0  ;;  %v1283_v0 = vadd.f32 %v4648_v63, %v4645_v21  ;;  %v3924_v63 = vld [vmem:[#allocation2 + $0x160] sm:$0xff] }
 0x1d4   :  { %v4857_v7 = vadd.f32 %v4486_v32, %v2012_v61  ;;  %v2287_v45 = vmul.f32 %v4499_v13, %v6280_v22 }
 0x1d5   :  { %v1905_v48 = vpop.f32.mrf.mxu0 }
 0x1d6   :  { %6400 = vst [vmem:[#allocation35_spill] sm:$0xff] %v4857_v7  ;;  %v2047_v44 = vadd.f32 %v1905_v48, %v4630_v16  ;;  %v6274_v54 = vmax.f32 %v4857_v7, 0.0  ;;  %v2443_v48 = vsel %vm97_vm1, %v2287_v45, 0.0 }
 0x1d7   :  { %v1194_v42 = vpop.f32.mrf.mxu1 }
 0x1d8   :  { %v4868_v50 = vadd.f32 %v4486_v32, %v2047_v44  ;;  %v1195_v61 = vadd.f32 %v1194_v42, %v4550_v23  ;;  %v2253_v51 = vmul.f32 %v4499_v13, %v6274_v54  ;;  %v3959_v44 = vld [vmem:[#allocation2 + $0x120] sm:$0xff] }
 0x1da   :  { %v6276_v16 = vmax.f32 %v4868_v50, 0.0  ;;  %v2013_v37 = vadd.f32 %v4374_v58, %v1195_v61  ;;  %v2341_v6 = vsel %vm97_vm1, %v2253_v51, 0.0  ;;  %v4880_v23 = vpop.f32.mrf.mxu2  ;;  %v4888_v61 = vpop.f32.mrf.mxu3 }
 0x1db   :  { %2342 = vadd.xlane.f32.xlu2 %v2341_v6  ;;  %2444 = vadd.xlane.f32.xlu1 %v2443_v48  ;;  %v3882_v6 = vld [vmem:[#allocation2 + $0x158] sm:$0xff] }
 0x1dc   :  { %v2288_v54 = vmul.f32 %v4518_v1, %v6276_v16  ;;  %v4886_v58 = vadd.f32 %v4486_v32, %v2013_v37 }
 0x1dd   :  { %v1908_v52 = vpop.f32.mrf.mxu0  ;;  %3426 = vmatmul.msk.bf16.gmra.mxu2 %vm97_vm1, %v3924_v63 }
 0x1de   :  { %v2048_v42 = vadd.f32 %v1908_v52, %v1283_v0  ;;  %6401 = vst [vmem:[#allocation36_spill] sm:$0xff] %v4886_v58  ;;  %v2446_v37 = vsel %vm97_vm1, %v2288_v54, 0.0  ;;  %v6275_v52 = vmax.f32 %v4886_v58, 0.0 }
 0x1df   :  { %v1197_v45 = vpop.f32.mrf.mxu1  ;;  %3634 = vmatmul.msk.bf16.gmra.mxu3 %vm97_vm1, %v3882_v6 }
 0x1e0   :  { %v4891_v51 = vadd.f32 %v4486_v32, %v2048_v42  ;;  %v1198_v21 = vadd.f32 %v1197_v45, %v4562_v3  ;;  %3835 = vmatmul.msk.bf16.gmra.mxu0 %vm97_vm1, %v3959_v44  ;;  %v2254_v45 = vmul.f32 %v4518_v1, %v6275_v52 }
 0x1e2   :  { %v6277_v48 = vmax.f32 %v4891_v51, 0.0  ;;  %v2014_v0 = vadd.f32 %v4380_v62, %v1198_v21  ;;  %3839 = vmatmul.msk.bf16.gmra.mxu1 %vm97_vm1, %v3963_v20  ;;  %v4908_v62 = vpop.f32.mrf.mxu2  ;;  %v4916_v63 = vpop.f32.mrf.mxu3  ;;  %v2344_v52 = vsel %vm97_vm1, %v2254_v45, 0.0 }
 0x1e3   :  { %2447 = vadd.xlane.f32.xlu2 %v2446_v37 }
 0x1e4   :  { %v4902_v42 = vadd.f32 %v4486_v32, %v2014_v0  ;;  %v2289_v3 = vmul.f32 %v4499_v13, %v6277_v48 }
 0x1e5   :  { %v1910_v44 = vpop.f32.mrf.mxu0 }
 0x1e6   :  { %6402 = vst [vmem:[#allocation37_spill] sm:$0xff] %v4902_v42  ;;  %v2049_v20 = vadd.f32 %v1910_v44, %v4664_v9  ;;  %v2449_v54 = vsel %vm97_vm1, %v2289_v3, 0.0  ;;  %v6278_v21 = vmax.f32 %v4902_v42, 0.0 }
 0x1e7   :  { %v1199_v0 = vpop.f32.mrf.mxu1  ;;  %2450 = vadd.xlane.f32.xlu1 %v2449_v54  ;;  %v3960_v54 = vld [vmem:[#allocation2 + $0x128] sm:$0xff] }
 0x1e8   :  { %v4919_v37 = vadd.f32 %v4486_v32, %v2049_v20  ;;  %v1200_v6 = vadd.f32 %v1199_v0, %v4584_v30  ;;  %v2255_v9 = vmul.f32 %v4499_v13, %v6278_v21  ;;  %v3964_v21 = vld [vmem:[#allocation2 + $0x158] sm:$0xff] }
 0x1ea   :  { %6403 = vst [vmem:[#allocation38_spill] sm:$0xff] %v4919_v37  ;;  %v6279_v3 = vmax.f32 %v4919_v37, 0.0  ;;  %v2015_v44 = vadd.f32 %v4390_v4, %v1200_v6  ;;  %v2347_v16 = vsel %vm97_vm1, %v2255_v9, 0.0  ;;  %v4932_v30 = vpop.f32.mrf.mxu2  ;;  %v4939_v6 = vpop.f32.mrf.mxu3 }
 0x1eb   :  { %2345 = vadd.xlane.f32.xlu2 %v2344_v52  ;;  %2348 = vadd.xlane.f32.xlu0 %v2347_v16 }
 0x1ec   :  { %v4930_v20 = vadd.f32 %v4486_v32, %v2015_v44  ;;  %v2290_v4 = vmul.f32 %v4518_v1, %v6279_v3  ;;  %v3883_v44 = vld [vmem:[#allocation2 + $0x160] sm:$0xff] }
 0x1ed   :  { %v1913_v48 = vpop.f32.mrf.mxu0 }
 0x1ee   :  { %6404 = vst [vmem:[#allocation39_spill] sm:$0xff] %v4930_v20  ;;  %v2050_v0 = vadd.f32 %v1913_v48, %v4682_v25  ;;  %v6282_v45 = vmax.f32 %v4930_v20, 0.0  ;;  %v3925_v48 = vld [vmem:[#allocation2 + $0x168] sm:$0xff]  ;;  %v2452_v58 = vsel %vm97_vm1, %v2290_v4, 0.0 }
 0x1ef   :  { %v1202_v52 = vpop.f32.mrf.mxu1  ;;  %3427 = vmatmul.msk.bf16.gmra.mxu2 %vm97_vm1, %v3925_v48  ;;  %3635 = vmatmul.msk.bf16.gmra.mxu3 %vm97_vm1, %v3883_v44 }
 0x1f0   :  { %v4942_v16 = vadd.f32 %v4486_v32, %v2050_v0  ;;  %v1203_v9 = vadd.f32 %v1202_v52, %v4596_v10  ;;  %3836 = vmatmul.msk.bf16.gmra.mxu0 %vm97_vm1, %v3960_v54  ;;  %v2256_v25 = vmul.f32 %v4518_v1, %v6282_v45 }
 0x1f2   :  { %v6284_v3 = vmax.f32 %v4942_v16, 0.0  ;;  %v2016_v22 = vadd.f32 %v4396_v8, %v1203_v9  ;;  %3840 = vmatmul.msk.bf16.gmra.mxu1 %vm97_vm1, %v3964_v21  ;;  %v2350_v0 = vsel %vm97_vm1, %v2256_v25, 0.0  ;;  %v4959_v52 = vpop.f32.mrf.mxu2  ;;  %v4966_v9 = vpop.f32.mrf.mxu3 }
 0x1f3   :  { %2453 = vadd.xlane.f32.xlu2 %v2452_v58  ;;  %2351 = vadd.xlane.f32.xlu1 %v2350_v0 }
 0x1f4   :  { %v4956_v10 = vadd.f32 %v4486_v32, %v2016_v22  ;;  %v2291_v4 = vmul.f32 %v4499_v13, %v6284_v3  ;;  %v3965_v3 = vld [vmem:[#allocation2 + $0x160] sm:$0xff] }
 0x1f5   :  { %v1915_v54 = vpop.f32.mrf.mxu0 }
 0x1f6   :  { %6405 = vst [vmem:[#allocation40_spill] sm:$0xff] %v4956_v10  ;;  %v2051_v8 = vadd.f32 %v1915_v54, %v4697_v36  ;;  %v6283_v21 = vmax.f32 %v4956_v10, 0.0  ;;  %v2455_v54 = vsel %vm97_vm1, %v2291_v4, 0.0 }
 0x1f7   :  { %v1204_v58 = vpop.f32.mrf.mxu1 }
 0x1f8   :  { %v4969_v25 = vadd.f32 %v4486_v32, %v2051_v8  ;;  %v1205_v22 = vadd.f32 %v1204_v58, %v4614_v43  ;;  %v2257_v48 = vmul.f32 %v4499_v13, %v6283_v21  ;;  %v1293_v8 = vadd.f32 %v4708_v56, %v4703_v39 }
 0x1fa   :  { %6406 = vst [vmem:[#allocation41_spill] sm:$0xff] %v4969_v25  ;;  %v6285_v36 = vmax.f32 %v4969_v25, 0.0  ;;  %v2017_v44 = vadd.f32 %v4406_v14, %v1205_v22  ;;  %v2353_v0 = vsel %vm97_vm1, %v2257_v48, 0.0  ;;  %v4984_v58 = vpop.f32.mrf.mxu2  ;;  %v4990_v4 = vpop.f32.mrf.mxu3 }
 0x1fb   :  { %2354 = vadd.xlane.f32.xlu2 %v2353_v0  ;;  %2456 = vadd.xlane.f32.xlu1 %v2455_v54  ;;  %v3884_v54 = vld [vmem:[#allocation2 + $0x168] sm:$0xff] }
 0x1fc   :  { %v4982_v45 = vadd.f32 %v4486_v32, %v2017_v44  ;;  %v2292_v14 = vmul.f32 %v4518_v1, %v6285_v36  ;;  %v3926_v44 = vld [vmem:[#allocation2 + $0x170] sm:$0xff] }
 0x1fd   :  { %v1918_v43 = vpop.f32.mrf.mxu0 }
 0x1fe   :  { %6407 = vst [vmem:[#allocation42_spill] sm:$0xff] %v4982_v45  ;;  %v2052_v21 = vadd.f32 %v1918_v43, %v1293_v8  ;;  %v6287_v22 = vmax.f32 %v4982_v45, 0.0  ;;  %v2458_v36 = vsel %vm97_vm1, %v2292_v14, 0.0 }
 0x1ff   :  { %v1207_v48 = vpop.f32.mrf.mxu1  ;;  %3428 = vmatmul.msk.bf16.gmra.mxu2 %vm97_vm1, %v3926_v44  ;;  %3636 = vmatmul.msk.bf16.gmra.mxu3 %vm97_vm1, %v3884_v54 }
 0x200   :  { %v4993_v0 = vadd.f32 %v4486_v32, %v2052_v21  ;;  %v1208_v56 = vadd.f32 %v1207_v48, %v4628_v17  ;;  %v2258_v39 = vmul.f32 %v4518_v1, %v6287_v22  ;;  %v1295_v17 = vadd.f32 %v4716_v11, %v4714_v19 }
 0x202   :  { %v6290_v8 = vmax.f32 %v4993_v0, 0.0  ;;  %v2018_v43 = vadd.f32 %v4412_v18, %v1208_v56  ;;  %3841 = vmatmul.msk.bf16.gmra.mxu1 %vm97_vm1, %v3965_v3  ;;  %v2356_v20 = vsel %vm97_vm1, %v2258_v39, 0.0  ;;  %v5014_v14 = vpop.f32.mrf.mxu2 }
 0x203   :  { %2459 = vadd.xlane.f32.xlu2 %v2458_v36  ;;  %2357 = vadd.xlane.f32.xlu0 %v2356_v20  ;;  %v5018_v36 = vpop.f32.mrf.mxu3 }
 0x204   :  { %v5008_v21 = vadd.f32 %v4486_v32, %v2018_v43  ;;  %v2293_v18 = vmul.f32 %v4499_v13, %v6290_v8  ;;  %v3885_v8 = vld [vmem:[#allocation2 + $0x170] sm:$0xff] }
 0x205   :  { %v1920_v3 = vpop.f32.mrf.mxu0 }
 0x206   :  { %6408 = vst [vmem:[#allocation43_spill] sm:$0xff] %v5008_v21  ;;  %v2053_v48 = vadd.f32 %v1920_v3, %v1295_v17  ;;  %v2461_v56 = vsel %vm97_vm1, %v2293_v18, 0.0  ;;  %v6288_v20 = vmax.f32 %v5008_v21, 0.0  ;;  %v1298_v17 = vadd.f32 %v4736_v41, %v4733_v31 }
 0x207   :  { %v1209_v19 = vpop.f32.mrf.mxu1  ;;  %2462 = vadd.xlane.f32.xlu1 %v2461_v56 }
 0x208   :  { %v5021_v11 = vadd.f32 %v4486_v32, %v2053_v48  ;;  %v1210_v39 = vadd.f32 %v1209_v19, %v4650_v40  ;;  %v2259_v43 = vmul.f32 %v4499_v13, %v6288_v20 }
 0x20a   :  { %6409 = vst [vmem:[#allocation44_spill] sm:$0xff] %v5021_v11  ;;  %v6289_v44 = vmax.f32 %v5021_v11, 0.0  ;;  %v2019_v54 = vadd.f32 %v4422_v24, %v1210_v39  ;;  %v5037_v40 = vpop.f32.mrf.mxu2  ;;  %v2359_v19 = vsel %vm97_vm1, %v2259_v43, 0.0  ;;  %v3966_v39 = vld [vmem:[#allocation2 + $0x168] sm:$0xff] }
 0x20b   :  { %v5042_v20 = vpop.f32.mrf.mxu3 }
 0x20c   :  { %v2294_v18 = vmul.f32 %v4518_v1, %v6289_v44  ;;  %v5035_v3 = vadd.f32 %v4486_v32, %v2019_v54  ;;  %v3927_v44 = vld [vmem:[#allocation2 + $0x178] sm:$0xff] }
 0x20d   :  { %v1923_v48 = vpop.f32.mrf.mxu0 }
 0x20e   :  { %6410 = vst [vmem:[#allocation45_spill] sm:$0xff] %v5035_v3  ;;  %v2054_v56 = vadd.f32 %v1923_v48, %v1298_v17  ;;  %v2464_v24 = vsel %vm97_vm1, %v2294_v18, 0.0  ;;  %v6291_v22 = vmax.f32 %v5035_v3, 0.0  ;;  %v1300_v48 = vadd.f32 %v4752_v47, %v4749_v33 }
 0x20f   :  { %v1212_v41 = vpop.f32.mrf.mxu1  ;;  %2465 = vadd.xlane.f32.xlu2 %v2464_v24  ;;  %2360 = vadd.xlane.f32.xlu1 %v2359_v19  ;;  %v5066_v19 = vpop.xlane.xlu1 %2387 }
 0x210   :  { %v5045_v31 = vadd.f32 %v4486_v32, %v2054_v56  ;;  %v1213_v54 = vadd.f32 %v1212_v41, %v4662_v55  ;;  %v2260_v43 = vmul.f32 %v4518_v1, %v6291_v22  ;;  %3429 = vmatmul.msk.bf16.gmra.mxu2 %vm97_vm1, %v3927_v44  ;;  %3637 = vmatmul.msk.bf16.gmra.mxu3 %vm97_vm1, %v3885_v8 }
 0x211   :  { %6412 = vst [vmem:[#allocation47_spill] sm:$0xff] %v5066_v19 }
 0x212   :  { %v6293_v17 = vmax.f32 %v5045_v31, 0.0  ;;  %v2020_v18 = vadd.f32 %v4428_v28, %v1213_v54  ;;  %3842 = vmatmul.msk.bf16.gmra.mxu1 %vm97_vm1, %v3966_v39  ;;  %v5064_v24 = vpop.f32.mrf.mxu2  ;;  %v2362_v44 = vsel %vm97_vm1, %v2260_v43, 0.0 }
 0x213   :  { %v5071_v33 = vpop.f32.mrf.mxu3 }
 0x214   :  { %v5058_v56 = vadd.f32 %v4486_v32, %v2020_v18  ;;  %v2295_v55 = vmul.f32 %v4499_v13, %v6293_v17 }
 0x215   :  { %v1925_v28 = vpop.f32.mrf.mxu0 }
 0x216   :  { %6411 = vst [vmem:[#allocation46_spill] sm:$0xff] %v5058_v56  ;;  %v2055_v39 = vadd.f32 %v1925_v28, %v1300_v48  ;;  %v2467_v41 = vsel %vm97_vm1, %v2295_v55, 0.0  ;;  %v6292_v47 = vmax.f32 %v5058_v56, 0.0  ;;  %v5080_v28 = vpop.xlane.xlu0 %2384 }
 0x217   :  { %v1214_v54 = vpop.f32.mrf.mxu1  ;;  %2363 = vadd.xlane.f32.xlu2 %v2362_v44  ;;  %2468 = vadd.xlane.f32.xlu1 %v2467_v41  ;;  %6414 = vst [vmem:[#allocation49_spill] sm:$0xff] %v5080_v28  ;;  %v5085_v44 = vpop.xlane.xlu2 %2390  ;;  %v6420_v28 = vld [vmem:[#allocation8_spill] sm:$0xff] }
 0x218   :  { %v5074_v18 = vadd.f32 %v4486_v32, %v2055_v39  ;;  %v1215_v8 = vadd.f32 %v1214_v54, %v4680_v15  ;;  %v2261_v48 = vmul.f32 %v4499_v13, %v6292_v47  ;;  %6415 = vst [vmem:[#allocation50_spill] sm:$0xff] %v5085_v44  ;;  %v5095_v47 = vpop.xlane.xlu1 %2396  ;;  %v3928_v44 = vld [vmem:[#allocation2 + $0x180] sm:$0xff] }
 0x219   :  { %6417 = vst [vmem:[#allocation52_spill] sm:$0xff] %v5095_v47 }
 0x21a   :  { %6413 = vst [vmem:[#allocation48_spill] sm:$0xff] %v5074_v18  ;;  %v6295_v43 = vmax.f32 %v5074_v18, 0.0  ;;  %v2021_v55 = vadd.f32 %v4438_v34, %v1215_v8  ;;  %v2365_v22 = vsel %vm97_vm1, %v2261_v48, 0.0  ;;  %v5093_v54 = vpop.f32.mrf.mxu2  ;;  %v3967_v8 = vld [vmem:[#allocation2 + $0x170] sm:$0xff] }
 0x21b   :  { %2366 = vadd.xlane.f32.xlu0 %v2365_v22  ;;  %v5100_v48 = vpop.f32.mrf.mxu3 }
 0x21c   :  { %v2296_v39 = vmul.f32 %v4518_v1, %v6295_v43  ;;  %v5091_v15 = vadd.f32 %v4486_v32, %v2021_v55 }
 0x21d   :  { %v1928_v41 = vpop.f32.mrf.mxu0 }
 0x21e   :  { %6416 = vst [vmem:[#allocation51_spill] sm:$0xff] %v5091_v15  ;;  %v2056_v17 = vadd.f32 %v1928_v41, %v4773_v12  ;;  %v2470_v34 = vsel %vm97_vm1, %v2296_v39, 0.0  ;;  %v6300_v22 = vmax.f32 %v5091_v15, 0.0  ;;  %v3886_v12 = vld [vmem:[#allocation2 + $0x178] sm:$0xff]  ;;  %v5109_v41 = vpop.xlane.xlu0 %2393 }
 0x21f   :  { %v1217_v19 = vpop.f32.mrf.mxu1  ;;  %2471 = vadd.xlane.f32.xlu2 %v2470_v34  ;;  %6419 = vst [vmem:[#allocation54_spill] sm:$0xff] %v5109_v41  ;;  %v6428_v41 = vld [vmem:[#allocation9_spill] sm:$0xff] }
 0x220   :  { %v5103_v43 = vadd.f32 %v4486_v32, %v2056_v17  ;;  %v1218_v55 = vadd.f32 %v1217_v19, %v4695_v26  ;;  %v2262_v47 = vmul.f32 %v4518_v1, %v6300_v22  ;;  %3430 = vmatmul.msk.bf16.gmra.mxu2 %vm97_vm1, %v3928_v44  ;;  %3638 = vmatmul.msk.bf16.gmra.mxu3 %vm97_vm1, %v3886_v12  ;;  %v5120_v17 = vpop.xlane.xlu2 %2399  ;;  %v5122_v22 = vpop.xlane.xlu1 %2405 }
 0x221   :  { %6422 = vst [vmem:[#allocation55_spill] sm:$0xff] %v5120_v17 }
 0x222   :  { %6418 = vst [vmem:[#allocation53_spill] sm:$0xff] %v5103_v43  ;;  %v2022_v3 = vadd.f32 %v6420_v28, %v1218_v55  ;;  %3843 = vmatmul.msk.bf16.gmra.mxu1 %vm97_vm1, %v3967_v8  ;;  %v2368_v34 = vsel %vm97_vm1, %v2262_v47, 0.0  ;;  %v6424_v8 = vmax.f32 %v5103_v43, 0.0  ;;  %v5129_v44 = vpop.f32.mrf.mxu2 }
 0x223   :  { %2369 = vadd.xlane.f32.xlu1 %v2368_v34  ;;  %6423 = vst [vmem:[#allocation56_spill] sm:$0xff] %v5122_v22  ;;  %v6426_v34 = vld [vmem:[#allocation26_spill] sm:$0xff] }
 0x224   :  { %v5117_v26 = vadd.f32 %v4486_v32, %v2022_v3  ;;  %v2297_v47 = vmul.f32 %v4499_v13, %v6424_v8  ;;  %v5131_v3 = vpop.f32.mrf.mxu3 }
 0x225   :  { %v1930_v19 = vpop.f32.mrf.mxu0 }
 0x226   :  { %6421 = vst [vmem:[#allocation8_spill] sm:$0xff] %v5117_v26  ;;  %v2057_v39 = vadd.f32 %v1930_v19, %v4793_v60  ;;  %v6307_v28 = vmax.f32 %v5117_v26, 0.0  ;;  %v5140_v19 = vpop.xlane.xlu0 %2402  ;;  %v2473_v15 = vsel %vm97_vm1, %v2297_v47, 0.0 }
 0x227   :  { %v1219_v55 = vpop.f32.mrf.mxu1  ;;  %6427 = vst [vmem:[#allocation26_spill] sm:$0xff] %v5140_v19  ;;  %v3968_v19 = vld [vmem:[#allocation2 + $0x178] sm:$0xff] }
 0x228   :  { %v5134_v12 = vadd.f32 %v4486_v32, %v2057_v39  ;;  %v1220_v17 = vadd.f32 %v1219_v55, %v6426_v34  ;;  %v2263_v60 = vmul.f32 %v4499_v13, %v6307_v28  ;;  %v5149_v34 = vpop.xlane.xlu2 %2408  ;;  %v5151_v26 = vpop.xlane.xlu1 %2414 }
 0x229   :  { %6430 = vst [vmem:[#allocation58_spill] sm:$0xff] %v5149_v34  ;;  %v6435_v34 = vld [vmem:[#allocation10_spill] sm:$0xff] }
 0x22a   :  { %6425 = vst [vmem:[#allocation57_spill] sm:$0xff] %v5134_v12  ;;  %v6310_v22 = vmax.f32 %v5134_v12, 0.0  ;;  %v2023_v8 = vadd.f32 %v6428_v41, %v1220_v17  ;;  %v2371_v43 = vsel %vm97_vm1, %v2263_v60, 0.0 }
 0x22b   :  { %2372 = vadd.xlane.f32.xlu2 %v2371_v43  ;;  %2474 = vadd.xlane.f32.xlu1 %v2473_v15  ;;  %6431 = vst [vmem:[#allocation59_spill] sm:$0xff] %v5151_v26  ;;  %v6433_v15 = vld [vmem:[#allocation27_spill] sm:$0xff]  ;;  %v5165_v26 = vpop.f32.mrf.mxu2 }
 0x22c   :  { %v5147_v39 = vadd.f32 %v4486_v32, %v2023_v8  ;;  %v2298_v41 = vmul.f32 %v4518_v1, %v6310_v22 }
 0x22d   :  { %v1933_v55 = vpop.f32.mrf.mxu0 }
 0x22e   :  { %6429 = vst [vmem:[#allocation9_spill] sm:$0xff] %v5147_v39  ;;  %v2058_v28 = vadd.f32 %v1933_v55, %v4819_v29  ;;  %v6313_v17 = vmax.f32 %v5147_v39, 0.0  ;;  %v5167_v29 = vpop.f32.mrf.mxu3  ;;  %v5169_v55 = vpop.xlane.xlu0 %2411 }
 0x22f   :  { %v1222_v47 = vpop.f32.mrf.mxu1  ;;  %6434 = vst [vmem:[#allocation27_spill] sm:$0xff] %v5169_v55 }
 0x230   :  { %v5159_v43 = vadd.f32 %v4486_v32, %v2058_v28  ;;  %v1223_v60 = vadd.f32 %v1222_v47, %v6433_v15  ;;  %v2264_v8 = vmul.f32 %v4518_v1, %v6313_v17  ;;  %v2476_v28 = vsel %vm97_vm1, %v2298_v41, 0.0  ;;  %v5179_v39 = vpop.xlane.xlu2 %2417  ;;  %v5181_v45 = vpop.xlane.xlu1 %2429 }
 0x231   :  { %6437 = vst [vmem:[#allocation61_spill] sm:$0xff] %v5179_v39 }
 0x232   :  { %6432 = vst [vmem:[#allocation60_spill] sm:$0xff] %v5159_v43  ;;  %v2024_v12 = vadd.f32 %v6435_v34, %v1223_v60  ;;  %3844 = vmatmul.msk.bf16.gmra.mxu1 %vm97_vm1, %v3968_v19  ;;  %v2374_v47 = vsel %vm97_vm1, %v2264_v8, 0.0  ;;  %v6438_v19 = vmax.f32 %v5159_v43, 0.0 }
 0x233   :  { %2477 = vadd.xlane.f32.xlu2 %v2476_v28  ;;  %2375 = vadd.xlane.f32.xlu0 %v2374_v47  ;;  %v6440_v28 = vld [vmem:[#allocation29_spill] sm:$0xff]  ;;  %v5201_v56 = vpop.f32.mrf.mxu2 }
 0x234   :  { %v5177_v15 = vadd.f32 %v4486_v32, %v2024_v12  ;;  %v2299_v41 = vmul.f32 %v4499_v13, %v6438_v19 }
 0x235   :  { %v1935_v17 = vpop.f32.mrf.mxu0 }
 0x236   :  { %6436 = vst [vmem:[#allocation10_spill] sm:$0xff] %v5177_v15  ;;  %v2059_v22 = vadd.f32 %v1935_v17, %v4840_v46  ;;  %v6320_v34 = vmax.f32 %v5177_v15, 0.0  ;;  %v5195_v39 = vpop.xlane.xlu0 %2426  ;;  %v6441_v17 = vld [vmem:[#allocation11_spill] sm:$0xff]  ;;  %v2479_v19 = vsel %vm97_vm1, %v2299_v41, 0.0  ;;  %v3969_v41 = vld [vmem:[#allocation2 + $0x180] sm:$0xff] }
 0x237   :  { %v1224_v60 = vpop.f32.mrf.mxu1 }
 0x238   :  { %v5189_v8 = vadd.f32 %v4486_v32, %v2059_v22  ;;  %v1225_v12 = vadd.f32 %v1224_v60, %v6440_v28  ;;  %v2265_v47 = vmul.f32 %v4499_v13, %v6320_v34  ;;  %v5203_v22 = vpop.f32.mrf.mxu3  ;;  %v1333_v60 = vadd.f32 %v5071_v33, %v5064_v24  ;;  %v5210_v46 = vpop.xlane.xlu2 %2432 }
 0x23a   :  { %6439 = vst [vmem:[#allocation62_spill] sm:$0xff] %v5189_v8  ;;  %v2025_v55 = vadd.f32 %v6441_v17, %v1225_v12  ;;  %v2377_v43 = vsel %vm97_vm1, %v2265_v47, 0.0 }
 0x23b   :  { %2378 = vadd.xlane.f32.xlu1 %v2377_v43  ;;  %2480 = vadd.xlane.f32.xlu0 %v2479_v19  ;;  %v6443_v43 = vmax.f32 %v5189_v8, 0.0 }
 0x23c   :  { %v5208_v28 = vadd.f32 %v4486_v32, %v2025_v55 }
 0x23d   :  { %v1938_v34 = vpop.f32.mrf.mxu0  ;;  %v2300_v19 = vmul.f32 %v4518_v1, %v6443_v43 }
 0x23e   :  { %6442 = vst [vmem:[#allocation29_spill] sm:$0xff] %v5208_v28  ;;  %v2060_v12 = vadd.f32 %v1938_v34, %v4865_v5  ;;  %v5213_v47 = vpop.xlane.xlu1 %2336  ;;  %v6324_v17 = vmax.f32 %v5208_v28, 0.0  ;;  %v5225_v21 = vpop.xlane.xlu0 %2330 }
 0x23f   :  { %v1958_v15 = vpop.f32.mrf.mxu1  ;;  %v2482_v8 = vsel %vm97_vm1, %v2300_v19, 0.0 }
 0x240   :  { %v5220_v24 = vadd.f32 %v4486_v32, %v2060_v12  ;;  %v2068_v33 = vadd.f32 %v1958_v15, %v1333_v60  ;;  %v2266_v55 = vmul.f32 %v4518_v1, %v6324_v17  ;;  %v1315_v15 = vadd.f32 %v4888_v61, %v4880_v23  ;;  %v5237_v12 = vpop.f32.mrf.mxu2  ;;  %v5239_v5 = vpop.f32.mrf.mxu3 }
 0x242   :  { %6444 = vst [vmem:[#allocation11_spill] sm:$0xff] %v5220_v24  ;;  %v5229_v34 = vadd.f32 %v4486_v32, %v2068_v33  ;;  %3845 = vmatmul.msk.bf16.gmra.mxu1 %vm97_vm1, %v3969_v41  ;;  %v2380_v43 = vsel %vm97_vm1, %v2266_v55, 0.0  ;;  %v5241_v33 = vpop.xlane.xlu2 %2438  ;;  %v1335_v41 = vadd.f32 %v5100_v48, %v5093_v54  ;;  %v6446_v19 = vmax.f32 %v5220_v24, 0.0 }
 0x243   :  { %2381 = vadd.xlane.f32.xlu2 %v2380_v43  ;;  %2483 = vadd.xlane.f32.xlu1 %v2482_v8 }
 0x244   :  { %6445 = vst [vmem:[#allocation63_spill] sm:$0xff] %v5229_v34  ;;  %v6328_v60 = vmax.f32 %v5229_v34, 0.0  ;;  %v2301_v23 = vmul.f32 %v4499_v13, %v6446_v19 }
 0x245   :  { %v1940_v17 = vpop.f32.mrf.mxu0 }
 0x246   :  { %v2061_v55 = vadd.f32 %v1940_v17, %v1315_v15  ;;  %v2309_v8 = vmul.f32 %v4499_v13, %v6328_v60  ;;  %v5254_v28 = vpop.xlane.xlu1 %2339  ;;  %v2485_v17 = vsel %vm97_vm1, %v2301_v23, 0.0  ;;  %v1318_v15 = vadd.f32 %v4916_v63, %v4908_v62  ;;  %v5264_v19 = vpop.xlane.xlu0 %2435 }
 0x247   :  { %v1960_v61 = vpop.f32.mrf.mxu1 }
 0x248   :  { %v5252_v43 = vadd.f32 %v4486_v32, %v2061_v55  ;;  %v2069_v10 = vadd.f32 %v1960_v61, %v1335_v41  ;;  %v2509_v18 = vsel %vm97_vm1, %v2309_v8, 0.0  ;;  %v1338_v55 = vadd.f32 %v5131_v3, %v5129_v44  ;;  %v5278_v63 = vpop.f32.mrf.mxu2  ;;  %v5280_v3 = vpop.f32.mrf.mxu3 }
 0x249   :  { %2510 = vadd.xlane.f32.xlu0 %v2509_v18 }
 0x24a   :  { %6447 = vst [vmem:[#allocation64_spill] sm:$0xff] %v5252_v43  ;;  %v6329_v54 = vmax.f32 %v5252_v43, 0.0  ;;  %v5259_v48 = vadd.f32 %v4486_v32, %v2069_v10 }
 0x24b   :  { %2486 = vadd.xlane.f32.xlu1 %v2485_v17  ;;  %v3970_v17 = vld [vmem:[#allocation2 + $0x188] sm:$0xff] }
 0x24c   :  { %6448 = vst [vmem:[#allocation65_spill] sm:$0xff] %v5259_v48  ;;  %v6330_v41 = vmax.f32 %v5259_v48, 0.0  ;;  %v2302_v18 = vmul.f32 %v4518_v1, %v6329_v54 }
 0x24d   :  { %v1943_v8 = vpop.f32.mrf.mxu0 }
 0x24e   :  { %v2062_v10 = vadd.f32 %v1943_v8, %v1318_v15  ;;  %v5272_v61 = vpop.xlane.xlu2 %2342  ;;  %v2488_v23 = vsel %vm97_vm1, %v2302_v18, 0.0  ;;  %v2310_v62 = vmul.f32 %v4518_v1, %v6330_v41  ;;  %v5286_v8 = vpop.xlane.xlu1 %2444 }
 0x24f   :  { %v1963_v44 = vpop.f32.mrf.mxu1  ;;  %2489 = vadd.xlane.f32.xlu2 %v2488_v23  ;;  %v1320_v23 = vadd.f32 %v4939_v6, %v4932_v30  ;;  %v5300_v48 = vpop.xlane.xlu0 %2333 }
 0x250   :  { %v5283_v60 = vadd.f32 %v4486_v32, %v2062_v10  ;;  %v2070_v54 = vadd.f32 %v1963_v44, %v1338_v55  ;;  %v2512_v41 = vsel %vm97_vm1, %v2310_v62, 0.0  ;;  %v2573_v55 = vmax.f32 %v5195_v39, %v5210_v46 }
 0x252   :  { %6449 = vst [vmem:[#allocation66_spill] sm:$0xff] %v5283_v60  ;;  %v6333_v15 = vmax.f32 %v5283_v60, 0.0  ;;  %v5289_v18 = vadd.f32 %v4486_v32, %v2070_v54  ;;  %3846 = vmatmul.msk.bf16.gmra.mxu1 %vm97_vm1, %v3970_v17  ;;  %v1340_v54 = vadd.f32 %v5167_v29, %v5165_v26  ;;  %v2583_v6 = vmax.f32 %v2573_v55, %v5241_v33  ;;  %v5312_v60 = vpop.f32.mrf.mxu2  ;;  %v5315_v26 = vpop.f32.mrf.mxu3 }
 0x253   :  { %2513 = vadd.xlane.f32.xlu1 %v2512_v41 }
 0x254   :  { %6450 = vst [vmem:[#allocation67_spill] sm:$0xff] %v5289_v18  ;;  %v2303_v10 = vmul.f32 %v4499_v13, %v6333_v15  ;;  %v6338_v17 = vmax.f32 %v5289_v18, 0.0  ;;  %v2593_v24 = vmax.f32 %v2583_v6, %v5286_v8 }
 0x255   :  { %v1945_v44 = vpop.f32.mrf.mxu0 }
 0x256   :  { %v2063_v62 = vadd.f32 %v1945_v44, %v1320_v23  ;;  %v5305_v41 = vpop.xlane.xlu2 %2447  ;;  %v2491_v30 = vsel %vm97_vm1, %v2303_v10, 0.0  ;;  %v2311_v55 = vmul.f32 %v4499_v13, %v6338_v17 }
 0x257   :  { %v1965_v43 = vpop.f32.mrf.mxu1  ;;  %2492 = vadd.xlane.f32.xlu0 %v2491_v30 }
 0x258   :  { %v5310_v15 = vadd.f32 %v4486_v32, %v2063_v62  ;;  %v2071_v34 = vadd.f32 %v1965_v43, %v1340_v54  ;;  %v1323_v43 = vadd.f32 %v4966_v9, %v4959_v52  ;;  %v1343_v54 = vadd.f32 %v5203_v22, %v5201_v56  ;;  %v5341_v52 = vpop.xlane.xlu0 %2441 }
 0x259   :  { %v2574_v22 = vmax.f32 %v5181_v45, %v5264_v19 }
 0x25a   :  { %6451 = vst [vmem:[#allocation68_spill] sm:$0xff] %v5310_v15  ;;  %v6340_v29 = vmax.f32 %v5310_v15, 0.0  ;;  %v5319_v23 = vadd.f32 %v4486_v32, %v2071_v34  ;;  %v5321_v10 = vpop.xlane.xlu1 %2450 }
 0x25b   :  { %v5327_v44 = vmax.f32 %v2593_v24, %v5321_v10  ;;  %v2515_v24 = vsel %vm97_vm1, %v2311_v55, 0.0 }
 0x25c   :  { %6452 = vst [vmem:[#allocation69_spill] sm:$0xff] %v5319_v23  ;;  %v2304_v34 = vmul.f32 %v4518_v1, %v6340_v29  ;;  %v6341_v30 = vmax.f32 %v5319_v23, 0.0 }
 0x25d   :  { %v1948_v62 = vpop.f32.mrf.mxu0 }
 0x25e   :  { %v2064_v6 = vadd.f32 %v1948_v62, %v1323_v43  ;;  %v5337_v18 = vpop.xlane.xlu2 %2345  ;;  %v2494_v17 = vsel %vm97_vm1, %v2304_v34, 0.0  ;;  %v2312_v55 = vmul.f32 %v4518_v1, %v6341_v30  ;;  %v2584_v34 = vmax.f32 %v2574_v22, %v5341_v52 }
 0x25f   :  { %v1968_v38 = vpop.f32.mrf.mxu1  ;;  %2495 = vadd.xlane.f32.xlu1 %v2494_v17  ;;  %2516 = vadd.xlane.f32.xlu0 %v2515_v24  ;;  %v5355_v17 = vpop.f32.mrf.mxu2 }
 0x260   :  { %v5344_v9 = vadd.f32 %v4486_v32, %v2064_v6  ;;  %v2072_v56 = vadd.f32 %v1968_v38, %v1343_v54  ;;  %v5358_v24 = vpop.f32.mrf.mxu3  ;;  %v1325_v38 = vadd.f32 %v4990_v4, %v4984_v58  ;;  %v2594_v6 = vmax.f32 %v2584_v34, %v5305_v41 }
 0x261   :  { %v2518_v35 = vsel %vm97_vm1, %v2312_v55, 0.0 }
 0x262   :  { %6453 = vst [vmem:[#allocation70_spill] sm:$0xff] %v5344_v9  ;;  %v6345_v43 = vmax.f32 %v5344_v9, 0.0  ;;  %v5350_v62 = vadd.f32 %v4486_v32, %v2072_v56  ;;  %v1345_v56 = vadd.f32 %v5239_v5, %v5237_v12 }
 0x264   :  { %6454 = vst [vmem:[#allocation71_spill] sm:$0xff] %v5350_v62  ;;  %v2305_v54 = vmul.f32 %v4499_v13, %v6345_v43  ;;  %v6346_v30 = vmax.f32 %v5350_v62, 0.0 }
 0x265   :  { %v1950_v29 = vpop.f32.mrf.mxu0 }
 0x266   :  { %v2065_v23 = vadd.f32 %v1950_v29, %v1325_v38  ;;  %v5369_v15 = vpop.xlane.xlu2 %2453  ;;  %v5371_v22 = vpop.xlane.xlu1 %2351  ;;  %v2497_v58 = vsel %vm97_vm1, %v2305_v54, 0.0  ;;  %v2313_v55 = vmul.f32 %v4499_v13, %v6346_v30  ;;  %v1328_v38 = vadd.f32 %v5018_v36, %v5014_v14 }
 0x267   :  { %v5376_v4 = vmax.f32 %v2594_v6, %v5369_v15  ;;  %v1970_v43 = vpop.f32.mrf.mxu1  ;;  %2519 = vadd.xlane.f32.xlu1 %v2518_v35  ;;  %2498 = vadd.xlane.f32.xlu0 %v2497_v58  ;;  %v1348_v35 = vadd.f32 %v5280_v3, %v5278_v63 }
 0x268   :  { %v5379_v5 = vadd.f32 %v4486_v32, %v2065_v23  ;;  %v2073_v12 = vadd.f32 %v1970_v43, %v1345_v56  ;;  %v5395_v43 = vpop.f32.mrf.mxu2  ;;  %v5397_v6 = vpop.f32.mrf.mxu3  ;;  %v2521_v36 = vsel %vm97_vm1, %v2313_v55, 0.0  ;;  %v1330_v55 = vadd.f32 %v5042_v20, %v5037_v40 }
 0x26a   :  { %6455 = vst [vmem:[#allocation72_spill] sm:$0xff] %v5379_v5  ;;  %v6347_v29 = vmax.f32 %v5379_v5, 0.0  ;;  %v5383_v34 = vadd.f32 %v4486_v32, %v2073_v12 }
 0x26c   :  { %6456 = vst [vmem:[#allocation73_spill] sm:$0xff] %v5383_v34  ;;  %v2306_v23 = vmul.f32 %v4518_v1, %v6347_v29  ;;  %v6349_v56 = vmax.f32 %v5383_v34, 0.0 }
 0x26d   :  { %v1953_v54 = vpop.f32.mrf.mxu0 }
 0x26e   :  { %v2066_v58 = vadd.f32 %v1953_v54, %v1328_v38  ;;  %v5400_v12 = vpop.xlane.xlu2 %2354  ;;  %v5402_v30 = vpop.xlane.xlu1 %2456  ;;  %v2500_v14 = vsel %vm97_vm1, %v2306_v23, 0.0  ;;  %v2314_v23 = vmul.f32 %v4518_v1, %v6349_v56 }
 0x26f   :  { %v2613_v63 = vmax.f32 %v5327_v44, %v5402_v30  ;;  %v1973_v3 = vpop.f32.mrf.mxu1  ;;  %2501 = vadd.xlane.f32.xlu1 %v2500_v14  ;;  %2522 = vadd.xlane.f32.xlu0 %v2521_v36 }
 0x270   :  { %v5409_v29 = vadd.f32 %v4486_v32, %v2066_v58  ;;  %v2074_v62 = vadd.f32 %v1973_v3, %v1348_v35  ;;  %v1350_v35 = vadd.f32 %v5315_v26, %v5312_v60  ;;  %v2524_v3 = vsel %vm97_vm1, %v2314_v23, 0.0  ;;  %v816_v40 = vpop.f32.mrf.mxu2  ;;  %v1357_v60 = vpop.f32.mrf.mxu3 }
 0x272   :  { %6457 = vst [vmem:[#allocation74_spill] sm:$0xff] %v5409_v29  ;;  %v6351_v38 = vmax.f32 %v5409_v29, 0.0  ;;  %v5413_v54 = vadd.f32 %v4486_v32, %v2074_v62 }
 0x274   :  { %6458 = vst [vmem:[#allocation75_spill] sm:$0xff] %v5413_v54  ;;  %v6352_v44 = vmax.f32 %v5413_v54, 0.0  ;;  %v2307_v58 = vmul.f32 %v4499_v13, %v6351_v38 }
 0x275   :  { %v1955_v14 = vpop.f32.mrf.mxu0 }
 0x276   :  { %v2067_v36 = vadd.f32 %v1955_v14, %v1330_v55  ;;  %v5426_v62 = vpop.xlane.xlu2 %2459  ;;  %v2503_v56 = vsel %vm97_vm1, %v2307_v58, 0.0  ;;  %v2315_v20 = vmul.f32 %v4499_v13, %v6352_v44 }
 0x277   :  { %v2614_v34 = vmax.f32 %v5376_v4, %v5426_v62  ;;  %v1975_v38 = vpop.f32.mrf.mxu1  ;;  %2525 = vadd.xlane.f32.xlu1 %v2524_v3  ;;  %2504 = vadd.xlane.f32.xlu0 %v2503_v56  ;;  %v2569_v4 = vmax.f32 %v5225_v21, %v5213_v47  ;;  %v5448_v3 = vpop.xlane.xlu0 %2348 }
 0x278   :  { %v5436_v26 = vadd.f32 %v4486_v32, %v2067_v36  ;;  %v2075_v55 = vadd.f32 %v1975_v38, %v1350_v35  ;;  %v2527_v23 = vsel %vm97_vm1, %v2315_v20, 0.0  ;;  %v1353_v38 = vadd.f32 %v5358_v24, %v5355_v17 }
 0x279   :  { %2528 = vadd.xlane.f32.xlu2 %v2527_v23  ;;  %v2579_v20 = vmax.f32 %v2569_v4, %v5272_v61 }
 0x27a   :  { %6459 = vst [vmem:[#allocation76_spill] sm:$0xff] %v5436_v26  ;;  %v6356_v58 = vmax.f32 %v5436_v26, 0.0  ;;  %v5441_v14 = vadd.f32 %v4486_v32, %v2075_v55  ;;  %v5443_v44 = vpop.xlane.xlu1 %2462  ;;  %v5464_v26 = vpop.f32.mrf.mxu2 }
 0x27b   :  { %v2623_v56 = vmax.f32 %v2613_v63, %v5443_v44  ;;  %v2589_v63 = vmax.f32 %v2579_v20, %v5448_v3  ;;  %v2570_v20 = vmax.f32 %v5300_v48, %v5254_v28 }
 0x27c   :  { %6460 = vst [vmem:[#allocation77_spill] sm:$0xff] %v5441_v14  ;;  %v6357_v35 = vmax.f32 %v5441_v14, 0.0  ;;  %v2308_v36 = vmul.f32 %v4518_v1, %v6356_v58  ;;  %v5466_v58 = vpop.f32.mrf.mxu3 }
 0x27d   :  { %v2599_v24 = vmax.f32 %v2589_v63, %v5400_v12 }
 0x27e   :  { %v2506_v55 = vsel %vm97_vm1, %v2308_v36, 0.0  ;;  %v2316_v23 = vmul.f32 %v4518_v1, %v6357_v35 }
 0x27f   :  { %v1978_v54 = vpop.f32.mrf.mxu1  ;;  %2507 = vadd.xlane.f32.xlu1 %v2506_v55  ;;  %v5481_v63 = vpop.xlane.xlu0 %2357 }
 0x280   :  { %v2076_v5 = vadd.f32 %v1978_v54, %v1353_v38  ;;  %v2530_v17 = vsel %vm97_vm1, %v2316_v23, 0.0  ;;  %v2580_v23 = vmax.f32 %v2570_v20, %v5337_v18 }
 0x281   :  { %2531 = vadd.xlane.f32.xlu0 %v2530_v17 }
 0x282   :  { %v5469_v4 = vadd.f32 %v4486_v32, %v2076_v5  ;;  %v5471_v36 = vpop.xlane.xlu2 %2465  ;;  %v5473_v35 = vpop.xlane.xlu1 %2360  ;;  %v1355_v5 = vadd.f32 %v5397_v6, %v5395_v43  ;;  %v2590_v14 = vmax.f32 %v2580_v23, %v5371_v22 }
 0x283   :  { %v2624_v54 = vmax.f32 %v2614_v34, %v5471_v36  ;;  %v2609_v38 = vmax.f32 %v2599_v24, %v5473_v35 }
 0x284   :  { %6461 = vst [vmem:[#allocation78_spill] sm:$0xff] %v5469_v4  ;;  %v6362_v55 = vmax.f32 %v5469_v4, 0.0  ;;  %v5491_v24 = vmax.f32 %v2590_v14, %v5481_v63  ;;  %v1358_v4 = vadd.f32 %v1357_v60, %v816_v40 }
 0x286   :  { %v2317_v17 = vmul.f32 %v4499_v13, %v6362_v55 }
 0x287   :  { %v1980_v29 = vpop.f32.mrf.mxu1 }
 0x288   :  { %v2077_v9 = vadd.f32 %v1980_v29, %v1355_v5  ;;  %v2533_v34 = vsel %vm97_vm1, %v2317_v17, 0.0  ;;  %v5501_v29 = vpop.f32.mrf.mxu2  ;;  %v5503_v5 = vpop.f32.mrf.mxu3 }
 0x289   :  { %2534 = vadd.xlane.f32.xlu2 %v2533_v34 }
 0x28a   :  { %v5494_v20 = vadd.f32 %v4486_v32, %v2077_v9  ;;  %v5496_v42 = vpop.xlane.xlu2 %2363  ;;  %v2469_v43 = vpop.xlane.xlu1 %2468 }
 0x28b   :  { %v2633_v55 = vmax.f32 %v2623_v56, %v2469_v43 }
 0x28c   :  { %6462 = vst [vmem:[#allocation79_spill] sm:$0xff] %v5494_v20 }
 0x28d   :  { %v2671_v14 = vsub.f32 %v5195_v39, %v2633_v55  ;;  %v2673_v17 = vsub.f32 %v5210_v46, %v2633_v55  ;;  %v2675_v9 = vsub.f32 %v5241_v33, %v2633_v55  ;;  %v2677_v34 = vsub.f32 %v5286_v8, %v2633_v55 }
 0x28e   :  { %v2679_v11 = vsub.f32 %v5321_v10, %v2633_v55  ;;  %v2681_v6 = vsub.f32 %v5402_v30, %v2633_v55  ;;  %v2683_v40 = vsub.f32 %v5443_v44, %v2633_v55  ;;  %v2685_v60 = vsub.f32 %v2469_v43, %v2633_v55  ;;  %v5512_v56 = vpop.xlane.xlu0 %2366 }
 0x28f   :  { %v2783_v23 = vmul.f32 1.442695, %v2671_v14  ;;  %v2787_v7 = vmul.f32 1.442695, %v2673_v17  ;;  %v2791_v25 = vmul.f32 1.442695, %v2675_v9  ;;  %v5515_v39 = vmax.f32 %v2609_v38, %v5512_v56  ;;  %v1983_v46 = vpop.f32.mrf.mxu1 }
 0x290   :  { %v2795_v57 = vmul.f32 1.442695, %v2677_v34  ;;  %v2078_v33 = vadd.f32 %v1983_v46, %v1358_v4  ;;  %v2799_v8 = vmul.f32 1.442695, %v2679_v11  ;;  %v6463_v10 = vmax.f32 %v5494_v20, 0.0  ;;  %v6468_v20 = vld [vmem:[#allocation28_spill] sm:$0xff] }
 0x291   :  { %3992 = vpow2.f32 %v2783_v23  ;;  %v2803_v44 = vmul.f32 1.442695, %v2681_v6  ;;  %v2807_v14 = vmul.f32 1.442695, %v2683_v40  ;;  %v2811_v4 = vmul.f32 1.442695, %v2685_v60 }
 0x292   :  { %v2318_v30 = vmul.f32 %v4518_v1, %v6463_v10  ;;  %3994 = vpow2.f32 %v2787_v7  ;;  %v5521_v55 = vadd.f32 %v4486_v32, %v2078_v33  ;;  %v5523_v43 = vpop.xlane.xlu2 %2471  ;;  %v1360_v10 = vadd.f32 %v5466_v58, %v5464_v26 }
 0x293   :  { %3996 = vpow2.f32 %v2791_v25  ;;  %v2634_v17 = vmax.f32 %v2624_v54, %v5523_v43  ;;  %v5534_v54 = vpop.f32.mrf.mxu2 }
 0x294   :  { %6464 = vst [vmem:[#allocation80_spill] sm:$0xff] %v5521_v55  ;;  %v2536_v38 = vsel %vm97_vm1, %v2318_v30, 0.0  ;;  %3998 = vpow2.f32 %v2795_v57  ;;  %v6368_v11 = vmax.f32 %v5521_v55, 0.0  ;;  %v5536_v57 = vpop.f32.mrf.mxu3 }
 0x295   :  { %2537 = vadd.xlane.f32.xlu0 %v2536_v38  ;;  %4000 = vpow2.f32 %v2799_v8  ;;  %v2672_v7 = vsub.f32 %v5181_v45, %v2634_v17  ;;  %v2674_v6 = vsub.f32 %v5264_v19, %v2634_v17  ;;  %v2676_v23 = vsub.f32 %v5341_v52, %v2634_v17 }
 0x296   :  { %4002 = vpow2.f32 %v2803_v44  ;;  %v2678_v25 = vsub.f32 %v5305_v41, %v2634_v17  ;;  %v2680_v9 = vsub.f32 %v5369_v15, %v2634_v17  ;;  %v2682_v34 = vsub.f32 %v5426_v62, %v2634_v17  ;;  %v5542_v52 = vpop.xlane.xlu1 %2369 }
 0x297   :  { %v5538_v40 = vpop.eup %3992  ;;  %4004 = vpow2.f32 %v2807_v14  ;;  %v2684_v45 = vsub.f32 %v5471_v36, %v2634_v17  ;;  %v2686_v19 = vsub.f32 %v5523_v43, %v2634_v17  ;;  %v2785_v60 = vmul.f32 1.442695, %v2672_v7  ;;  %v1985_v46 = vpop.f32.mrf.mxu1 }
 0x298   :  { %v5544_v41 = vpop.eup %3994  ;;  %4006 = vpow2.f32 %v2811_v4  ;;  %v2789_v15 = vmul.f32 1.442695, %v2674_v6  ;;  %v2793_v62 = vmul.f32 1.442695, %v2676_v23  ;;  %v2797_v36 = vmul.f32 1.442695, %v2678_v25 }
 0x299   :  { %v5546_v33 = vpop.eup %3996  ;;  %v2883_v8 = vadd.f32 %v5544_v41, %v5538_v40  ;;  %4008 = vpow2.f32 %v2785_v60  ;;  %v2801_v44 = vmul.f32 1.442695, %v2680_v9  ;;  %v6465_v43 = vmax.f32 %v5491_v24, %v5496_v42 }
 0x29a   :  { %v5552_v30 = vpop.eup %3998  ;;  %4010 = vpow2.f32 %v2789_v15  ;;  %v2805_v4 = vmul.f32 1.442695, %v2682_v34  ;;  %v2079_v7 = vadd.f32 %v1985_v46, %v1360_v10  ;;  %v2319_v26 = vmul.f32 %v4499_v13, %v6368_v11 }
 0x29b   :  { %v5558_v14 = vmax.f32 %v6465_v43, %v5542_v52  ;;  %v5560_v38 = vpop.eup %4000  ;;  %v2893_v17 = vadd.f32 %v5546_v33, %v2883_v8  ;;  %4012 = vpow2.f32 %v2793_v62  ;;  %v2809_v6 = vmul.f32 1.442695, %v2684_v45 }
 0x29c   :  { %v5566_v58 = vpop.eup %4002  ;;  %v1363_v23 = vadd.f32 %v5503_v5, %v5501_v29  ;;  %4014 = vpow2.f32 %v2797_v36  ;;  %v2539_v9 = vsel %vm97_vm1, %v2319_v26, 0.0  ;;  %v5577_v60 = vadd.f32 %v4486_v32, %v2079_v7  ;;  %v5590_v36 = vpop.f32.mrf.mxu2 }
 0x29d   :  { %v5570_v24 = vpop.eup %4004  ;;  %v2903_v25 = vadd.f32 %v5552_v30, %v2893_v17  ;;  %4016 = vpow2.f32 %v2801_v44  ;;  %2540 = vadd.xlane.f32.xlu2 %v2539_v9  ;;  %v2813_v8 = vmul.f32 1.442695, %v2686_v19 }
 0x29e   :  { %v5574_v34 = vpop.eup %4006  ;;  %6466 = vst [vmem:[#allocation81_spill] sm:$0xff] %v5577_v60  ;;  %v5579_v46 = vpop.xlane.xlu2 %2372  ;;  %4018 = vpow2.f32 %v2805_v4 }
 0x29f   :  { %v5581_v45 = vpop.eup %4008  ;;  %v2913_v29 = vadd.f32 %v5560_v38, %v2903_v25  ;;  %v5586_v5 = vmax.f32 %v5515_v39, %v5579_v46  ;;  %v1988_v15 = vpop.f32.mrf.mxu1  ;;  %4020 = vpow2.f32 %v2809_v6 }
 0x2a0   :  { %v5588_v62 = vpop.eup %4010  ;;  %v2080_v10 = vadd.f32 %v1988_v15, %v1363_v23  ;;  %v1367_v4 = vpop.f32.mrf.mxu3  ;;  %4022 = vpow2.f32 %v2813_v8 }
 0x2a1   :  { %v2923_v44 = vadd.f32 %v5566_v58, %v2913_v29  ;;  %v2884_v43 = vadd.f32 %v5588_v62, %v5581_v45  ;;  %v2639_v17 = vsub.f32 %v5225_v21, %v5586_v5  ;;  %v2641_v39 = vsub.f32 %v5213_v47, %v5586_v5  ;;  %v5599_v7 = vpop.eup %4012 }
 0x2a2   :  { %v2643_v19 = vsub.f32 %v5272_v61, %v5586_v5  ;;  %v2647_v6 = vsub.f32 %v5400_v12, %v5586_v5  ;;  %v2649_v23 = vsub.f32 %v5473_v35, %v5586_v5  ;;  %v5608_v25 = vpop.eup %4014  ;;  %v2651_v9 = vsub.f32 %v5512_v56, %v5586_v5 }
 0x2a3   :  { %v2933_v21 = vadd.f32 %v5570_v24, %v2923_v44  ;;  %v2894_v47 = vadd.f32 %v5599_v7, %v2884_v43  ;;  %v2653_v29 = vsub.f32 %v5579_v46, %v5586_v5  ;;  %v5616_v15 = vpop.eup %4016  ;;  %v2645_v61 = vsub.f32 %v5448_v3, %v5586_v5 }
 0x2a4   :  { %v2719_v12 = vmul.f32 1.442695, %v2639_v17  ;;  %v2723_v11 = vmul.f32 1.442695, %v2641_v39  ;;  %v5621_v35 = vadd.f32 %v4486_v32, %v2080_v10  ;;  %v5623_v26 = vpop.eup %4018  ;;  %v1365_v46 = vadd.f32 %v5536_v57, %v5534_v54  ;;  %v6470_v57 = vld [vmem:[#allocation31_spill] sm:$0xff] }
 0x2a5   :  { %v5626_v44 = vadd.f32 %v5574_v34, %v2933_v21  ;;  %v2904_v56 = vadd.f32 %v5608_v25, %v2894_v47  ;;  %v5629_v43 = vpop.eup %4020  ;;  %v2727_v3 = vmul.f32 1.442695, %v2643_v19  ;;  %v6467_v39 = vmax.f32 %v5577_v60, 0.0 }
 0x2a6   :  { %4024 = vpow2.f32 %v2719_v12  ;;  %v5633_v5 = vpop.xlane.xlu0 %2375  ;;  %v6469_v47 = vmax.f32 %v6468_v20, 0.0  ;;  %v2731_v37 = vmul.f32 1.442695, %v2645_v61  ;;  %v6471_v19 = vmax.f32 %v6470_v57, 0.0  ;;  %v5656_v61 = vpop.eup %4022 }
 0x2a7   :  { %v2914_v10 = vadd.f32 %v5616_v15, %v2904_v56  ;;  %v2320_v21 = vmul.f32 %v4518_v1, %v6467_v39  ;;  %v1990_v8 = vpop.f32.mrf.mxu1  ;;  %4026 = vpow2.f32 %v2723_v11  ;;  %v5645_v54 = vmax.f32 %v5558_v14, %v5633_v5  ;;  %v828_v14 = vpop.f32.mrf.mxu2 }
 0x2a8   :  { %v2963_v55 = vmul.f32 %v5538_v40, %v6469_v47  ;;  %v2973_v12 = vmul.f32 %v5544_v41, %v6471_v19  ;;  %v2735_v17 = vmul.f32 1.442695, %v2647_v6  ;;  %v2739_v60 = vmul.f32 1.442695, %v2649_v23 }
 0x2a9   :  { %v2924_v56 = vadd.f32 %v5623_v26, %v2914_v10  ;;  %v2542_v39 = vsel %vm97_vm1, %v2320_v21, 0.0  ;;  %4028 = vpow2.f32 %v2727_v3  ;;  %v2640_v20 = vsub.f32 %v5300_v48, %v5645_v54  ;;  %v1369_v48 = vpop.f32.mrf.mxu3 }
 0x2aa   :  { %2543 = vadd.xlane.f32.xlu0 %v2542_v39  ;;  %v2642_v11 = vsub.f32 %v5254_v28, %v5645_v54  ;;  %v2081_v40 = vadd.f32 %v1990_v8, %v1365_v46  ;;  %v2644_v6 = vsub.f32 %v5337_v18, %v5645_v54  ;;  %v2648_v23 = vsub.f32 %v5481_v63, %v5645_v54 }
 0x2ab   :  { %v2934_v41 = vadd.f32 %v5629_v43, %v2924_v56  ;;  %v6472_v3 = vmax.f32 %v5621_v35, 0.0  ;;  %4030 = vpow2.f32 %v2731_v37  ;;  %v2650_v28 = vsub.f32 %v5496_v42, %v5645_v54 }
 0x2ac   :  { %v5666_v21 = vpop.eup %4024  ;;  %v2652_v46 = vsub.f32 %v5542_v52, %v5645_v54  ;;  %v2646_v63 = vsub.f32 %v5371_v22, %v5645_v54  ;;  %v2721_v47 = vmul.f32 1.442695, %v2640_v20  ;;  %v2725_v57 = vmul.f32 1.442695, %v2642_v11 }
 0x2ad   :  { %v2321_v10 = vmul.f32 %v4499_v13, %v6472_v3  ;;  %v5675_v8 = vadd.f32 %v5656_v61, %v2934_v41  ;;  %v5679_v19 = vpop.eup %4026  ;;  %4032 = vpow2.f32 %v2735_v17  ;;  %v2743_v37 = vmul.f32 1.442695, %v2651_v9 }
 0x2ae   :  { %v1368_v42 = vadd.f32 %v1367_v4, %v5590_v36  ;;  %4034 = vpow2.f32 %v2739_v60  ;;  %v2879_v52 = vadd.f32 %v5679_v19, %v5666_v21  ;;  %v2729_v56 = vmul.f32 1.442695, %v2644_v6 }
 0x2af   :  { %v1993_v39 = vpop.f32.mrf.mxu1  ;;  %v2983_v3 = vadd.f32 %v2973_v12, %v2963_v55  ;;  %v5684_v41 = vpop.eup %4028  ;;  %v2747_v18 = vmul.f32 1.442695, %v2653_v29  ;;  %4036 = vpow2.f32 %v2721_v47  ;;  %v5687_v22 = vadd.f32 %v4486_v32, %v2081_v40 }
 0x2b0   :  { %v2545_v20 = vsel %vm97_vm1, %v2321_v10, 0.0  ;;  %v2889_v9 = vadd.f32 %v5684_v41, %v2879_v52  ;;  %4038 = vpow2.f32 %v2725_v57  ;;  %v2733_v36 = vmul.f32 1.442695, %v2646_v63 }
 0x2b1   :  { %2546 = vadd.xlane.f32.xlu2 %v2545_v20  ;;  %v1370_v60 = vadd.f32 %v1369_v48, %v828_v14  ;;  %v5691_v4 = vpop.eup %4030  ;;  %4040 = vpow2.f32 %v2743_v37  ;;  %v2242_v55 = vmax.f32 %v5687_v22, 0.0  ;;  %v2082_v17 = vadd.f32 %v1993_v39, %v1368_v42  ;;  %v831_v48 = vpop.f32.mrf.mxu2 }
 0x2b2   :  { %v6473_v29 = vmax.f32 %v4796_v27, 0.0  ;;  %v2899_v11 = vadd.f32 %v5691_v4, %v2889_v9  ;;  %4042 = vpow2.f32 %v2729_v56  ;;  %v2737_v40 = vmul.f32 1.442695, %v2648_v23  ;;  %v1372_v57 = vpop.f32.mrf.mxu3 }
 0x2b3   :  { %v6474_v6 = vmax.f32 %v4843_v53, 0.0  ;;  %v5701_v63 = vpop.eup %4032  ;;  %4044 = vpow2.f32 %v2747_v18  ;;  %v5704_v14 = vadd.f32 %v4486_v32, %v2082_v17  ;;  %v2322_v27 = vmul.f32 %v4518_v1, %v2242_v55 }
 0x2b4   :  { %v2993_v12 = vmul.f32 %v5546_v33, %v6473_v29  ;;  %v5709_v47 = vpop.eup %4034  ;;  %v2909_v23 = vadd.f32 %v5701_v63, %v2899_v11  ;;  %4046 = vpow2.f32 %v2733_v36  ;;  %v2741_v53 = vmul.f32 1.442695, %v2650_v28 }
 0x2b5   :  { %v3013_v10 = vmul.f32 %v5552_v30, %v6474_v6  ;;  %v6475_v30 = vmax.f32 %v4891_v51, 0.0  ;;  %v5715_v37 = vpop.eup %4036  ;;  %4048 = vrcp.f32 %v5626_v44  ;;  %v2243_v42 = vmax.f32 %v5704_v14, 0.0 }
 0x2b6   :  { %v3003_v33 = vadd.f32 %v2993_v12, %v2983_v3  ;;  %v2548_v52 = vsel %vm97_vm1, %v2322_v27, 0.0  ;;  %v5720_v39 = vpop.eup %4038  ;;  %v2919_v3 = vadd.f32 %v5709_v47, %v2909_v23  ;;  %4050 = vpow2.f32 %v2737_v40 }
 0x2b7   :  { %v3033_v18 = vmul.f32 %v5560_v38, %v6475_v30  ;;  %v2745_v28 = vmul.f32 1.442695, %v2652_v46  ;;  %2549 = vadd.xlane.f32.xlu0 %v2548_v52  ;;  %v1995_v20 = vpop.f32.mrf.mxu1  ;;  %v6476_v51 = vmax.f32 %v4942_v16, 0.0  ;;  %v5726_v9 = vpop.eup %4040  ;;  %v2880_v44 = vadd.f32 %v5720_v39, %v5715_v37 }
 0x2b8   :  { %v3023_v56 = vadd.f32 %v3013_v10, %v3003_v33  ;;  %v2083_v36 = vadd.f32 %v1995_v20, %v1370_v60  ;;  %v2323_v17 = vmul.f32 %v4499_v13, %v2243_v42  ;;  %v5733_v12 = vpop.eup %4042  ;;  %v2929_v46 = vadd.f32 %v5726_v9, %v2919_v3  ;;  %v5745_v10 = vpop.xlane.xlu0 %2480  ;;  %v6480_v3 = vld [vmem:[#allocation30_spill] sm:$0xff] }
 0x2b9   :  { %v3053_v38 = vmul.f32 %v5566_v58, %v6476_v51  ;;  %4052 = vpow2.f32 %v2741_v53  ;;  %v6477_v16 = vsub.f32 %v5633_v5, %v5645_v54  ;;  %v6478_v11 = vmax.f32 %v4993_v0, 0.0  ;;  %v5742_v6 = vpop.eup %4044 }
 0x2ba   :  { %v3043_v29 = vadd.f32 %v3033_v18, %v3023_v56  ;;  %v2890_v60 = vadd.f32 %v5733_v12, %v2880_v44  ;;  %v5748_v27 = vadd.f32 %v4486_v32, %v2083_v36  ;;  %v2551_v33 = vsel %vm97_vm1, %v2323_v17, 0.0  ;;  %v5751_v53 = vpop.eup %4046  ;;  %v1374_v17 = vpop.f32.mrf.mxu3 }
 0x2bb   :  { %v2749_v58 = vmul.f32 1.442695, %v6477_v16  ;;  %v3073_v40 = vmul.f32 %v5570_v24, %v6478_v11  ;;  %v5754_v5 = vadd.f32 %v5742_v6, %v2929_v46  ;;  %4054 = vpow2.f32 %v2745_v28  ;;  %2552 = vadd.xlane.f32.xlu2 %v2551_v33  ;;  %v4049_v30 = vpop.eup %4048 }
 0x2bc   :  { %v3063_v23 = vadd.f32 %v3053_v38, %v3043_v29  ;;  %v1373_v0 = vadd.f32 %v1372_v57, %v831_v48  ;;  %v6479_v24 = vmax.f32 %v5045_v31, 0.0  ;;  %v2900_v18 = vadd.f32 %v5751_v53, %v2890_v60  ;;  %v5764_v38 = vpop.eup %4050 }
 0x2bd   :  { %v2244_v52 = vmax.f32 %v5748_v27, 0.0  ;;  %v6481_v20 = vmax.f32 %v6480_v3, 0.0  ;;  %4056 = vpow2.f32 %v2749_v58  ;;  %v6482_v48 = vmax.f32 %v4776_v59, 0.0 }
 0x2be   :  { %v3093_v54 = vmul.f32 %v5574_v34, %v6479_v24  ;;  %v3083_v56 = vadd.f32 %v3073_v40, %v3063_v23  ;;  %v2910_v31 = vadd.f32 %v5764_v38, %v2900_v18  ;;  %v833_v34 = vpop.f32.mrf.mxu2  ;;  %v6483_v46 = vmax.f32 %v4822_v49, 0.0 }
 0x2bf   :  { %v2964_v51 = vmul.f32 %v5581_v45, %v6481_v20  ;;  %v2974_v57 = vmul.f32 %v5588_v62, %v6482_v48  ;;  %v2324_v28 = vmul.f32 %v4518_v1, %v2244_v52  ;;  %v5773_v36 = vpop.eup %4052  ;;  %v1998_v29 = vpop.f32.mrf.mxu1  ;;  %v6484_v33 = vmax.f32 %v4868_v50, 0.0  ;;  %v6488_v20 = vld [vmem:[#allocation33_spill] sm:$0xff] }
 0x2c0   :  { %v3103_v44 = vadd.f32 %v3093_v54, %v3083_v56  ;;  %v2994_v16 = vmul.f32 %v5599_v7, %v6483_v46  ;;  %v2920_v59 = vadd.f32 %v5773_v36, %v2910_v31  ;;  %v2084_v62 = vadd.f32 %v1998_v29, %v1373_v0  ;;  %v5788_v49 = vpop.xlane.xlu0 %2510  ;;  %v6486_v56 = vld [vmem:[#allocation38_spill] sm:$0xff]  ;;  %v6490_v31 = vld [vmem:[#allocation41_spill] sm:$0xff]  ;;  %v6492_v29 = vld [vmem:[#allocation35_spill] sm:$0xff]  ;;  %v5813_v46 = vpop.xlane.xlu1 %2474 }
 0x2c1   :  { %v2984_v45 = vadd.f32 %v2974_v57, %v2964_v51  ;;  %v2554_v58 = vsel %vm97_vm1, %v2324_v28, 0.0  ;;  %v5782_v40 = vpop.eup %4054  ;;  %v3014_v23 = vmul.f32 %v5608_v25, %v6484_v33  ;;  %v6485_v0 = vmax.f32 %v4765_v2, 0.0 }
 0x2c2   :  { %v5780_v11 = vmul.f32 %v4049_v30, %v3103_v44  ;;  %2555 = vadd.xlane.f32.xlu0 %v2554_v58  ;;  %v2930_v24 = vadd.f32 %v5782_v40, %v2920_v59  ;;  %v5791_v7 = vadd.f32 %v4486_v32, %v2084_v62  ;;  %v6487_v3 = vmax.f32 %v6486_v56, 0.0 }
 0x2c3   :  { %v3004_v60 = vadd.f32 %v2994_v16, %v2984_v45  ;;  %v2959_v54 = vmul.f32 %v5666_v21, %v6485_v0  ;;  %v5796_v30 = vpop.eup %4056  ;;  %v6489_v25 = vmax.f32 %v6488_v20, 0.0  ;;  %4058 = vrcp.f32 %v5675_v8  ;;  %v6498_v0 = vld [vmem:[#allocation32_spill] sm:$0xff] }
 0x2c4   :  { %v3034_v50 = vmul.f32 %v5616_v15, %v6487_v3  ;;  %v2940_v48 = vadd.f32 %v5796_v30, %v2930_v24  ;;  %v2245_v57 = vmax.f32 %v5791_v7, 0.0  ;;  %v6491_v21 = vmax.f32 %v6490_v31, 0.0  ;;  %v6504_v31 = vld [vmem:[#allocation40_spill] sm:$0xff] }
 0x2c5   :  { %v3024_v18 = vadd.f32 %v3014_v23, %v3004_v60  ;;  %v2969_v51 = vmul.f32 %v5679_v19, %v6489_v25  ;;  %v6493_v45 = vmax.f32 %v6492_v29, 0.0  ;;  %v1375_v16 = vadd.f32 %v1374_v17, %v833_v34  ;;  %v6494_v19 = vld [vmem:[#allocation44_spill] sm:$0xff] }
 0x2c6   :  { %v3054_v28 = vmul.f32 %v5623_v26, %v6491_v21  ;;  %v2325_v8 = vmul.f32 %v4499_v13, %v2245_v57  ;;  %v6495_v59 = vmax.f32 %v6494_v19, 0.0  ;;  %v6496_v26 = vld [vmem:[#allocation37_spill] sm:$0xff]  ;;  %v6502_v25 = vld [vmem:[#allocation48_spill] sm:$0xff]  ;;  %v6505_v21 = vmax.f32 %v6504_v31, 0.0  ;;  %v6508_v19 = vld [vmem:[#allocation43_spill] sm:$0xff] }
 0x2c7   :  { %v3044_v2 = vadd.f32 %v3034_v50, %v3024_v18  ;;  %v2979_v44 = vadd.f32 %v2969_v51, %v2959_v54  ;;  %v2989_v15 = vmul.f32 %v5684_v41, %v6493_v45  ;;  %v2000_v58 = vpop.f32.mrf.mxu1  ;;  %v6497_v23 = vmax.f32 %v6496_v26, 0.0  ;;  %v6500_v18 = vld [vmem:[#allocation34_spill] sm:$0xff]  ;;  %v836_v50 = vpop.f32.mrf.mxu2  ;;  %v6506_v45 = vld [vmem:[#allocation36_spill] sm:$0xff] }
 0x2c8   :  { %v3074_v62 = vmul.f32 %v5629_v43, %v6495_v59  ;;  %v6499_v41 = vmax.f32 %v6498_v0, 0.0  ;;  %v2085_v34 = vadd.f32 %v2000_v58, %v1375_v16  ;;  %v2557_v17 = vsel %vm97_vm1, %v2325_v8, 0.0  ;;  %v1377_v43 = vpop.f32.mrf.mxu3  ;;  %v6512_v0 = vld [vmem:[#allocation46_spill] sm:$0xff] }
 0x2c9   :  { %v3064_v60 = vadd.f32 %v3054_v28, %v3044_v2  ;;  %v2999_v33 = vadd.f32 %v2989_v15, %v2979_v44  ;;  %v3009_v24 = vmul.f32 %v5691_v4, %v6497_v23  ;;  %v6501_v56 = vmax.f32 %v6500_v18, 0.0  ;;  %2558 = vadd.xlane.f32.xlu2 %v2557_v17  ;;  %v4059_v28 = vpop.eup %4058  ;;  %v6514_v17 = vld [vmem:[#allocation42_spill] sm:$0xff] }
 0x2ca   :  { %v2960_v54 = vmul.f32 %v5715_v37, %v6499_v41  ;;  %v6503_v51 = vmax.f32 %v6502_v25, 0.0  ;;  %v3029_v37 = vmul.f32 %v5701_v63, %v6505_v21  ;;  %4060 = vrcp.f32 %v5754_v5 }
 0x2cb   :  { %v2970_v3 = vmul.f32 %v5720_v39, %v6501_v56  ;;  %v3084_v20 = vadd.f32 %v3074_v62, %v3064_v60  ;;  %v3019_v4 = vadd.f32 %v3009_v24, %v2999_v33  ;;  %v5839_v44 = vadd.f32 %v4486_v32, %v2085_v34  ;;  %v5841_v39 = vpop.xlane.xlu0 %2492  ;;  %v6510_v60 = vld [vmem:[#allocation39_spill] sm:$0xff] }
 0x2cc   :  { %v3094_v2 = vmul.f32 %v5656_v61, %v6503_v51  ;;  %v6507_v15 = vmax.f32 %v6506_v45, 0.0  ;;  %v6509_v59 = vmax.f32 %v6508_v19, 0.0  ;;  %v1378_v63 = vadd.f32 %v1377_v43, %v836_v50  ;;  %v6516_v50 = vld [vmem:[#allocation8_spill] sm:$0xff] }
 0x2cd   :  { %v2980_v29 = vadd.f32 %v2970_v3, %v2960_v54  ;;  %v3039_v61 = vadd.f32 %v3029_v37, %v3019_v4  ;;  %v2246_v58 = vmax.f32 %v5839_v44, 0.0  ;;  %v6511_v33 = vmax.f32 %v6510_v60, 0.0  ;;  %v5858_v54 = vpop.xlane.xlu1 %2378  ;;  %v6518_v4 = vld [vmem:[#allocation45_spill] sm:$0xff] }
 0x2ce   :  { %v2990_v16 = vmul.f32 %v5733_v12, %v6507_v15  ;;  %v3104_v8 = vadd.f32 %v3094_v2, %v3084_v20  ;;  %v3049_v62 = vmul.f32 %v5709_v47, %v6509_v59  ;;  %v6513_v41 = vmax.f32 %v6512_v0, 0.0 }
 0x2cf   :  { %v3010_v26 = vmul.f32 %v5751_v53, %v6511_v33  ;;  %v2326_v47 = vmul.f32 %v4518_v1, %v2246_v58  ;;  %v6515_v18 = vmax.f32 %v6514_v17, 0.0  ;;  %4062 = vrcp.f32 %v2940_v48  ;;  %v2003_v53 = vpop.f32.mrf.mxu1  ;;  %v838_v15 = vpop.f32.mrf.mxu2 }
 0x2d0   :  { %v3000_v5 = vadd.f32 %v2990_v16, %v2980_v29  ;;  %v5853_v23 = vmul.f32 %v4059_v28, %v3104_v8  ;;  %v3059_v24 = vadd.f32 %v3049_v62, %v3039_v61  ;;  %v3069_v12 = vmul.f32 %v5726_v9, %v6513_v41  ;;  %v4061_v25 = vpop.eup %4060  ;;  %v6520_v29 = vld [vmem:[#allocation51_spill] sm:$0xff]  ;;  %v1379_v16 = vpop.f32.mrf.mxu3 }
 0x2d1   :  { %v3030_v56 = vmul.f32 %v5764_v38, %v6515_v18  ;;  %v6517_v43 = vmax.f32 %v6516_v50, 0.0  ;;  %v2086_v9 = vadd.f32 %v2003_v53, %v1378_v63  ;;  %v2560_v51 = vsel %vm97_vm1, %v2326_v47, 0.0  ;;  %v6524_v47 = vld [vmem:[#allocation24_spill] sm:$0xff] }
 0x2d2   :  { %v3020_v34 = vadd.f32 %v3010_v26, %v3000_v5  ;;  %v3079_v3 = vadd.f32 %v3069_v12, %v3059_v24  ;;  %v6519_v31 = vmax.f32 %v6518_v4, 0.0  ;;  %2561 = vadd.xlane.f32.xlu0 %v2560_v51  ;;  %v6521_v45 = vmax.f32 %v6520_v29, 0.0 }
 0x2d3   :  { %v3089_v20 = vmul.f32 %v5742_v6, %v6517_v43  ;;  %v5874_v38 = vadd.f32 %v4486_v32, %v2086_v9  ;;  %v5876_v48 = vpop.xlane.xlu0 %2516  ;;  %v1380_v5 = vadd.f32 %v1379_v16, %v838_v15  ;;  %v2575_v43 = vmax.f32 %v5813_v46, %v5745_v10 }
 0x2d4   :  { %v3040_v2 = vadd.f32 %v3030_v56, %v3020_v34  ;;  %v3050_v21 = vmul.f32 %v5773_v36, %v6519_v31  ;;  %v3070_v6 = vmul.f32 %v5782_v40, %v6521_v45  ;;  %v6522_v36 = vld [vmem:[#allocation9_spill] sm:$0xff]  ;;  %v5900_v34 = vadd.f32 %v4486_v32, %v6524_v47 }
 0x2d5   :  { %v3099_v37 = vadd.f32 %v3089_v20, %v3079_v3  ;;  %v2247_v61 = vmax.f32 %v5874_v38, 0.0  ;;  %v6523_v59 = vmax.f32 %v6522_v36, 0.0  ;;  %v4063_v63 = vpop.eup %4062  ;;  %v5890_v40 = vpop.xlane.xlu1 %2483  ;;  %v6525_v20 = vld [vmem:[#allocation25_spill] sm:$0xff] }
 0x2d6   :  { %v3060_v28 = vadd.f32 %v3050_v21, %v3040_v2  ;;  %v2199_v56 = vmax.f32 %v5900_v34, 0.0 }
 0x2d7   :  { %v5881_v8 = vmul.f32 %v4061_v25, %v3099_v37  ;;  %v3090_v62 = vmul.f32 %v5796_v30, %v6523_v59  ;;  %v2327_v60 = vmul.f32 %v4499_v13, %v2247_v61  ;;  %v2005_v26 = vpop.f32.mrf.mxu1  ;;  %v5914_v25 = vadd.f32 %v4486_v32, %v6525_v20  ;;  %v6528_v20 = vld [vmem:[#allocation60_spill] sm:$0xff] }
 0x2d8   :  { %v3080_v19 = vadd.f32 %v3070_v6, %v3060_v28  ;;  %v2087_v24 = vadd.f32 %v2005_v26, %v1380_v5  ;;  %v2279_v9 = vmul.f32 %v4499_v13, %v2199_v56 }
 0x2d9   :  { %v2563_v0 = vsel %vm97_vm1, %v2327_v60, 0.0  ;;  %v2200_v4 = vmax.f32 %v5914_v25, 0.0 }
 0x2da   :  { %v3100_v33 = vadd.f32 %v3090_v62, %v3080_v19  ;;  %2564 = vadd.xlane.f32.xlu1 %v2563_v0  ;;  %v5896_v12 = vadd.f32 %v4486_v32, %v2087_v24  ;;  %v2419_v31 = vsel %vm97_vm1, %v2279_v9, 0.0  ;;  %v6529_v9 = vmax.f32 %v6528_v20, 0.0  ;;  %v6540_v20 = vld [vmem:[#allocation67_spill] sm:$0xff] }
 0x2db   :  { %v2499_v30 = vpop.xlane.xlu0 %2498  ;;  %v2280_v32 = vmul.f32 %v4518_v1, %v2200_v4 }
 0x2dc   :  { %v5893_v41 = vmul.f32 %v4063_v63, %v3100_v33  ;;  %v2248_v17 = vmax.f32 %v5896_v12, 0.0 }
 0x2dd   :  { %v2487_v3 = vpop.xlane.xlu1 %2486 }
 0x2de   :  { %v2328_v18 = vmul.f32 %v4518_v1, %v2248_v17  ;;  %v2585_v51 = vmax.f32 %v2575_v43, %v2487_v3 }
 0x2e0   :  { %v2566_v53 = vsel %vm97_vm1, %v2328_v18, 0.0  ;;  %v2595_v2 = vmax.f32 %v2585_v51, %v5841_v39 }
 0x2e1   :  { %2567 = vadd.xlane.f32.xlu2 %v2566_v53 }
 0x2e2   :  { %v2605_v21 = vmax.f32 %v2595_v2, %v2499_v30 }
 0x2e3   :  { %v5908_v50 = vpop.xlane.xlu0 %2522 }
 0x2e5   :  { %v5929_v6 = vpop.xlane.xlu1 %2513 }
 0x2e6   :  { %3121 = vrot.lane.b32.xlu0 %v4499_v13, %s4246_s2  ;;  %v2422_v13 = vsel %vm97_vm1, %v2280_v32, 0.0 }
 0x2e9   :  { %2420 = vadd.xlane.f32.xlu2 %v2419_v31 }
 0x2eb   :  { %v2505_v37 = vpop.xlane.xlu0 %2504 }
 0x2ec   :  { %v2615_v28 = vmax.f32 %v2605_v21, %v2505_v37 }
 0x2ed   :  { %v5937_v24 = vpop.xlane.xlu1 %2495 }
 0x2ee   :  { %v2625_v29 = vmax.f32 %v2615_v28, %v5788_v49 }
 0x2f0   :  { %v2635_v45 = vmax.f32 %v2625_v29, %v5876_v48 }
 0x2f1   :  { %2423 = vadd.xlane.f32.xlu2 %v2422_v13 }
 0x2f2   :  { %v2687_v15 = vsub.f32 %v5813_v46, %v2635_v45  ;;  %v2689_v16 = vsub.f32 %v5745_v10, %v2635_v45  ;;  %v2691_v19 = vsub.f32 %v2487_v3, %v2635_v45  ;;  %v2693_v36 = vsub.f32 %v5841_v39, %v2635_v45 }
 0x2f3   :  { %v2699_v59 = vsub.f32 %v5788_v49, %v2635_v45  ;;  %3123 = vrot.lane.b32.xlu1 %v4518_v1, %s4246_s2  ;;  %v2695_v5 = vsub.f32 %v2499_v30, %v2635_v45  ;;  %v2701_v33 = vsub.f32 %v5876_v48, %v2635_v45  ;;  %v2697_v26 = vsub.f32 %v2505_v37, %v2635_v45  ;;  %v6526_v48 = vld [vmem:[#allocation53_spill] sm:$0xff]  ;;  %v6530_v37 = vld [vmem:[#allocation11_spill] sm:$0xff] }
 0x2f4   :  { %v2815_v62 = vmul.f32 1.442695, %v2687_v15  ;;  %v2819_v63 = vmul.f32 1.442695, %v2689_v16  ;;  %v2823_v60 = vmul.f32 1.442695, %v2691_v19 }
 0x2f5   :  { %v2827_v46 = vmul.f32 1.442695, %v2693_v36  ;;  %v2831_v10 = vmul.f32 1.442695, %v2695_v5  ;;  %v2835_v39 = vmul.f32 1.442695, %v2697_v26  ;;  %v5945_v45 = vpop.xlane.xlu1 %2519 }
 0x2f6   :  { %4064 = vpow2.f32 %v2815_v62  ;;  %v2839_v1 = vmul.f32 1.442695, %v2699_v59  ;;  %v2843_v30 = vmul.f32 1.442695, %v2701_v33  ;;  %v6527_v3 = vmax.f32 %v6526_v48, 0.0  ;;  %v6532_v16 = vld [vmem:[#allocation66_spill] sm:$0xff] }
 0x2f7   :  { %4066 = vpow2.f32 %v2819_v63  ;;  %v6531_v28 = vmax.f32 %v6530_v37, 0.0  ;;  %v6533_v19 = vmax.f32 %v6532_v16, 0.0  ;;  %v6534_v5 = vld [vmem:[#allocation70_spill] sm:$0xff] }
 0x2f8   :  { %4068 = vpow2.f32 %v2823_v60  ;;  %v6535_v60 = vmax.f32 %v6534_v5, 0.0  ;;  %v5968_v5 = vpop.xlane.xlu0 %2531 }
 0x2f9   :  { %4070 = vpow2.f32 %v2827_v46 }
 0x2fa   :  { %4072 = vpow2.f32 %v2831_v10  ;;  %v6536_v10 = vld [vmem:[#allocation74_spill] sm:$0xff] }
 0x2fb   :  { %4074 = vpow2.f32 %v2835_v39  ;;  %v6537_v39 = vmax.f32 %v6536_v10, 0.0 }
 0x2fc   :  { %v4065_v0 = vpop.eup %4064  ;;  %4076 = vpow2.f32 %v2839_v1 }
 0x2fd   :  { %v4067_v49 = vpop.eup %4066  ;;  %v2965_v43 = vmul.f32 %v4065_v0, %v6527_v3  ;;  %4078 = vpow2.f32 %v2843_v30  ;;  %v6538_v30 = vld [vmem:[#allocation63_spill] sm:$0xff] }
 0x2fe   :  { %v2885_v47 = vadd.f32 %v4067_v49, %v4065_v0  ;;  %v4069_v18 = vpop.eup %4068  ;;  %v2975_v51 = vmul.f32 %v4067_v49, %v6529_v9  ;;  %v6541_v9 = vmax.f32 %v6540_v20, 0.0 }
 0x2ff   :  { %v4071_v2 = vpop.eup %4070  ;;  %v2995_v32 = vmul.f32 %v4069_v18, %v6531_v28 }
 0x300   :  { %v2895_v53 = vadd.f32 %v4069_v18, %v2885_v47  ;;  %v2985_v21 = vadd.f32 %v2975_v51, %v2965_v43  ;;  %v4073_v29 = vpop.eup %4072  ;;  %v3015_v36 = vmul.f32 %v4071_v2, %v6533_v19  ;;  %v2478_v47 = vpop.xlane.xlu2 %2477 }
 0x301   :  { %v4075_v59 = vpop.eup %4074  ;;  %v3035_v33 = vmul.f32 %v4073_v29, %v6535_v60 }
 0x302   :  { %v2905_v31 = vadd.f32 %v4071_v2, %v2895_v53  ;;  %v3005_v15 = vadd.f32 %v2995_v32, %v2985_v21  ;;  %v4077_v26 = vpop.eup %4076  ;;  %v3055_v0 = vmul.f32 %v4075_v59, %v6537_v39  ;;  %v6539_v53 = vmax.f32 %v6538_v30, 0.0  ;;  %v2502_v2 = vpop.xlane.xlu1 %2501 }
 0x303   :  { %v4079_v1 = vpop.eup %4078 }
 0x304   :  { %v2915_v13 = vadd.f32 %v4073_v29, %v2905_v31  ;;  %v3025_v63 = vadd.f32 %v3015_v36, %v3005_v15  ;;  %v3075_v48 = vmul.f32 %v4077_v26, %v6539_v53  ;;  %v3095_v51 = vmul.f32 %v4079_v1, %v6541_v9 }
 0x306   :  { %v2925_v62 = vadd.f32 %v4075_v59, %v2915_v13  ;;  %v3045_v49 = vadd.f32 %v3035_v33, %v3025_v63  ;;  %v2576_v13 = vmax.f32 %v2478_v47, %v5890_v40 }
 0x308   :  { %v2935_v46 = vadd.f32 %v4077_v26, %v2925_v62  ;;  %v3065_v18 = vadd.f32 %v3055_v0, %v3045_v49  ;;  %v5957_v21 = vpop.xlane.xlu2 %2381 }
 0x30a   :  { %v2945_v3 = vadd.f32 %v4079_v1, %v2935_v46  ;;  %v3085_v43 = vadd.f32 %v3075_v48, %v3065_v18  ;;  %v5961_v32 = vpop.xlane.xlu1 %2525  ;;  %v5973_v46 = vpop.xlane.xlu0 %2537 }
 0x30c   :  { %4080 = vrcp.f32 %v2945_v3  ;;  %v3105_v31 = vadd.f32 %v3095_v51, %v3085_v43 }
 0x310   :  { %v2490_v29 = vpop.xlane.xlu2 %2489 }
 0x311   :  { %v2586_v15 = vmax.f32 %v2576_v13, %v2490_v29 }
 0x312   :  { %v4081_v37 = vpop.eup %4080  ;;  %v2508_v36 = vpop.xlane.xlu1 %2507 }
 0x313   :  { %v5959_v28 = vmul.f32 %v4081_v37, %v3105_v31  ;;  %v2596_v16 = vmax.f32 %v2586_v15, %v5937_v24 }
 0x315   :  { %v2606_v59 = vmax.f32 %v2596_v16, %v2502_v2 }
 0x317   :  { %v2616_v62 = vmax.f32 %v2606_v59, %v2508_v36 }
 0x318   :  { %v5965_v19 = vpop.xlane.xlu2 %2528 }
 0x319   :  { %v2626_v63 = vmax.f32 %v2616_v62, %v5929_v6  ;;  %v2577_v51 = vmax.f32 %v5908_v50, %v5965_v19 }
 0x31b   :  { %v2636_v33 = vmax.f32 %v2626_v63, %v5945_v45 }
 0x31d   :  { %v2688_v26 = vsub.f32 %v2478_v47, %v2636_v33  ;;  %v2690_v39 = vsub.f32 %v5890_v40, %v2636_v33  ;;  %v2692_v1 = vsub.f32 %v2490_v29, %v2636_v33  ;;  %v5978_v18 = vpop.xlane.xlu0 %2543  ;;  %v2694_v53 = vsub.f32 %v5937_v24, %v2636_v33 }
 0x31e   :  { %v2696_v43 = vsub.f32 %v2502_v2, %v2636_v33  ;;  %v2698_v13 = vsub.f32 %v2508_v36, %v2636_v33  ;;  %v2700_v59 = vsub.f32 %v5929_v6, %v2636_v33  ;;  %v2702_v6 = vsub.f32 %v5945_v45, %v2636_v33 }
 0x31f   :  { %v2817_v0 = vmul.f32 1.442695, %v2688_v26  ;;  %v2821_v49 = vmul.f32 1.442695, %v2690_v39  ;;  %v2825_v48 = vmul.f32 1.442695, %v2692_v1 }
 0x320   :  { %v5970_v60 = vpop.xlane.xlu2 %2534  ;;  %v2829_v20 = vmul.f32 1.442695, %v2694_v53  ;;  %v2833_v37 = vmul.f32 1.442695, %v2696_v43  ;;  %v2837_v62 = vmul.f32 1.442695, %v2698_v13 }
 0x321   :  { %4082 = vpow2.f32 %v2817_v0  ;;  %v2587_v29 = vmax.f32 %v2577_v51, %v5970_v60  ;;  %v2578_v0 = vmax.f32 %v5961_v32, %v5968_v5 }
 0x322   :  { %4084 = vpow2.f32 %v2821_v49  ;;  %v6542_v49 = vld [vmem:[#allocation57_spill] sm:$0xff] }
 0x323   :  { %4086 = vpow2.f32 %v2825_v48  ;;  %v6543_v1 = vmax.f32 %v6542_v49, 0.0  ;;  %v6544_v48 = vld [vmem:[#allocation62_spill] sm:$0xff] }
 0x324   :  { %4088 = vpow2.f32 %v2829_v20  ;;  %v6545_v43 = vmax.f32 %v6544_v48, 0.0 }
 0x325   :  { %4090 = vpow2.f32 %v2833_v37 }
 0x326   :  { %4092 = vpow2.f32 %v2837_v62 }
 0x327   :  { %v4083_v3 = vpop.eup %4082 }
 0x328   :  { %v5975_v10 = vpop.xlane.xlu2 %2540  ;;  %v4085_v47 = vpop.eup %4084  ;;  %v2966_v53 = vmul.f32 %v4083_v3, %v6543_v1 }
 0x329   :  { %v2886_v31 = vadd.f32 %v4085_v47, %v4083_v3  ;;  %v4087_v24 = vpop.eup %4086  ;;  %v2597_v15 = vmax.f32 %v2587_v29, %v5975_v10  ;;  %v2976_v20 = vmul.f32 %v4085_v47, %v6545_v43  ;;  %v2841_v29 = vmul.f32 1.442695, %v2700_v59 }
 0x32a   :  { %v5983_v9 = vpop.xlane.xlu0 %2549  ;;  %v4089_v39 = vpop.eup %4088  ;;  %v2845_v47 = vmul.f32 1.442695, %v2702_v6 }
 0x32b   :  { %v2896_v16 = vadd.f32 %v4087_v24, %v2886_v31  ;;  %v2588_v31 = vmax.f32 %v2578_v0, %v5973_v46  ;;  %v2986_v3 = vadd.f32 %v2976_v20, %v2966_v53  ;;  %4094 = vpow2.f32 %v2841_v29 }
 0x32c   :  { %4096 = vpow2.f32 %v2845_v47 }
 0x32d   :  { %v2906_v51 = vadd.f32 %v4089_v39, %v2896_v16  ;;  %v6546_v16 = vld [vmem:[#allocation64_spill] sm:$0xff] }
 0x32e   :  { %v6547_v48 = vmax.f32 %v6546_v16, 0.0 }
 0x330   :  { %v5980_v30 = vpop.xlane.xlu2 %2546  ;;  %v2996_v45 = vmul.f32 %v4087_v24, %v6547_v48 }
 0x331   :  { %v2607_v2 = vmax.f32 %v2597_v15, %v5980_v30  ;;  %v4091_v15 = vpop.eup %4090 }
 0x332   :  { %v2916_v1 = vadd.f32 %v4091_v15, %v2906_v51  ;;  %v3006_v51 = vadd.f32 %v2996_v45, %v2986_v3  ;;  %v4093_v24 = vpop.eup %4092 }
 0x335   :  { %v5993_v63 = vpop.xlane.xlu0 %2555 }
 0x338   :  { %v5985_v40 = vpop.xlane.xlu2 %2552 }
 0x339   :  { %v2617_v36 = vmax.f32 %v2607_v2, %v5985_v40  ;;  %v2598_v2 = vmax.f32 %v2588_v31, %v5978_v18 }
 0x33b   :  { %v2608_v33 = vmax.f32 %v2598_v2, %v5983_v9 }
 0x33d   :  { %v2618_v53 = vmax.f32 %v2608_v33, %v5993_v63 }
 0x340   :  { %v5995_v26 = vpop.xlane.xlu2 %2558 }
 0x341   :  { %v2627_v37 = vmax.f32 %v2617_v36, %v5995_v26 }
 0x345   :  { %v6022_v36 = vpop.xlane.xlu0 %2561 }
 0x34d   :  { %v6007_v13 = vpop.xlane.xlu1 %2564 }
 0x34e   :  { %v6011_v49 = vmax.f32 %v2627_v37, %v6007_v13  ;;  %v6548_v37 = vld [vmem:[#allocation68_spill] sm:$0xff] }
 0x350   :  { %v2703_v62 = vsub.f32 %v5908_v50, %v6011_v49  ;;  %v2705_v59 = vsub.f32 %v5965_v19, %v6011_v49  ;;  %v2707_v0 = vsub.f32 %v5970_v60, %v6011_v49  ;;  %v2709_v6 = vsub.f32 %v5975_v10, %v6011_v49  ;;  %v4095_v10 = vpop.eup %4094 }
 0x351   :  { %v2926_v50 = vadd.f32 %v4093_v24, %v2916_v1  ;;  %v2628_v19 = vmax.f32 %v2618_v53, %v6022_v36  ;;  %v6549_v60 = vmax.f32 %v6548_v37, 0.0  ;;  %v2711_v16 = vsub.f32 %v5980_v30, %v6011_v49  ;;  %v6550_v1 = vld [vmem:[#allocation72_spill] sm:$0xff] }
 0x352   :  { %v2847_v43 = vmul.f32 1.442695, %v2703_v62  ;;  %v2851_v20 = vmul.f32 1.442695, %v2705_v59  ;;  %v2855_v31 = vmul.f32 1.442695, %v2707_v0  ;;  %v4097_v0 = vpop.eup %4096 }
 0x353   :  { %v3016_v29 = vmul.f32 %v4089_v39, %v6549_v60  ;;  %v2859_v47 = vmul.f32 1.442695, %v2709_v6  ;;  %v6551_v45 = vmax.f32 %v6550_v1, 0.0  ;;  %v2936_v62 = vadd.f32 %v4095_v10, %v2926_v50 }
 0x354   :  { %4098 = vpow2.f32 %v2847_v43  ;;  %v6030_v2 = vpop.xlane.xlu2 %2567  ;;  %v2715_v1 = vsub.f32 %v5995_v26, %v6011_v49  ;;  %v2717_v26 = vsub.f32 %v6007_v13, %v6011_v49 }
 0x355   :  { %4100 = vpow2.f32 %v2851_v20  ;;  %v6035_v3 = vmax.f32 %v2628_v19, %v6030_v2  ;;  %v3026_v48 = vadd.f32 %v3016_v29, %v3006_v51  ;;  %v3036_v33 = vmul.f32 %v4091_v15, %v6551_v45  ;;  %v6552_v20 = vld [vmem:[#allocation76_spill] sm:$0xff] }
 0x356   :  { %4102 = vpow2.f32 %v2855_v31  ;;  %v6553_v51 = vmax.f32 %v6552_v20, 0.0  ;;  %v2863_v15 = vmul.f32 1.442695, %v2711_v16 }
 0x357   :  { %v2704_v39 = vsub.f32 %v5961_v32, %v6035_v3  ;;  %v2706_v59 = vsub.f32 %v5968_v5, %v6035_v3  ;;  %v2708_v30 = vsub.f32 %v5973_v46, %v6035_v3  ;;  %v2710_v53 = vsub.f32 %v5978_v18, %v6035_v3 }
 0x358   :  { %v3056_v6 = vmul.f32 %v4093_v24, %v6553_v51  ;;  %v6051_v50 = vpop.permute.xlu0 %3121  ;;  %v3046_v32 = vadd.f32 %v3036_v33, %v3026_v48  ;;  %v2713_v5 = vsub.f32 %v5985_v40, %v6011_v49  ;;  %4104 = vpow2.f32 %v2859_v47 }
 0x359   :  { %v2849_v31 = vmul.f32 1.442695, %v2704_v39  ;;  %v2853_v46 = vmul.f32 1.442695, %v2706_v59  ;;  %v2857_v37 = vmul.f32 1.442695, %v2708_v30  ;;  %v2712_v60 = vsub.f32 %v5983_v9, %v6035_v3 }
 0x35a   :  { %v6047_v43 = vpop.eup %4098  ;;  %v2946_v24 = vadd.f32 %v4097_v0, %v2936_v62  ;;  %v2861_v16 = vmul.f32 1.442695, %v2710_v53  ;;  %v3127_v48 = vmul.f32 %v6051_v50, %v5780_v11  ;;  %v3066_v47 = vadd.f32 %v3056_v6, %v3046_v32  ;;  %v6554_v39 = vld [vmem:[#allocation65_spill] sm:$0xff] }
 0x35b   :  { %v6053_v19 = vpop.eup %4100  ;;  %4106 = vpow2.f32 %v2849_v31  ;;  %v2867_v45 = vmul.f32 1.442695, %v2713_v5  ;;  %v2714_v33 = vsub.f32 %v5993_v63, %v6035_v3  ;;  %v2865_v62 = vmul.f32 1.442695, %v2712_v60 }
 0x35c   :  { %v2887_v18 = vadd.f32 %v6053_v19, %v6047_v43  ;;  %v6061_v29 = vpop.eup %4102  ;;  %4108 = vpow2.f32 %v2853_v46  ;;  %v3133_v9 = vsel %vm97_vm1, %v3127_v48, 0.0  ;;  %v6555_v59 = vmax.f32 %v6554_v39, 0.0 }
 0x35d   :  { %4110 = vpow2.f32 %v2863_v15  ;;  %3134 = vadd.xlane.f32.xlu2 %v3133_v9  ;;  %v2871_v31 = vmul.f32 1.442695, %v2715_v1  ;;  %v3129_v63 = vmul.f32 %v6051_v50, %v5959_v28  ;;  %v2716_v5 = vsub.f32 %v6022_v36, %v6035_v3 }
 0x35e   :  { %v2897_v40 = vadd.f32 %v6061_v29, %v2887_v18  ;;  %4112 = vpow2.f32 %v2857_v37  ;;  %v3076_v30 = vmul.f32 %v4095_v10, %v6555_v59  ;;  %v4105_v53 = vpop.eup %4104  ;;  %v2869_v10 = vmul.f32 1.442695, %v2714_v33  ;;  %v6556_v18 = vld [vmem:[#allocation69_spill] sm:$0xff] }
 0x35f   :  { %4114 = vrcp.f32 %v2946_v24  ;;  %v6557_v60 = vmax.f32 %v6556_v18, 0.0  ;;  %v2875_v49 = vmul.f32 1.442695, %v2717_v26  ;;  %v2873_v36 = vmul.f32 1.442695, %v2716_v5  ;;  %v6558_v26 = vld [vmem:[#allocation71_spill] sm:$0xff] }
 0x360   :  { %4116 = vpow2.f32 %v2861_v16  ;;  %v2907_v51 = vadd.f32 %v4105_v53, %v2897_v40  ;;  %v3086_v6 = vadd.f32 %v3076_v30, %v3066_v47  ;;  %v3139_v47 = vsel %vm97_vm1, %v3129_v63, 0.0  ;;  %v6560_v5 = vld [vmem:[#allocation75_spill] sm:$0xff] }
 0x361   :  { %v4107_v20 = vpop.eup %4106  ;;  %4118 = vpow2.f32 %v2867_v45  ;;  %v3096_v24 = vmul.f32 %v4097_v0, %v6557_v60  ;;  %v2718_v45 = vsub.f32 %v6030_v2, %v6035_v3 }
 0x362   :  { %v4109_v15 = vpop.eup %4108  ;;  %4120 = vpow2.f32 %v2865_v62 }
 0x363   :  { %v4111_v32 = vpop.eup %4110  ;;  %v2888_v46 = vadd.f32 %v4109_v15, %v4107_v20  ;;  %4122 = vpow2.f32 %v2871_v31  ;;  %v3106_v1 = vadd.f32 %v3096_v24, %v3086_v6  ;;  %v6559_v31 = vmax.f32 %v6558_v26, 0.0  ;;  %v6564_v26 = vld [vmem:[#allocation80_spill] sm:$0xff] }
 0x364   :  { %v4113_v37 = vpop.eup %4112  ;;  %v2917_v48 = vadd.f32 %v4111_v32, %v2907_v51  ;;  %4124 = vpow2.f32 %v2869_v10  ;;  %v2877_v51 = vmul.f32 1.442695, %v2718_v45  ;;  %v6561_v10 = vmax.f32 %v6560_v5, 0.0  ;;  %v6568_v5 = vld [vmem:[#allocation77_spill] sm:$0xff] }
 0x365   :  { %v4115_v16 = vpop.eup %4114  ;;  %v2898_v40 = vadd.f32 %v4113_v37, %v2888_v46  ;;  %3140 = vadd.xlane.f32.xlu2 %v3139_v47  ;;  %v6084_v62 = vpop.permute.xlu1 %3123  ;;  %4126 = vpow2.f32 %v2875_v49  ;;  %v2967_v63 = vmul.f32 %v6047_v43, %v6559_v31  ;;  %v6562_v47 = vld [vmem:[#allocation78_spill] sm:$0xff] }
 0x366   :  { %v4117_v13 = vpop.eup %4116  ;;  %v6086_v59 = vmul.f32 %v4115_v16, %v3106_v1  ;;  %4128 = vpow2.f32 %v2873_v36  ;;  %v3128_v2 = vmul.f32 %v6084_v62, %v5853_v23  ;;  %v2977_v46 = vmul.f32 %v6053_v19, %v6561_v10 }
 0x367   :  { %v2908_v9 = vadd.f32 %v4117_v13, %v2898_v40  ;;  %v4119_v33 = vpop.eup %4118  ;;  %4130 = vpow2.f32 %v2877_v51  ;;  %v6563_v1 = vmax.f32 %v6562_v47, 0.0  ;;  %v6566_v51 = vld [vmem:[#allocation73_spill] sm:$0xff]  ;;  %v6571_v47 = vld [vmem:[#allocation79_spill] sm:$0xff] }
 0x368   :  { %v4121_v0 = vpop.eup %4120  ;;  %v2927_v39 = vadd.f32 %v4119_v33, %v2917_v48  ;;  %v3130_v6 = vmul.f32 %v6084_v62, %v6086_v59  ;;  %v3136_v48 = vsel %vm97_vm1, %v3128_v2, 0.0  ;;  %v2987_v49 = vadd.f32 %v2977_v46, %v2967_v63 }
 0x369   :  { %v2918_v30 = vadd.f32 %v4121_v0, %v2908_v9  ;;  %v4123_v3 = vpop.eup %4122  ;;  %3137 = vadd.xlane.f32.xlu0 %v3136_v48  ;;  %v2997_v43 = vmul.f32 %v6061_v29, %v6563_v1  ;;  %v6567_v31 = vmax.f32 %v6566_v51, 0.0  ;;  %v6569_v2 = vmax.f32 %v6568_v5, 0.0  ;;  %v6579_v51 = vld [vmem:[#allocation47_spill] sm:$0xff] }
 0x36a   :  { %v4125_v18 = vpop.eup %4124  ;;  %v2937_v60 = vadd.f32 %v4123_v3, %v2927_v39  ;;  %v3142_v16 = vsel %vm97_vm1, %v3130_v6, 0.0  ;;  %v6565_v39 = vmax.f32 %v6564_v26, 0.0  ;;  %v6570_v63 = vmax.f32 %v5621_v35, 0.0 }
 0x36b   :  { %v2928_v24 = vadd.f32 %v4125_v18, %v2918_v30  ;;  %v4127_v40 = vpop.eup %4126  ;;  %3143 = vadd.xlane.f32.xlu1 %v3142_v16  ;;  %v3007_v19 = vadd.f32 %v2997_v43, %v2987_v49  ;;  %v2968_v6 = vmul.f32 %v4107_v20, %v6567_v31  ;;  %v2978_v10 = vmul.f32 %v4109_v15, %v6569_v2  ;;  %v6573_v20 = vld [vmem:[#allocation81_spill] sm:$0xff]  ;;  %v6581_v2 = vld [vmem:[#allocation54_spill] sm:$0xff] }
 0x36c   :  { %v4129_v45 = vpop.eup %4128  ;;  %v2947_v36 = vadd.f32 %v4127_v40, %v2937_v60  ;;  %v3017_v30 = vmul.f32 %v4105_v53, %v6565_v39  ;;  %v3037_v46 = vmul.f32 %v4111_v32, %v6570_v63  ;;  %v6572_v60 = vmax.f32 %v6571_v47, 0.0 }
 0x36d   :  { %v2938_v9 = vadd.f32 %v4129_v45, %v2928_v24  ;;  %v4131_v48 = vpop.eup %4130  ;;  %v2988_v29 = vadd.f32 %v2978_v10, %v2968_v6  ;;  %v3057_v53 = vmul.f32 %v4119_v33, %v2243_v42  ;;  %v6574_v26 = vmax.f32 %v6573_v20, 0.0  ;;  %v6580_v6 = vld [vmem:[#allocation58_spill] sm:$0xff] }
 0x36e   :  { %v3027_v16 = vadd.f32 %v3017_v30, %v3007_v19  ;;  %4132 = vrcp.f32 %v2947_v36  ;;  %v2998_v24 = vmul.f32 %v4113_v37, %v6572_v60  ;;  %v3077_v35 = vmul.f32 %v4123_v3, %v2245_v57  ;;  %v6584_v60 = vld [vmem:[#allocation56_spill] sm:$0xff] }
 0x36f   :  { %v2948_v49 = vadd.f32 %v4131_v48, %v2938_v9  ;;  %v3018_v39 = vmul.f32 %v4117_v13, %v6574_v26  ;;  %v3038_v36 = vmul.f32 %v4121_v0, %v2242_v55  ;;  %v3097_v37 = vmul.f32 %v4127_v40, %v2247_v61  ;;  %v6577_v40 = vld [vmem:[#allocation52_spill] sm:$0xff] }
 0x370   :  { %v3047_v1 = vadd.f32 %v3037_v46, %v3027_v16  ;;  %v3008_v43 = vadd.f32 %v2998_v24, %v2988_v29  ;;  %v3058_v42 = vmul.f32 %v4125_v18, %v2244_v52  ;;  %v3078_v7 = vmul.f32 %v4129_v45, %v2246_v58  ;;  %v6575_v58 = vld [vmem:[#allocation49_spill] sm:$0xff]  ;;  %v6582_v16 = vld [vmem:[#allocation59_spill] sm:$0xff] }
 0x371   :  { %4134 = vrcp.f32 %v2948_v49  ;;  %v3098_v22 = vmul.f32 %v4131_v48, %v2248_v17  ;;  %v2571_v12 = vmax.f32 %v5858_v54, %v6575_v58  ;;  %v6576_v17 = vld [vmem:[#allocation50_spill] sm:$0xff]  ;;  %v2572_v31 = vmax.f32 %v5957_v21, %v6579_v51  ;;  %v6583_v46 = vld [vmem:[#allocation55_spill] sm:$0xff] }
 0x372   :  { %v3067_v15 = vadd.f32 %v3057_v53, %v3047_v1  ;;  %v3028_v32 = vadd.f32 %v3018_v39, %v3008_v43  ;;  %v6585_v43 = vld [vmem:[#allocation27_spill] sm:$0xff] }
 0x373   :  { %v2581_v18 = vmax.f32 %v2571_v12, %v6576_v17  ;;  %v2582_v10 = vmax.f32 %v2572_v31, %v6581_v2 }
 0x374   :  { %v3087_v19 = vadd.f32 %v3077_v35, %v3067_v15  ;;  %v4133_v9 = vpop.eup %4132  ;;  %v3048_v14 = vadd.f32 %v3038_v36, %v3028_v32  ;;  %v6586_v15 = vld [vmem:[#allocation61_spill] sm:$0xff] }
 0x375   :  { %v2591_v45 = vmax.f32 %v2581_v18, %v6577_v40  ;;  %v2592_v48 = vmax.f32 %v2582_v10, %v6583_v46 }
 0x376   :  { %v3107_v33 = vadd.f32 %v3097_v37, %v3087_v19  ;;  %v3068_v13 = vadd.f32 %v3058_v42, %v3048_v14 }
 0x377   :  { %v4135_v55 = vpop.eup %4134  ;;  %v2602_v24 = vmax.f32 %v2592_v48, %v6584_v60 }
 0x378   :  { %v6127_v57 = vmul.f32 %v4133_v9, %v3107_v33  ;;  %v3088_v3 = vadd.f32 %v3078_v7, %v3068_v13 }
 0x379   :  { %v2612_v20 = vmax.f32 %v2602_v24, %v6585_v43 }
 0x37a   :  { %v3131_v38 = vmul.f32 %v6051_v50, %v6127_v57  ;;  %v3108_v61 = vadd.f32 %v3098_v22, %v3088_v3  ;;  %v6578_v50 = vld [vmem:[#allocation26_spill] sm:$0xff] }
 0x37b   :  { %v2601_v30 = vmax.f32 %v2591_v45, %v6578_v50  ;;  %v2622_v35 = vmax.f32 %v2612_v20, %v6586_v15 }
 0x37c   :  { %v3145_v0 = vsel %vm97_vm1, %v3131_v38, 0.0  ;;  %v6134_v27 = vmul.f32 %v4135_v55, %v3108_v61 }
 0x37d   :  { %3146 = vadd.xlane.f32.xlu2 %v3145_v0  ;;  %v2611_v5 = vmax.f32 %v2601_v30, %v6580_v6  ;;  %v6589_v30 = vld [vmem:[#allocation12_spill] sm:$0xff] }
 0x37e   :  { %v3132_v52 = vmul.f32 %v6084_v62, %v6134_v27  ;;  %v2421_v62 = vpop.xlane.xlu2 %2420 }
 0x37f   :  { %v2621_v63 = vmax.f32 %v2611_v5, %v6582_v16 }
 0x380   :  { %v3148_v44 = vsel %vm97_vm1, %v3132_v52, 0.0 }
 0x381   :  { %v2631_v29 = vmax.f32 %v2621_v63, %v2421_v62 }
 0x383   :  { %v2655_v47 = vsub.f32 %v5858_v54, %v2631_v29  ;;  %v2657_v49 = vsub.f32 %v6575_v58, %v2631_v29  ;;  %v2659_v39 = vsub.f32 %v6576_v17, %v2631_v29  ;;  %v2661_v54 = vsub.f32 %v6577_v40, %v2631_v29  ;;  %v6587_v40 = vld [vmem:[#allocation10_spill] sm:$0xff] }
 0x384   :  { %v2663_v37 = vsub.f32 %v6578_v50, %v2631_v29  ;;  %v2665_v55 = vsub.f32 %v6580_v6, %v2631_v29  ;;  %v6588_v45 = vmax.f32 %v6587_v40, 0.0  ;;  %v2669_v6 = vsub.f32 %v2421_v62, %v2631_v29  ;;  %v6591_v62 = vld [vmem:[#allocation14_spill] sm:$0xff] }
 0x385   :  { %3149 = vadd.xlane.f32.xlu2 %v3148_v44  ;;  %v2751_v53 = vmul.f32 1.442695, %v2655_v47  ;;  %v2755_v26 = vmul.f32 1.442695, %v2657_v49  ;;  %v2759_v36 = vmul.f32 1.442695, %v2659_v39  ;;  %v2667_v44 = vsub.f32 %v6582_v16, %v2631_v29 }
 0x386   :  { %v6153_v1 = vpop.xlane.xlu2 %2423  ;;  %v2763_v33 = vmul.f32 1.442695, %v2661_v54  ;;  %v2767_v7 = vmul.f32 1.442695, %v2663_v37  ;;  %v2771_v58 = vmul.f32 1.442695, %v2665_v55 }
 0x387   :  { %4136 = vpow2.f32 %v2751_v53  ;;  %v6159_v32 = vmax.f32 %v2622_v35, %v6153_v1  ;;  %v2775_v10 = vmul.f32 1.442695, %v2667_v44  ;;  %v2779_v53 = vmul.f32 1.442695, %v2669_v6 }
 0x388   :  { %4138 = vpow2.f32 %v2755_v26  ;;  %v6592_v29 = vmax.f32 %v6591_v62, 0.0 }
 0x389   :  { %v2656_v14 = vsub.f32 %v5957_v21, %v6159_v32  ;;  %4140 = vpow2.f32 %v2759_v36  ;;  %v2658_v13 = vsub.f32 %v6579_v51, %v6159_v32  ;;  %v2660_v0 = vsub.f32 %v6581_v2, %v6159_v32 }
 0x38a   :  { %4142 = vpow2.f32 %v2763_v33  ;;  %v2662_v17 = vsub.f32 %v6583_v46, %v6159_v32  ;;  %v6590_v51 = vmax.f32 %v6589_v30, 0.0  ;;  %v2664_v16 = vsub.f32 %v6584_v60, %v6159_v32 }
 0x38b   :  { %v2753_v22 = vmul.f32 1.442695, %v2656_v14  ;;  %v2757_v38 = vmul.f32 1.442695, %v2658_v13  ;;  %4144 = vpow2.f32 %v2767_v7  ;;  %v2761_v18 = vmul.f32 1.442695, %v2660_v0 }
 0x38c   :  { %v2765_v46 = vmul.f32 1.442695, %v2662_v17  ;;  %v2769_v39 = vmul.f32 1.442695, %v2664_v16  ;;  %v2666_v14 = vsub.f32 %v6585_v43, %v6159_v32  ;;  %v2670_v40 = vsub.f32 %v6153_v1, %v6159_v32  ;;  %v6599_v16 = vld [vmem:[#allocation13_spill] sm:$0xff] }
 0x38d   :  { %v4137_v9 = vpop.eup %4136  ;;  %4146 = vpow2.f32 %v2753_v22 }
 0x38e   :  { %v4139_v42 = vpop.eup %4138  ;;  %4148 = vpow2.f32 %v2757_v38  ;;  %v2961_v50 = vmul.f32 %v4137_v9, %v6588_v45 }
 0x38f   :  { %v2881_v3 = vadd.f32 %v4139_v42, %v4137_v9  ;;  %v4141_v61 = vpop.eup %4140  ;;  %v2971_v31 = vmul.f32 %v4139_v42, %v6590_v51  ;;  %4150 = vpow2.f32 %v2771_v58  ;;  %v2668_v42 = vsub.f32 %v6586_v15, %v6159_v32  ;;  %v6595_v51 = vld [vmem:[#allocation18_spill] sm:$0xff] }
 0x390   :  { %v4143_v12 = vpop.eup %4142  ;;  %4152 = vpow2.f32 %v2761_v18  ;;  %v2991_v35 = vmul.f32 %v4141_v61, %v6592_v29  ;;  %v2773_v58 = vmul.f32 1.442695, %v2666_v14  ;;  %v2781_v29 = vmul.f32 1.442695, %v2670_v40 }
 0x391   :  { %v2891_v21 = vadd.f32 %v4141_v61, %v2881_v3  ;;  %v4145_v2 = vpop.eup %4144  ;;  %v2981_v49 = vadd.f32 %v2971_v31, %v2961_v50  ;;  %4154 = vpow2.f32 %v2775_v10  ;;  %v6593_v61 = vld [vmem:[#allocation16_spill] sm:$0xff]  ;;  %v2777_v45 = vmul.f32 1.442695, %v2668_v42 }
 0x392   :  { %4156 = vpow2.f32 %v2765_v46  ;;  %v6594_v0 = vmax.f32 %v6593_v61, 0.0  ;;  %v6596_v31 = vmax.f32 %v6595_v51, 0.0 }
 0x393   :  { %v2901_v5 = vadd.f32 %v4143_v12, %v2891_v21  ;;  %v4147_v63 = vpop.eup %4146  ;;  %v3001_v7 = vadd.f32 %v2991_v35, %v2981_v49  ;;  %4158 = vpow2.f32 %v2779_v53 }
 0x394   :  { %v4149_v47 = vpop.eup %4148  ;;  %4160 = vpow2.f32 %v2769_v39  ;;  %v3031_v6 = vmul.f32 %v4145_v2, %v6596_v31 }
 0x395   :  { %v2911_v20 = vadd.f32 %v4145_v2, %v2901_v5  ;;  %v2882_v54 = vadd.f32 %v4149_v47, %v4147_v63  ;;  %v4151_v60 = vpop.eup %4150 }
 0x396   :  { %v4153_v38 = vpop.eup %4152 }
 0x397   :  { %v2921_v3 = vadd.f32 %v4151_v60, %v2911_v20  ;;  %v2892_v21 = vadd.f32 %v4153_v38, %v2882_v54  ;;  %v4155_v43 = vpop.eup %4154 }
 0x398   :  { %v4157_v30 = vpop.eup %4156 }
 0x399   :  { %v2931_v18 = vadd.f32 %v4155_v43, %v2921_v3  ;;  %v2902_v49 = vadd.f32 %v4157_v30, %v2892_v21 }
 0x3d0   :  { %v3135_v19 = vpop.xlane.xlu2 %3134 }
 0x3d8   :  { %v3141_v52 = vpop.xlane.xlu2 %3140 }
 0x3d9   :  { %v3151_v48 = vmax.f32 %v3135_v19, %v3141_v52 }
 0x3dc   :  { %v3138_v13 = vpop.xlane.xlu0 %3137 }
 0x3de   :  { %v3144_v33 = vpop.xlane.xlu1 %3143 }
 0x3df   :  { %v3152_v44 = vmax.f32 %v3138_v13, %v3144_v33 }
 0x3f0   :  { %v3147_v24 = vpop.xlane.xlu2 %3146 }
 0x3f1   :  { %v3153_v26 = vmax.f32 %v3151_v48, %v3147_v24  ;;  %v6600_v48 = vmax.f32 %v6599_v16, 0.0 }
 0x3f3   :  { %v3155_v36 = vsub.f32 %v3135_v19, %v3153_v26  ;;  %v3157_v37 = vsub.f32 %v3141_v52, %v3153_v26  ;;  %v3159_v9 = vsub.f32 %v3147_v24, %v3153_v26  ;;  %v3011_v52 = vmul.f32 %v4143_v12, %v6594_v0  ;;  %v6597_v12 = vld [vmem:[#allocation29_spill] sm:$0xff]  ;;  %v4159_v24 = vpop.eup %4158 }
 0x3f4   :  { %v6598_v5 = vmax.f32 %v6597_v12, 0.0  ;;  %v2972_v46 = vmul.f32 %v4149_v47, %v6600_v48  ;;  %v4161_v39 = vpop.eup %4160  ;;  %v2941_v62 = vadd.f32 %v4159_v24, %v2931_v18  ;;  %v6607_v18 = vld [vmem:[#allocation17_spill] sm:$0xff] }
 0x3f5   :  { %v3161_v22 = vmul.f32 1.442695, %v3155_v36  ;;  %v3165_v55 = vmul.f32 1.442695, %v3157_v37  ;;  %v3169_v19 = vmul.f32 1.442695, %v3159_v9  ;;  %v3021_v17 = vadd.f32 %v3011_v52, %v3001_v7 }
 0x3f6   :  { %v2962_v10 = vmul.f32 %v4147_v63, %v6598_v5  ;;  %v6601_v63 = vld [vmem:[#allocation20_spill] sm:$0xff]  ;;  %v2912_v14 = vadd.f32 %v4161_v39, %v2902_v49  ;;  %v6605_v52 = vld [vmem:[#allocation22_spill] sm:$0xff]  ;;  %v6608_v40 = vmax.f32 %v6607_v18, 0.0  ;;  %v6609_v5 = vld [vmem:[#allocation19_spill] sm:$0xff] }
 0x3f7   :  { %4162 = vpow2.f32 %v3161_v22  ;;  %v3041_v1 = vadd.f32 %v3031_v6, %v3021_v17  ;;  %v6602_v37 = vmax.f32 %v6601_v63, 0.0 }
 0x3f8   :  { %4164 = vpow2.f32 %v3165_v55  ;;  %v3150_v15 = vpop.xlane.xlu2 %3149  ;;  %v2982_v47 = vadd.f32 %v2972_v46, %v2962_v10  ;;  %v6610_v10 = vmax.f32 %v6609_v5, 0.0 }
 0x3f9   :  { %v3154_v50 = vmax.f32 %v3152_v44, %v3150_v15  ;;  %4166 = vpow2.f32 %v3169_v19  ;;  %v3051_v9 = vmul.f32 %v4151_v60, %v6602_v37  ;;  %v6606_v60 = vmax.f32 %v6605_v52, 0.0  ;;  %v6613_v37 = vld [vmem:[#allocation23_spill] sm:$0xff] }
 0x3fa   :  { %4168 = vpow2.f32 %v2773_v58  ;;  %v3032_v16 = vmul.f32 %v4161_v39, %v6610_v10  ;;  %v6611_v39 = vld [vmem:[#allocation21_spill] sm:$0xff] }
 0x3fb   :  { %v3156_v53 = vsub.f32 %v3138_v13, %v3154_v50  ;;  %v3158_v20 = vsub.f32 %v3144_v33, %v3154_v50  ;;  %v3160_v26 = vsub.f32 %v3150_v15, %v3154_v50  ;;  %4170 = vpow2.f32 %v2777_v45  ;;  %v6603_v33 = vld [vmem:[#allocation15_spill] sm:$0xff] }
 0x3fc   :  { %v6604_v13 = vmax.f32 %v6603_v33, 0.0  ;;  %v3061_v22 = vadd.f32 %v3051_v9, %v3041_v1  ;;  %v3071_v21 = vmul.f32 %v4155_v43, %v6606_v60  ;;  %v3012_v45 = vmul.f32 %v4157_v30, %v6608_v40 }
 0x3fd   :  { %v4163_v32 = vpop.eup %4162  ;;  %v3163_v35 = vmul.f32 1.442695, %v3156_v53  ;;  %v3167_v54 = vmul.f32 1.442695, %v3158_v20  ;;  %v3171_v36 = vmul.f32 1.442695, %v3160_v26 }
 0x3fe   :  { %v4165_v2 = vpop.eup %4164  ;;  %v2992_v7 = vmul.f32 %v4153_v38, %v6604_v13  ;;  %v3179_v55 = vmul.f32 %v4163_v32, %v5780_v11  ;;  %v3081_v38 = vadd.f32 %v3071_v21, %v3061_v22  ;;  %v6614_v9 = vmax.f32 %v6613_v37, 0.0 }
 0x3ff   :  { %v3173_v42 = vadd.f32 %v4165_v2, %v4163_v32  ;;  %4172 = vpow2.f32 %v3163_v35  ;;  %v4167_v3 = vpop.eup %4166  ;;  %v3181_v19 = vmul.f32 %v4165_v2, %v5959_v28  ;;  %v3091_v28 = vmul.f32 %v4159_v24, %v2199_v56 }
 0x400   :  { %4174 = vpow2.f32 %v3167_v54  ;;  %v4169_v0 = vpop.eup %4168  ;;  %v3002_v44 = vadd.f32 %v2992_v7, %v2982_v47  ;;  %v3185_v51 = vmul.f32 %v4167_v3, %v6127_v57  ;;  %v6612_v35 = vmax.f32 %v6611_v39, 0.0 }
 0x401   :  { %4176 = vrcp.f32 %v2941_v62  ;;  %v3175_v61 = vadd.f32 %v4167_v3, %v3173_v42  ;;  %v2922_v58 = vadd.f32 %v4169_v0, %v2912_v14  ;;  %v4171_v15 = vpop.eup %4170  ;;  %v3183_v17 = vadd.f32 %v3181_v19, %v3179_v55 }
 0x402   :  { %4178 = vpow2.f32 %v3171_v36  ;;  %v3022_v31 = vadd.f32 %v3012_v45, %v3002_v44  ;;  %v3101_v46 = vadd.f32 %v3091_v28, %v3081_v38  ;;  %v3052_v54 = vmul.f32 %v4169_v0, %v6612_v35 }
 0x403   :  { %4180 = vrcp.f32 %v3175_v61  ;;  %v2932_v43 = vadd.f32 %v4171_v15, %v2922_v58  ;;  %v3187_v49 = vadd.f32 %v3185_v51, %v3183_v17  ;;  %v3072_v47 = vmul.f32 %v4171_v15, %v6614_v9 }
 0x404   :  { %4182 = vpow2.f32 %v2781_v29  ;;  %v3042_v57 = vadd.f32 %v3032_v16, %v3022_v31 }
 0x405   :  { %v4173_v11 = vpop.eup %4172 }
 0x406   :  { %v4175_v50 = vpop.eup %4174  ;;  %v3180_v53 = vmul.f32 %v4173_v11, %v5853_v23  ;;  %v3062_v36 = vadd.f32 %v3052_v54, %v3042_v57 }
 0x407   :  { %v4177_v6 = vpop.eup %4176  ;;  %v3174_v12 = vadd.f32 %v4175_v50, %v4173_v11  ;;  %v3182_v30 = vmul.f32 %v4175_v50, %v6086_v59 }
 0x408   :  { %v4179_v48 = vpop.eup %4178  ;;  %v3111_v56 = vmul.f32 %v4177_v6, %v3101_v46  ;;  %v3082_v42 = vadd.f32 %v3072_v47, %v3062_v36 }
 0x409   :  { %v4181_v20 = vpop.eup %4180  ;;  %v3176_v26 = vadd.f32 %v4179_v48, %v3174_v12  ;;  %v3184_v29 = vadd.f32 %v3182_v30, %v3180_v53  ;;  %v3186_v59 = vmul.f32 %v4179_v48, %v6134_v27 }
 0x40a   :  { %v4183_v34 = vpop.eup %4182  ;;  %v3189_v24 = vmul.f32 %v4181_v20, %v3187_v49 }
 0x40b   :  { %v2942_v1 = vadd.f32 %v4183_v34, %v2932_v43  ;;  %4184 = vrcp.f32 %v3176_v26  ;;  %v3188_v63 = vadd.f32 %v3186_v59, %v3184_v29  ;;  %v3092_v13 = vmul.f32 %v4183_v34, %v2200_v4 }
 0x40c   :  { %v3199_v32 = vmul.f32 %v3189_v24, %v3111_v56  ;;  %v3191_v62 = vmul.f32 %v3189_v24, %v5881_v8 }
 0x40d   :  { %4186 = vrcp.f32 %v2942_v1  ;;  %v3102_v27 = vadd.f32 %v3092_v13, %v3082_v42 }
 0x40e   :  { %v3201_v2 = vsel %vm97_vm1, %v3199_v32, 0.0  ;;  %v3193_v23 = vsel %vm97_vm1, %v3191_v62, 0.0 }
 0x40f   :  { %3202 = vadd.xlane.f32.xlu0 %v3201_v2  ;;  %3194 = vadd.xlane.f32.xlu2 %v3193_v23 }
 0x411   :  { %v4185_v14 = vpop.eup %4184 }
 0x412   :  { %v3190_v8 = vmul.f32 %v4185_v14, %v3188_v63 }
 0x413   :  { %v4187_v7 = vpop.eup %4186 }
 0x414   :  { %v3192_v33 = vmul.f32 %v3190_v8, %v5893_v41  ;;  %v3112_v22 = vmul.f32 %v4187_v7, %v3102_v27 }
 0x416   :  { %v3196_v3 = vsel %vm97_vm1, %v3192_v33, 0.0  ;;  %v3200_v55 = vmul.f32 %v3190_v8, %v3112_v22 }
 0x417   :  { %3197 = vadd.xlane.f32.xlu2 %v3196_v3 }
 0x418   :  { %v3204_v19 = vsel %vm97_vm1, %v3200_v55, 0.0 }
 0x41f   :  { %3205 = vadd.xlane.f32.xlu2 %v3204_v19 }
 0x482   :  { %v3195_v61 = vpop.xlane.xlu2 %3194  ;;  %v3203_v0 = vpop.xlane.xlu0 %3202 }
 0x483   :  { %v3208_v52 = vsel %vm3207_vm2, %v3195_v61, %v3203_v0 }
 0x484   :  { %3211 = vst.msk [vmem:[%s6236_s5] sm:$0xff] %vm3210_vm3, %v3208_v52 }
 0x48a   :  { %v3198_v41 = vpop.xlane.xlu2 %3197 }
 0x492   :  { %v3206_v25 = vpop.xlane.xlu2 %3205 }
 0x493   :  { %v3209_v4 = vsel %vm3207_vm2, %v3198_v41, %v3206_v25 }
 0x494   :  { %3212 = vst.msk [vmem:[%s6236_s5 + $0x8] sm:$0xff] %vm3210_vm3, %v3209_v4 }
 0x495   :  { %3217 = vsyncpa [#allocation3], 1 }
 0x496   :  { %3218 = vsyncpa [#allocation5], 1 }

</bundles_post_ra>
